<compile_context>
chip_gen: v7x
topology: tpu7x:2x2x1
jax: 0.10.0
libtpu: 0.0.40
codegen_flags: <defaults>
</compile_context>

<pallas_src>
import jax
import jax.numpy as jnp
from jax.experimental import pallas as pl
from jax.experimental.pallas import tpu as pltpu

_LANE = 128
_SUBLANE = 8


def _round_up(x, m):
    return ((x + m - 1) // m) * m


def _pad2d(a, rows, cols):
    r, c = a.shape
    return jnp.pad(a, ((0, rows - r), (0, cols - c)))


def _encoder_kernel(x_ref, w1, b1, w2, b2, w3, b3, w4, b4, o_ref):
    # layer 1: Linear + ReLU
    h = jnp.dot(x_ref[...], w1[...], preferred_element_type=jnp.float32) + b1[...]
    h = jnp.maximum(h, 0.0)
    # layer 2: Linear + ReLU
    h = jnp.dot(h, w2[...], preferred_element_type=jnp.float32) + b2[...]
    h = jnp.maximum(h, 0.0)
    # layer 3: Linear + ReLU
    h = jnp.dot(h, w3[...], preferred_element_type=jnp.float32) + b3[...]
    h = jnp.maximum(h, 0.0)
    # layer 4: Linear (no activation)
    out = jnp.dot(h, w4[...], preferred_element_type=jnp.float32) + b4[...]
    o_ref[...] = out.astype(o_ref.dtype)


def encoder_forward(x, params, *, max_batch_tile=256):
    """x: (B, input_dim) float32.
    params: dict with w1..w4 stored as (in, out) and b1..b4 as (1, out)."""
    B, input_dim = x.shape
    w1, b1 = params["w1"], params["b1"]
    w2, b2 = params["w2"], params["b2"]
    w3, b3 = params["w3"], params["b3"]
    w4, b4 = params["w4"], params["b4"]
    h1, h2, h3 = w1.shape[1], w2.shape[1], w3.shape[1]
    feature_dim = w4.shape[1]

    # ---- pad all feature dims to lane multiples (zeros => identical math) ----
    in_p = _round_up(input_dim, _LANE)
    h1_p = _round_up(h1, _LANE)
    h2_p = _round_up(h2, _LANE)
    h3_p = _round_up(h3, _LANE)
    out_p = _round_up(feature_dim, _LANE)

    w1p, b1p = _pad2d(w1, in_p, h1_p), _pad2d(b1, 1, h1_p)
    w2p, b2p = _pad2d(w2, h1_p, h2_p), _pad2d(b2, 1, h2_p)
    w3p, b3p = _pad2d(w3, h2_p, h3_p), _pad2d(b3, 1, h3_p)
    w4p, b4p = _pad2d(w4, h3_p, out_p), _pad2d(b4, 1, out_p)

    # ---- batch tile: big enough to feed the MXU, tiny batches in one step ----
    b_sub = _round_up(B, _SUBLANE)
    batch_tile = min(max_batch_tile, b_sub)          # multiple of 8 by construction
    B_p = _round_up(B, batch_tile)
    x_p = jnp.pad(x, ((0, B_p - B), (0, in_p - input_dim)))

    grid = (B_p // batch_tile,)

    def resident(shape):
        # Grid-invariant weight/bias block (same block index every step, so the
        # pipeline does not re-DMA it after the first iteration).
        return pl.BlockSpec(shape, lambda i: (0, 0))

    flops = 2 * B_p * (in_p * h1_p + h1_p * h2_p + h2_p * h3_p + h3_p * out_p)
    bytes_accessed = 4 * (
        B_p * in_p + B_p * out_p
        + in_p * h1_p + h1_p
        + h1_p * h2_p + h2_p
        + h2_p * h3_p + h3_p
        + h3_p * out_p + out_p
    )
    cost = pl.CostEstimate(flops=flops, transcendentals=0, bytes_accessed=bytes_accessed)

    out = pl.pallas_call(
        _encoder_kernel,
        out_shape=jax.ShapeDtypeStruct((B_p, out_p), x.dtype),
        grid_spec=pltpu.PrefetchScalarGridSpec(
            num_scalar_prefetch=0,
            grid=grid,
            in_specs=[
                pl.BlockSpec((batch_tile, in_p), lambda i: (i, 0)),   # x tile
                resident(w1p.shape), resident(b1p.shape),
                resident(w2p.shape), resident(b2p.shape),
                resident(w3p.shape), resident(b3p.shape),
                resident(w4p.shape), resident(b4p.shape),
            ],
            out_specs=pl.BlockSpec((batch_tile, out_p), lambda i: (i, 0)),
        ),
        compiler_params=pltpu.CompilerParams(
            dimension_semantics=("parallel",),
            vmem_limit_bytes=48 * 1024 * 1024,
        ),
        cost_estimate=cost,
    )(x_p, w1p, b1p, w2p, b2p, w3p, b3p, w4p, b4p)

    # slice padded batch rows / output lanes back to the logical shape
    return out[:B, :feature_dim]


def init_encoder_params(key, input_dim, feature_dim):
    """Deterministic init mimicking PyTorch nn.Linear default
    (uniform +-1/sqrt(fan_in)).  Weights stored as (in, out)."""
    dims = [(input_dim, 500), (500, 500), (500, 2000), (2000, feature_dim)]
    params = {}
    for idx, (fan_in, fan_out) in enumerate(dims, start=1):
        key, kw, kb = jax.random.split(key, 3)
        bound = 1.0 / jnp.sqrt(jnp.float32(fan_in))
        params[f"w{idx}"] = jax.random.uniform(
            kw, (fan_in, fan_out), jnp.float32, minval=-bound, maxval=bound)
        params[f"b{idx}"] = jax.random.uniform(
            kb, (1, fan_out), jnp.float32, minval=-bound, maxval=bound)
    return params


def encoder_reference(x, params):
    """Plain-JAX reference of the same forward pass."""
    h = jnp.maximum(x @ params["w1"] + params["b1"], 0.0)
    h = jnp.maximum(h @ params["w2"] + params["b2"], 0.0)
    h = jnp.maximum(h @ params["w3"] + params["b3"], 0.0)
    return h @ params["w4"] + params["b4"]


if __name__ == "__main__":
    key = jax.random.PRNGKey(0)
    batch, input_dim, feature_dim = 8, 32, 16

    kx, kp = jax.random.split(key)
    x = jax.random.normal(kx, (batch, input_dim), jnp.float32)
    params = init_encoder_params(kp, input_dim, feature_dim)

    out = jax.block_until_ready(encoder_forward(x, params))

    ref = encoder_reference(x, params)
    assert out.shape == (batch, feature_dim)
    assert jnp.allclose(out, ref, atol=1e-4, rtol=1e-4), "mismatch vs reference"
    print("KERNEL_OK")
</pallas_src>

<mosaic_0001>
module attributes {stable_mosaic.version = 11 : i64} {
  func.func @_encoder_kernel(%arg0: i32, %arg1: memref<8x128xf32, #tpu.memory_space<vmem>>, %arg2: memref<128x512xf32, #tpu.memory_space<vmem>>, %arg3: memref<1x512xf32, #tpu.memory_space<vmem>>, %arg4: memref<512x512xf32, #tpu.memory_space<vmem>>, %arg5: memref<1x512xf32, #tpu.memory_space<vmem>>, %arg6: memref<512x2048xf32, #tpu.memory_space<vmem>>, %arg7: memref<1x2048xf32, #tpu.memory_space<vmem>>, %arg8: memref<2048x128xf32, #tpu.memory_space<vmem>>, %arg9: memref<1x128xf32, #tpu.memory_space<vmem>>, %arg10: memref<8x128xf32, #tpu.memory_space<vmem>>) attributes {dimension_semantics = [#tpu.dimension_semantics<parallel>], iteration_bounds = array<i64: 1>, scalar_prefetch = 0 : i64, scratch_operands = 0 : i64, tpu.core_type = #tpu.core_type<tc>, window_params = [{transform_indices = @transform_0, window_bounds = array<i64: 8, 128>}, {pipeline_mode = #tpu.pipeline_mode<synchronous>, transform_indices = @transform_1, window_bounds = array<i64: 128, 512>}, {pipeline_mode = #tpu.pipeline_mode<synchronous>, transform_indices = @transform_2, window_bounds = array<i64: 1, 512>}, {pipeline_mode = #tpu.pipeline_mode<synchronous>, transform_indices = @transform_3, window_bounds = array<i64: 512, 512>}, {pipeline_mode = #tpu.pipeline_mode<synchronous>, transform_indices = @transform_4, window_bounds = array<i64: 1, 512>}, {pipeline_mode = #tpu.pipeline_mode<synchronous>, transform_indices = @transform_5, window_bounds = array<i64: 512, 2048>}, {pipeline_mode = #tpu.pipeline_mode<synchronous>, transform_indices = @transform_6, window_bounds = array<i64: 1, 2048>}, {pipeline_mode = #tpu.pipeline_mode<synchronous>, transform_indices = @transform_7, window_bounds = array<i64: 2048, 128>}, {pipeline_mode = #tpu.pipeline_mode<synchronous>, transform_indices = @transform_8, window_bounds = array<i64: 1, 128>}, {transform_indices = @transform_9, window_bounds = array<i64: 8, 128>}]} {
    %c0 = arith.constant 0 : index
    %c0_0 = arith.constant 0 : index
    %0 = vector.load %arg1[%c0, %c0_0] : memref<8x128xf32, #tpu.memory_space<vmem>>, vector<8x128xf32>
    %c0_1 = arith.constant 0 : index
    %c0_2 = arith.constant 0 : index
    %1 = vector.load %arg2[%c0_1, %c0_2] : memref<128x512xf32, #tpu.memory_space<vmem>>, vector<128x512xf32>
    %cst = arith.constant dense<0.000000e+00> : vector<8x512xf32>
    %2 = tpu.matmul %0, %1, %cst {dimension_numbers = #tpu.dot_dimension_numbers<[1], [0], [0], [1], [0, 0, 1, 1], [], []>} : vector<8x128xf32>, vector<128x512xf32>, vector<8x512xf32> -> vector<8x512xf32>
    %c0_3 = arith.constant 0 : index
    %c0_4 = arith.constant 0 : index
    %3 = vector.load %arg3[%c0_3, %c0_4] : memref<1x512xf32, #tpu.memory_space<vmem>>, vector<1x512xf32>
    %4 = vector.broadcast %3 : vector<1x512xf32> to vector<8x512xf32>
    %5 = arith.addf %2, %4 : vector<8x512xf32>
    %cst_5 = arith.constant 0.000000e+00 : f32
    %6 = vector.broadcast %cst_5 : f32 to vector<8x512xf32>
    %7 = arith.maximumf %5, %6 : vector<8x512xf32>
    %c0_6 = arith.constant 0 : index
    %c0_7 = arith.constant 0 : index
    %8 = vector.load %arg4[%c0_6, %c0_7] : memref<512x512xf32, #tpu.memory_space<vmem>>, vector<512x512xf32>
    %cst_8 = arith.constant dense<0.000000e+00> : vector<8x512xf32>
    %9 = tpu.matmul %7, %8, %cst_8 {dimension_numbers = #tpu.dot_dimension_numbers<[1], [0], [0], [1], [0, 0, 1, 1], [], []>} : vector<8x512xf32>, vector<512x512xf32>, vector<8x512xf32> -> vector<8x512xf32>
    %c0_9 = arith.constant 0 : index
    %c0_10 = arith.constant 0 : index
    %10 = vector.load %arg5[%c0_9, %c0_10] : memref<1x512xf32, #tpu.memory_space<vmem>>, vector<1x512xf32>
    %11 = vector.broadcast %10 : vector<1x512xf32> to vector<8x512xf32>
    %12 = arith.addf %9, %11 : vector<8x512xf32>
    %cst_11 = arith.constant 0.000000e+00 : f32
    %13 = vector.broadcast %cst_11 : f32 to vector<8x512xf32>
    %14 = arith.maximumf %12, %13 : vector<8x512xf32>
    %c0_12 = arith.constant 0 : index
    %c0_13 = arith.constant 0 : index
    %15 = vector.load %arg6[%c0_12, %c0_13] : memref<512x2048xf32, #tpu.memory_space<vmem>>, vector<512x2048xf32>
    %cst_14 = arith.constant dense<0.000000e+00> : vector<8x2048xf32>
    %16 = tpu.matmul %14, %15, %cst_14 {dimension_numbers = #tpu.dot_dimension_numbers<[1], [0], [0], [1], [0, 0, 1, 1], [], []>} : vector<8x512xf32>, vector<512x2048xf32>, vector<8x2048xf32> -> vector<8x2048xf32>
    %c0_15 = arith.constant 0 : index
    %c0_16 = arith.constant 0 : index
    %17 = vector.load %arg7[%c0_15, %c0_16] : memref<1x2048xf32, #tpu.memory_space<vmem>>, vector<1x2048xf32>
    %18 = vector.broadcast %17 : vector<1x2048xf32> to vector<8x2048xf32>
    %19 = arith.addf %16, %18 : vector<8x2048xf32>
    %cst_17 = arith.constant 0.000000e+00 : f32
    %20 = vector.broadcast %cst_17 : f32 to vector<8x2048xf32>
    %21 = arith.maximumf %19, %20 : vector<8x2048xf32>
    %c0_18 = arith.constant 0 : index
    %c0_19 = arith.constant 0 : index
    %22 = vector.load %arg8[%c0_18, %c0_19] : memref<2048x128xf32, #tpu.memory_space<vmem>>, vector<2048x128xf32>
    %cst_20 = arith.constant dense<0.000000e+00> : vector<8x128xf32>
    %23 = tpu.matmul %21, %22, %cst_20 {dimension_numbers = #tpu.dot_dimension_numbers<[1], [0], [0], [1], [0, 0, 1, 1], [], []>} : vector<8x2048xf32>, vector<2048x128xf32>, vector<8x128xf32> -> vector<8x128xf32>
    %c0_21 = arith.constant 0 : index
    %c0_22 = arith.constant 0 : index
    %24 = vector.load %arg9[%c0_21, %c0_22] : memref<1x128xf32, #tpu.memory_space<vmem>>, vector<1x128xf32>
    %25 = vector.broadcast %24 : vector<1x128xf32> to vector<8x128xf32>
    %26 = arith.addf %23, %25 : vector<8x128xf32>
    %c0_23 = arith.constant 0 : index
    %c0_24 = arith.constant 0 : index
    %27 = vector.load %arg10[%c0_23, %c0_24] : memref<8x128xf32, #tpu.memory_space<vmem>>, vector<8x128xf32>
    tpu.vector_store %arg10[%c0_23, %c0_24], %26 {strides = array<i32>} : memref<8x128xf32, #tpu.memory_space<vmem>>, vector<8x128xf32>,
    return
  }
  func.func @transform_0(%arg0: i32) -> (i32, i32) {
    %c0_i32 = arith.constant 0 : i32
    %c0_i32_0 = arith.constant 0 : i32
    return %arg0, %c0_i32 : i32, i32
  }
  func.func @transform_1(%arg0: i32) -> (i32, i32) {
    %c0_i32 = arith.constant 0 : i32
    %c0_i32_0 = arith.constant 0 : i32
    %c0_i32_1 = arith.constant 0 : i32
    return %c0_i32, %c0_i32_0 : i32, i32
  }
  func.func @transform_2(%arg0: i32) -> (i32, i32) {
    %c0_i32 = arith.constant 0 : i32
    %c0_i32_0 = arith.constant 0 : i32
    %c0_i32_1 = arith.constant 0 : i32
    return %c0_i32, %c0_i32_0 : i32, i32
  }
  func.func @transform_3(%arg0: i32) -> (i32, i32) {
    %c0_i32 = arith.constant 0 : i32
    %c0_i32_0 = arith.constant 0 : i32
    %c0_i32_1 = arith.constant 0 : i32
    return %c0_i32, %c0_i32_0 : i32, i32
  }
  func.func @transform_4(%arg0: i32) -> (i32, i32) {
    %c0_i32 = arith.constant 0 : i32
    %c0_i32_0 = arith.constant 0 : i32
    %c0_i32_1 = arith.constant 0 : i32
    return %c0_i32, %c0_i32_0 : i32, i32
  }
  func.func @transform_5(%arg0: i32) -> (i32, i32) {
    %c0_i32 = arith.constant 0 : i32
    %c0_i32_0 = arith.constant 0 : i32
    %c0_i32_1 = arith.constant 0 : i32
    return %c0_i32, %c0_i32_0 : i32, i32
  }
  func.func @transform_6(%arg0: i32) -> (i32, i32) {
    %c0_i32 = arith.constant 0 : i32
    %c0_i32_0 = arith.constant 0 : i32
    %c0_i32_1 = arith.constant 0 : i32
    return %c0_i32, %c0_i32_0 : i32, i32
  }
  func.func @transform_7(%arg0: i32) -> (i32, i32) {
    %c0_i32 = arith.constant 0 : i32
    %c0_i32_0 = arith.constant 0 : i32
    %c0_i32_1 = arith.constant 0 : i32
    return %c0_i32, %c0_i32_0 : i32, i32
  }
  func.func @transform_8(%arg0: i32) -> (i32, i32) {
    %c0_i32 = arith.constant 0 : i32
    %c0_i32_0 = arith.constant 0 : i32
    %c0_i32_1 = arith.constant 0 : i32
    return %c0_i32, %c0_i32_0 : i32, i32
  }
  func.func @transform_9(%arg0: i32) -> (i32, i32) {
    %c0_i32 = arith.constant 0 : i32
    %c0_i32_0 = arith.constant 0 : i32
    return %arg0, %c0_i32 : i32, i32
  }
}

</mosaic_0001>

<bundles_post_ra>
// kernel: tpu_custom_call.1
= control target key start
LH: loop header
LB: loop body
LE: loop exit
PB: predicated region body
PF: predicated region fallthrough
CT: control target
= control target key end

     0   :  { %14 = vsyncpa [#allocation3], 0  ;;  %s6558_s0 = inlined_call_operand.hbm [shape: f32[8,128], index: 0, kind: input, shape index: {}]   ;;  %s6559_s1 = inlined_call_operand.hbm [shape: f32[128,512], index: 1, kind: input, shape index: {}]   ;;  %s6560_s2 = inlined_call_operand.hbm [shape: f32[1,512], index: 2, kind: input, shape index: {}]   ;;  %s6561_s3 = inlined_call_operand.hbm [shape: f32[512,512], index: 3, kind: input, shape index: {}]   ;;  %s6562_s4 = inlined_call_operand.hbm [shape: f32[1,512], index: 4, kind: input, shape index: {}]   ;;  %s6563_s5 = inlined_call_operand.hbm [shape: f32[512,2048], index: 5, kind: input, shape index: {}]   ;;  %s6564_s6 = inlined_call_operand.hbm [shape: f32[1,2048], index: 6, kind: input, shape index: {}]   ;;  %s6565_s7 = inlined_call_operand.hbm [shape: f32[2048,128], index: 7, kind: input, shape index: {}]   ;;  %s6566_s8 = inlined_call_operand.hbm [shape: f32[1,128], index: 8, kind: input, shape index: {}]   ;;  %s6567_s9 = inlined_call_operand.hbm [shape: f32[8,128], index: 9, kind: output, shape index: {}]  }
   0x1   :  { %15 = vsyncpa [#allocation6], 0 }
   0x2   :  { %16 = vsyncpa [#allocation9], 0 }
   0x3   :  { %17 = vsyncpa [#allocation12], 0 }
   0x4   :  { %18 = vsyncpa [#allocation15], 0 }
   0x5   :  { %19 = vsyncpa [#allocation4], 0  ;;  %s6216_s30 = smov [#allocation5]   ;;  %s5984_s13 = scalar_lea.hbm %s6559_s1, 8192 }
   0x6   :  { %s35_s10 = sshll.u32 %s6216_s30, 4  ;;  %p5985_p0 = scmp.ne.s32.totalorder %s6559_s1, %s5984_s13  ;;  %s36_s10 = int_to_ptr.vmem [resolvable:$true] %s35_s10 }
   0x7   :  { %p5988_p1 = scmp.lt.u32.totalorder %s5984_s13, %s6559_s1 }
   0x9   :  { %p5990_p2 = pnand %p5988_p1, %p5985_p0 }
   0xb   :  { %5993 = shalt.err (!%p5990_p2)
}
   0xc   :  { %s5994_s18 = scalar_lea.vmem %s36_s10, 8192  ;;  %p5999_p4 = scmp.lt.s32.totalorder %s36_s10, %s36_s10 }
   0xd   :  { %p5995_p3 = scmp.ne.s32.totalorder %s36_s10, %s5994_s18  ;;  %p6000_p5 = scmp.lt.s32.totalorder %s5994_s18, %s5994_s18 }
   0xf   :  { %p6001_p6 = por %p6000_p5, %p5999_p4 }
  0x11   :  { %p6002_p7 = pnand %p6001_p6, %p5995_p3 }
  0x13   :  { %6005 = shalt.err (!%p6002_p7)
}
  0x14   :  { %s6217_s19 = smov 512   ;;  %s6218_s20 = smov 32  }
  0x15   :  { %41 = dma.hbm_to_vmem [thread:$0]  %s6559_s1, 8192, %s36_s10, [#allocation6], %s6217_s19, %s6217_s19, %s6218_s20  }
  0x16   :  { %s6219_s23 = smov [#allocation8]   ;;  %s6220_s25 = smov [#allocation11]  }
  0x17   :  { %s57_s24 = sshll.u32 %s6219_s23, 4  ;;  %s79_s26 = sshll.u32 %s6220_s25, 4  ;;  %s58_s24 = int_to_ptr.vmem [resolvable:$true] %s57_s24  ;;  %s80_s26 = int_to_ptr.vmem [resolvable:$true] %s79_s26 }
  0x18   :  { %s6006_s29 = scalar_lea.hbm %s6561_s3, 32768 }
  0x19   :  { %p6007_p8 = scmp.ne.s32.totalorder %s6561_s3, %s6006_s29  ;;  %p6010_p9 = scmp.lt.u32.totalorder %s6006_s29, %s6561_s3 }
  0x1b   :  { %p6012_p10 = pnand %p6010_p9, %p6007_p8 }
  0x1d   :  { %6015 = shalt.err (!%p6012_p10)
}
  0x1e   :  { %s6016_s1 = scalar_lea.vmem %s58_s24, 32768  ;;  %p6021_p12 = scmp.lt.s32.totalorder %s58_s24, %s58_s24 }
  0x1f   :  { %p6017_p11 = scmp.ne.s32.totalorder %s58_s24, %s6016_s1  ;;  %p6022_p13 = scmp.lt.s32.totalorder %s6016_s1, %s6016_s1 }
  0x21   :  { %p6023_p0 = por %p6022_p13, %p6021_p12 }
  0x23   :  { %p6024_p1 = pnand %p6023_p0, %p6017_p11 }
  0x25   :  { %6027 = shalt.err (!%p6024_p1)
}
  0x26   :  { %63 = dma.hbm_to_vmem [thread:$0]  %s6561_s3, 32768, %s58_s24, [#allocation9], %s6217_s19, %s6217_s19, %s6218_s20  }
  0x27   :  { %s6028_s17 = scalar_lea.hbm %s6563_s5, 131072 }
  0x28   :  { %p6029_p2 = scmp.ne.s32.totalorder %s6563_s5, %s6028_s17  ;;  %p6032_p3 = scmp.lt.u32.totalorder %s6028_s17, %s6563_s5 }
  0x2a   :  { %p6034_p4 = pnand %p6032_p3, %p6029_p2 }
  0x2c   :  { %6037 = shalt.err (!%p6034_p4)
}
  0x2d   :  { %s6038_s25 = scalar_lea.vmem %s80_s26, 131072  ;;  %p6043_p6 = scmp.lt.s32.totalorder %s80_s26, %s80_s26 }
  0x2e   :  { %p6039_p5 = scmp.ne.s32.totalorder %s80_s26, %s6038_s25  ;;  %p6044_p7 = scmp.lt.s32.totalorder %s6038_s25, %s6038_s25 }
  0x30   :  { %p6045_p8 = por %p6044_p7, %p6043_p6 }
  0x32   :  { %p6046_p9 = pnand %p6045_p8, %p6039_p5 }
  0x34   :  { %6049 = shalt.err (!%p6046_p9)
}
  0x35   :  { %s6221_s3 = smov 2048   ;;  %s6222_s19 = smov 128  }
  0x36   :  { %85 = dma.hbm_to_vmem [thread:$0]  %s6563_s5, 131072, %s80_s26, [#allocation12], %s6221_s3, %s6221_s3, %s6222_s19  }
  0x37   :  { %s6223_s27 = smov [#allocation14]   ;;  %s6050_s11 = scalar_lea.hbm %s6565_s7, 32768 }
  0x38   :  { %s101_s28 = sshll.u32 %s6223_s27, 4  ;;  %p6051_p10 = scmp.ne.s32.totalorder %s6565_s7, %s6050_s11  ;;  %s102_s28 = int_to_ptr.vmem [resolvable:$true] %s101_s28 }
  0x39   :  { %p6054_p11 = scmp.lt.u32.totalorder %s6050_s11, %s6565_s7 }
  0x3b   :  { %p6056_p12 = pnand %p6054_p11, %p6051_p10 }
  0x3d   :  { %6059 = shalt.err (!%p6056_p12)
}
  0x3e   :  { %s6060_s14 = scalar_lea.vmem %s102_s28, 32768  ;;  %p6065_p0 = scmp.lt.s32.totalorder %s102_s28, %s102_s28 }
  0x3f   :  { %p6061_p13 = scmp.ne.s32.totalorder %s102_s28, %s6060_s14  ;;  %p6066_p1 = scmp.lt.s32.totalorder %s6060_s14, %s6060_s14 }
  0x41   :  { %p6067_p2 = por %p6066_p1, %p6065_p0 }
  0x43   :  { %p6068_p3 = pnand %p6067_p2, %p6061_p13 }
  0x45   :  { %6071 = shalt.err (!%p6068_p3)
}
  0x46   :  { %s6224_s5 = smov 8   ;;  %s6225_s16 = smov [#allocation2]  }
  0x47   :  { %107 = dma.hbm_to_vmem [thread:$0]  %s6565_s7, 32768, %s102_s28, [#allocation15], %s6222_s19, %s6222_s19, %s6224_s5  }
  0x48   :  { %s26_s17 = sshll.u32 %s6225_s16, 4  ;;  %s6226_s18 = smov [#allocation7]   ;;  %s27_s17 = int_to_ptr.vmem [resolvable:$true] %s26_s17 }
  0x49   :  { %s48_s21 = sshll.u32 %s6226_s18, 4  ;;  %s6072_s25 = scalar_lea.hbm %s6558_s0, 128  ;;  %s49_s21 = int_to_ptr.vmem [resolvable:$true] %s48_s21 }
  0x4a   :  { %p6073_p4 = scmp.ne.s32.totalorder %s6558_s0, %s6072_s25  ;;  %p6076_p5 = scmp.lt.u32.totalorder %s6072_s25, %s6558_s0 }
  0x4c   :  { %p6078_p6 = pnand %p6076_p5, %p6073_p4 }
  0x4e   :  { %6081 = shalt.err (!%p6078_p6)
}
  0x4f   :  { %s6082_s7 = scalar_lea.vmem %s27_s17, 128  ;;  %p6087_p8 = scmp.lt.s32.totalorder %s27_s17, %s27_s17 }
  0x50   :  { %p6083_p7 = scmp.ne.s32.totalorder %s27_s17, %s6082_s7  ;;  %p6088_p9 = scmp.lt.s32.totalorder %s6082_s7, %s6082_s7 }
  0x52   :  { %p6089_p10 = por %p6088_p9, %p6087_p8 }
  0x54   :  { %p6090_p11 = pnand %p6089_p10, %p6083_p7 }
  0x56   :  { %6093 = shalt.err (!%p6090_p11)
}
  0x57   :  { %29 = dma.hbm_to_vmem [thread:$0]  %s6558_s0, 128, %s27_s17, [#allocation3]  }
  0x58   :  { %s6094_s11 = scalar_lea.hbm %s6560_s2, 64 }
  0x59   :  { %p6095_p12 = scmp.ne.s32.totalorder %s6560_s2, %s6094_s11  ;;  %p6098_p13 = scmp.lt.u32.totalorder %s6094_s11, %s6560_s2 }
  0x5b   :  { %p6100_p0 = pnand %p6098_p13, %p6095_p12 }
  0x5d   :  { %6103 = shalt.err (!%p6100_p0)
}
  0x5e   :  { %s6104_s14 = scalar_lea.vmem %s49_s21, 64  ;;  %p6109_p2 = scmp.lt.s32.totalorder %s49_s21, %s49_s21 }
  0x5f   :  { %p6105_p1 = scmp.ne.s32.totalorder %s49_s21, %s6104_s14  ;;  %p6110_p3 = scmp.lt.s32.totalorder %s6104_s14, %s6104_s14 }
  0x61   :  { %p6111_p4 = por %p6110_p3, %p6109_p2 }
  0x63   :  { %p6112_p5 = pnand %p6111_p4, %p6105_p1 }
  0x65   :  { %6115 = shalt.err (!%p6112_p5)
}
  0x66   :  { %51 = dma.hbm_to_vmem [thread:$0]  %s6560_s2, 64, %s49_s21, [#allocation6]  }
  0x67   :  { %s6227_s26 = smov [#allocation10]   ;;  %s6228_s16 = smov [#allocation13]  }
  0x68   :  { %s70_s15 = sshll.u32 %s6227_s26, 4  ;;  %s92_s17 = sshll.u32 %s6228_s16, 4  ;;  %s71_s15 = int_to_ptr.vmem [resolvable:$true] %s70_s15  ;;  %s93_s17 = int_to_ptr.vmem [resolvable:$true] %s92_s17 }
  0x69   :  { %s6116_s23 = scalar_lea.hbm %s6562_s4, 64 }
  0x6a   :  { %p6117_p6 = scmp.ne.s32.totalorder %s6562_s4, %s6116_s23  ;;  %p6120_p7 = scmp.lt.u32.totalorder %s6116_s23, %s6562_s4 }
  0x6c   :  { %p6122_p8 = pnand %p6120_p7, %p6117_p6 }
  0x6e   :  { %6125 = shalt.err (!%p6122_p8)
}
  0x6f   :  { %s6126_s2 = scalar_lea.vmem %s71_s15, 64  ;;  %p6131_p10 = scmp.lt.s32.totalorder %s71_s15, %s71_s15 }
  0x70   :  { %p6127_p9 = scmp.ne.s32.totalorder %s71_s15, %s6126_s2  ;;  %p6132_p11 = scmp.lt.s32.totalorder %s6126_s2, %s6126_s2 }
  0x72   :  { %p6133_p12 = por %p6132_p11, %p6131_p10 }
  0x74   :  { %p6134_p13 = pnand %p6133_p12, %p6127_p9 }
  0x76   :  { %6137 = shalt.err (!%p6134_p13)
}
  0x77   :  { %73 = dma.hbm_to_vmem [thread:$0]  %s6562_s4, 64, %s71_s15, [#allocation9]  }
  0x78   :  { %s6138_s28 = scalar_lea.hbm %s6564_s6, 256 }
  0x79   :  { %p6139_p0 = scmp.ne.s32.totalorder %s6564_s6, %s6138_s28  ;;  %p6142_p1 = scmp.lt.u32.totalorder %s6138_s28, %s6564_s6 }
  0x7b   :  { %p6144_p2 = pnand %p6142_p1, %p6139_p0 }
  0x7d   :  { %6147 = shalt.err (!%p6144_p2)
}
  0x7e   :  { %s6148_s13 = scalar_lea.vmem %s93_s17, 256  ;;  %p6153_p4 = scmp.lt.s32.totalorder %s93_s17, %s93_s17 }
  0x7f   :  { %p6149_p3 = scmp.ne.s32.totalorder %s93_s17, %s6148_s13  ;;  %p6154_p5 = scmp.lt.s32.totalorder %s6148_s13, %s6148_s13 }
  0x81   :  { %p6155_p6 = por %p6154_p5, %p6153_p4 }
  0x83   :  { %p6156_p7 = pnand %p6155_p6, %p6149_p3 }
  0x85   :  { %6159 = shalt.err (!%p6156_p7)
}
  0x86   :  { %95 = dma.hbm_to_vmem [thread:$0]  %s6564_s6, 256, %s93_s17, [#allocation12]  }
  0x87   :  { %s6229_s10 = smov [#allocation16]   ;;  %s6160_s26 = scalar_lea.hbm %s6566_s8, 16 }
  0x88   :  { %s114_s14 = sshll.u32 %s6229_s10, 4  ;;  %p6161_p8 = scmp.ne.s32.totalorder %s6566_s8, %s6160_s26  ;;  %s115_s14 = int_to_ptr.vmem [resolvable:$true] %s114_s14 }
  0x89   :  { %p6164_p9 = scmp.lt.u32.totalorder %s6160_s26, %s6566_s8 }
  0x8b   :  { %p6166_p10 = pnand %p6164_p9, %p6161_p8 }
  0x8d   :  { %6169 = shalt.err (!%p6166_p10)
}
  0x8e   :  { %s6170_s23 = scalar_lea.vmem %s115_s14, 16  ;;  %s6174_s6 = scalar_lea.vmem %s115_s14, 32 }
  0x8f   :  { %p6171_p11 = scmp.ne.s32.totalorder %s115_s14, %s6170_s23  ;;  %p6175_p12 = scmp.lt.s32.totalorder %s115_s14, %s115_s14 }
  0x90   :  { %p6176_p13 = scmp.lt.s32.totalorder %s6174_s6, %s6170_s23 }
  0x92   :  { %p6177_p0 = por %p6176_p13, %p6175_p12 }
  0x94   :  { %p6178_p1 = pnand %p6177_p0, %p6171_p11 }
  0x96   :  { %6181 = shalt.err (!%p6178_p1)
}
  0x97   :  { %117 = dma.hbm_to_vmem [thread:$0]  %s6566_s8, 16, %s115_s14, [#allocation15]  }
  0x98   :  { %6204 = dma.done.wait [#allocation3], 128  }
  0x99   :  { %6205 = vsyncadd [#allocation3], 4294967168 }
  0x9a   :  { %6206 = dma.done.wait [#allocation6], 8256  }
  0x9b   :  { %6207 = vsyncadd [#allocation6], 4294959040 }
  0x9c   :  { %6208 = dma.done.wait [#allocation9], 32832  }
  0x9d   :  { %6209 = vsyncadd [#allocation9], 4294934464 }
  0x9e   :  { %6210 = dma.done.wait [#allocation12], 131328  }
  0x9f   :  { %6211 = vsyncadd [#allocation12], 4294835968 }
  0xa0   :  { %6212 = dma.done.wait [#allocation15], 32784  }
  0xa1   :  { %6213 = vsyncadd [#allocation15], 4294934512  ;;  %v6230_v0 = vmov 0.0   ;;  %v147_v1 = vld [vmem:[#allocation5 + $0x8] sm:$0xff]  ;;  %v146_v3 = vld [vmem:[#allocation5] sm:$0xff]  ;;  %s6231_s8 = smov [#allocation17]  }
  0xa2   :  { %296 = vmatprep.mubr.f32.mxu0 %v6230_v0  ;;  %367 = vmatprep.mubr.f32.mxu1 %v6230_v0  ;;  %v151_v2 = vld [vmem:[#allocation5 + $0x28] sm:$0xff]  ;;  %v150_v5 = vld [vmem:[#allocation5 + $0x20] sm:$0xff]  ;;  %v149_v28 = vld [vmem:[#allocation5 + $0x18] sm:$0xff]  ;;  %s4034_s3 = sshll.u32 %s6231_s8, 4  ;;  %s4035_s3 = int_to_ptr.vmem [resolvable:$true] %s4034_s3 }
  0xa3   :  { %v4328_v4 = vpack.c.bf16 %v151_v2, %v147_v1  ;;  %v155_v6 = vld [vmem:[#allocation5 + $0x48] sm:$0xff]  ;;  %v4330_v8 = vpack.c.bf16 %v150_v5, %v146_v3  ;;  %v154_v10 = vld [vmem:[#allocation5 + $0x40] sm:$0xff]  ;;  %v153_v29 = vld [vmem:[#allocation5 + $0x38] sm:$0xff]  ;;  %s6182_s20 = scalar_lea.vmem %s4035_s3, 128  ;;  %p6187_p3 = scmp.lt.s32.totalorder %s4035_s3, %s4035_s3 }
  0xa4   :  { %v159_v7 = vld [vmem:[#allocation5 + $0x68] sm:$0xff]  ;;  %v158_v11 = vld [vmem:[#allocation5 + $0x60] sm:$0xff]  ;;  %v148_v30 = vld [vmem:[#allocation5 + $0x10] sm:$0xff]  ;;  %v4360_v32 = vpack.c.bf16 %v153_v29, %v149_v28  ;;  %p6183_p2 = scmp.ne.s32.totalorder %s4035_s3, %s6182_s20  ;;  %p6188_p4 = scmp.lt.s32.totalorder %s6182_s20, %s6182_s20 }
  0xa5   :  { %v4332_v9 = vpack.c.bf16 %v159_v7, %v155_v6  ;;  %v163_v12 = vld [vmem:[#allocation5 + $0x88] sm:$0xff]  ;;  %4329 = vmatprep.subr.bf16.mxu0 %v4328_v4  ;;  %v4334_v14 = vpack.c.bf16 %v158_v11, %v154_v10  ;;  %v162_v16 = vld [vmem:[#allocation5 + $0x80] sm:$0xff]  ;;  %v152_v33 = vld [vmem:[#allocation5 + $0x30] sm:$0xff] }
  0xa6   :  { %v167_v13 = vld [vmem:[#allocation5 + $0xa8] sm:$0xff]  ;;  %4331 = vmatpush1.bf16.msra.mxu0 %v4330_v8  ;;  %v166_v17 = vld [vmem:[#allocation5 + $0xa0] sm:$0xff]  ;;  %v157_v34 = vld [vmem:[#allocation5 + $0x58] sm:$0xff]  ;;  %v4362_v37 = vpack.c.bf16 %v152_v33, %v148_v30  ;;  %4361 = vmatprep.subr.bf16.mxu1 %v4360_v32  ;;  %p6189_p5 = por %p6188_p4, %p6187_p3 }
  0xa7   :  { %4333 = vmatprep.subr.bf16.mxu0 %v4332_v9  ;;  %v4336_v15 = vpack.c.bf16 %v167_v13, %v163_v12  ;;  %v171_v18 = vld [vmem:[#allocation5 + $0xc8] sm:$0xff]  ;;  %v4338_v20 = vpack.c.bf16 %v166_v17, %v162_v16  ;;  %v170_v22 = vld [vmem:[#allocation5 + $0xc0] sm:$0xff]  ;;  %v161_v35 = vld [vmem:[#allocation5 + $0x78] sm:$0xff] }
  0xa8   :  { %v175_v19 = vld [vmem:[#allocation5 + $0xe8] sm:$0xff]  ;;  %v174_v23 = vld [vmem:[#allocation5 + $0xe0] sm:$0xff]  ;;  %v4364_v38 = vpack.c.bf16 %v161_v35, %v157_v34  ;;  %v156_v39 = vld [vmem:[#allocation5 + $0x50] sm:$0xff]  ;;  %4363 = vmatpush1.bf16.msra.mxu1 %v4362_v37  ;;  %p6190_p6 = pnand %p6189_p5, %p6183_p2 }
  0xa9   :  { %v4340_v21 = vpack.c.bf16 %v175_v19, %v171_v18  ;;  %v179_v24 = vld [vmem:[#allocation5 + $0x108] sm:$0xff]  ;;  %v178_v26 = vld [vmem:[#allocation5 + $0x100] sm:$0xff]  ;;  %v4342_v31 = vpack.c.bf16 %v174_v23, %v170_v22  ;;  %v160_v40 = vld [vmem:[#allocation5 + $0x70] sm:$0xff] }
  0xaa   :  { %4335 = vmatpush1.bf16.msra.mxu0 %v4334_v14  ;;  %v183_v25 = vld [vmem:[#allocation5 + $0x128] sm:$0xff]  ;;  %v182_v27 = vld [vmem:[#allocation5 + $0x120] sm:$0xff]  ;;  %v165_v41 = vld [vmem:[#allocation5 + $0x98] sm:$0xff]  ;;  %v4366_v45 = vpack.c.bf16 %v160_v40, %v156_v39  ;;  %4365 = vmatprep.subr.bf16.mxu1 %v4364_v38 }
  0xab   :  { %4337 = vmatprep.subr.bf16.mxu0 %v4336_v15  ;;  %v4344_v36 = vpack.c.bf16 %v183_v25, %v179_v24  ;;  %v187_v42 = vld [vmem:[#allocation5 + $0x148] sm:$0xff]  ;;  %v169_v44 = vld [vmem:[#allocation5 + $0xb8] sm:$0xff]  ;;  %v4346_v46 = vpack.c.bf16 %v182_v27, %v178_v26  ;;  %v186_v47 = vld [vmem:[#allocation5 + $0x140] sm:$0xff] }
  0xac   :  { %v191_v43 = vld [vmem:[#allocation5 + $0x168] sm:$0xff]  ;;  %v4368_v48 = vpack.c.bf16 %v169_v44, %v165_v41  ;;  %v164_v49 = vld [vmem:[#allocation5 + $0x90] sm:$0xff]  ;;  %v190_v52 = vld [vmem:[#allocation5 + $0x160] sm:$0xff]  ;;  %4367 = vmatpush1.bf16.msra.mxu1 %v4366_v45 }
  0xad   :  { %v168_v50 = vld [vmem:[#allocation5 + $0xb0] sm:$0xff]  ;;  %v4348_v51 = vpack.c.bf16 %v191_v43, %v187_v42  ;;  %v173_v53 = vld [vmem:[#allocation5 + $0xd8] sm:$0xff]  ;;  %v195_v55 = vld [vmem:[#allocation5 + $0x188] sm:$0xff]  ;;  %v4350_v58 = vpack.c.bf16 %v190_v52, %v186_v47 }
  0xae   :  { %4339 = vmatpush1.bf16.msra.mxu0 %v4338_v20  ;;  %v177_v54 = vld [vmem:[#allocation5 + $0xf8] sm:$0xff]  ;;  %v199_v56 = vld [vmem:[#allocation5 + $0x1a8] sm:$0xff]  ;;  %v4370_v57 = vpack.c.bf16 %v168_v50, %v164_v49  ;;  %v194_v59 = vld [vmem:[#allocation5 + $0x180] sm:$0xff]  ;;  %4369 = vmatprep.subr.bf16.mxu1 %v4368_v48 }
  0xaf   :  { %4341 = vmatprep.subr.bf16.mxu0 %v4340_v21  ;;  %v4372_v60 = vpack.c.bf16 %v177_v54, %v173_v53  ;;  %v172_v61 = vld [vmem:[#allocation5 + $0xd0] sm:$0xff]  ;;  %v4352_v63 = vpack.c.bf16 %v199_v56, %v195_v55  ;;  %v198_v0 = vld [vmem:[#allocation5 + $0x1a0] sm:$0xff]  ;;  %v181_v1 = vld [vmem:[#allocation5 + $0x118] sm:$0xff] }
  0xb0   :  { %v176_v62 = vld [vmem:[#allocation5 + $0xf0] sm:$0xff]  ;;  %v185_v2 = vld [vmem:[#allocation5 + $0x138] sm:$0xff]  ;;  %v203_v3 = vld [vmem:[#allocation5 + $0x1c8] sm:$0xff]  ;;  %4371 = vmatpush1.bf16.msra.mxu1 %v4370_v57  ;;  %v4354_v6 = vpack.c.bf16 %v198_v0, %v194_v59 }
  0xb1   :  { %v207_v4 = vld [vmem:[#allocation5 + $0x1e8] sm:$0xff]  ;;  %v4374_v5 = vpack.c.bf16 %v176_v62, %v172_v61  ;;  %v202_v7 = vld [vmem:[#allocation5 + $0x1c0] sm:$0xff]  ;;  %4373 = vmatprep.subr.bf16.mxu1 %v4372_v60  ;;  %v4376_v8 = vpack.c.bf16 %v185_v2, %v181_v1  ;;  %v180_v9 = vld [vmem:[#allocation5 + $0x110] sm:$0xff] }
  0xb2   :  { %4343 = vmatpush1.bf16.msra.mxu0 %v4342_v31  ;;  %v184_v10 = vld [vmem:[#allocation5 + $0x130] sm:$0xff]  ;;  %v4356_v11 = vpack.c.bf16 %v207_v4, %v203_v3  ;;  %v206_v12 = vld [vmem:[#allocation5 + $0x1e0] sm:$0xff]  ;;  %v189_v13 = vld [vmem:[#allocation5 + $0x158] sm:$0xff] }
  0xb3   :  { %4345 = vmatprep.subr.bf16.mxu0 %v4344_v36  ;;  %v193_v14 = vld [vmem:[#allocation5 + $0x178] sm:$0xff]  ;;  %v379_v15 = vld [vmem:[#allocation8 + $0x8] sm:$0xff]  ;;  %v4378_v17 = vpack.c.bf16 %v184_v10, %v180_v9  ;;  %v4358_v18 = vpack.c.bf16 %v206_v12, %v202_v7  ;;  %v378_v25 = vld [vmem:[#allocation8] sm:$0xff] }
  0xb4   :  { %v383_v16 = vld [vmem:[#allocation8 + $0x28] sm:$0xff]  ;;  %4375 = vmatpush1.bf16.msra.mxu1 %v4374_v5  ;;  %v4380_v19 = vpack.c.bf16 %v193_v14, %v189_v13  ;;  %v197_v22 = vld [vmem:[#allocation5 + $0x198] sm:$0xff]  ;;  %v382_v26 = vld [vmem:[#allocation8 + $0x20] sm:$0xff] }
  0xb5   :  { %4377 = vmatprep.subr.bf16.mxu1 %v4376_v8  ;;  %v188_v20 = vld [vmem:[#allocation5 + $0x150] sm:$0xff]  ;;  %v201_v23 = vld [vmem:[#allocation5 + $0x1b8] sm:$0xff]  ;;  %v4392_v24 = vpack.c.bf16 %v383_v16, %v379_v15  ;;  %v4394_v35 = vpack.c.bf16 %v382_v26, %v378_v25  ;;  %v386_v38 = vld [vmem:[#allocation8 + $0x40] sm:$0xff] }
  0xb6   :  { %4347 = vmatpush1.bf16.msra.mxu0 %v4346_v46  ;;  %v192_v21 = vld [vmem:[#allocation5 + $0x170] sm:$0xff]  ;;  %v6390_v29 = vld [vmem:[#allocation2] sm:$0xff]  ;;  %v4384_v31 = vpack.c.bf16 %v201_v23, %v197_v22  ;;  %v390_v39 = vld [vmem:[#allocation8 + $0x60] sm:$0xff] }
  0xb7   :  { %4349 = vmatprep.subr.bf16.mxu0 %v4348_v51  ;;  %v387_v27 = vld [vmem:[#allocation8 + $0x48] sm:$0xff]  ;;  %v4382_v30 = vpack.c.bf16 %v192_v21, %v188_v20  ;;  %v205_v34 = vld [vmem:[#allocation5 + $0x1d8] sm:$0xff]  ;;  %v4398_v47 = vpack.c.bf16 %v390_v39, %v386_v38  ;;  %v394_v50 = vld [vmem:[#allocation8 + $0x80] sm:$0xff] }
  0xb8   :  { %v391_v28 = vld [vmem:[#allocation8 + $0x68] sm:$0xff]  ;;  %4379 = vmatpush1.bf16.msra.mxu1 %v4378_v17  ;;  %v209_v36 = vld [vmem:[#allocation5 + $0x1f8] sm:$0xff]  ;;  %v398_v51 = vld [vmem:[#allocation8 + $0xa0] sm:$0xff] }
  0xb9   :  { %4381 = vmatprep.subr.bf16.mxu1 %v4380_v19  ;;  %v196_v32 = vld [vmem:[#allocation5 + $0x190] sm:$0xff]  ;;  %v4396_v37 = vpack.c.bf16 %v391_v28, %v387_v27  ;;  %v4388_v43 = vpack.c.bf16 %v209_v36, %v205_v34  ;;  %v381_v46 = vld [vmem:[#allocation8 + $0x18] sm:$0xff]  ;;  %v4402_v59 = vpack.c.bf16 %v398_v51, %v394_v50  ;;  %v402_v62 = vld [vmem:[#allocation8 + $0xc0] sm:$0xff] }
  0xba   :  { %4351 = vmatpush1.bf16.msra.mxu0 %v4350_v58  ;;  %v200_v33 = vld [vmem:[#allocation5 + $0x1b0] sm:$0xff]  ;;  %v385_v48 = vld [vmem:[#allocation8 + $0x38] sm:$0xff]  ;;  %v410_v10 = vld [vmem:[#allocation8 + $0x100] sm:$0xff] }
  0xbb   :  { %4353 = vmatprep.subr.bf16.mxu0 %v4352_v63  ;;  %v395_v40 = vld [vmem:[#allocation8 + $0x88] sm:$0xff]  ;;  %v4386_v42 = vpack.c.bf16 %v200_v33, %v196_v32  ;;  %v4520_v55 = vpack.c.bf16 %v385_v48, %v381_v46  ;;  %v380_v56 = vld [vmem:[#allocation8 + $0x10] sm:$0xff]  ;;  %v389_v58 = vld [vmem:[#allocation8 + $0x58] sm:$0xff] }
  0xbc   :  { %v399_v41 = vld [vmem:[#allocation8 + $0xa8] sm:$0xff]  ;;  %4383 = vmatpush1.bf16.msra.mxu1 %v4382_v30  ;;  %v384_v57 = vld [vmem:[#allocation8 + $0x30] sm:$0xff]  ;;  %v393_v60 = vld [vmem:[#allocation8 + $0x78] sm:$0xff] }
  0xbd   :  { %4385 = vmatprep.subr.bf16.mxu1 %v4384_v31  ;;  %v204_v44 = vld [vmem:[#allocation5 + $0x1d0] sm:$0xff]  ;;  %v4400_v49 = vpack.c.bf16 %v399_v41, %v395_v40  ;;  %v406_v63 = vld [vmem:[#allocation8 + $0xe0] sm:$0xff]  ;;  %v4522_v2 = vpack.c.bf16 %v384_v57, %v380_v56  ;;  %v4524_v3 = vpack.c.bf16 %v393_v60, %v389_v58  ;;  %v401_v8 = vld [vmem:[#allocation8 + $0xb8] sm:$0xff] }
  0xbe   :  { %4355 = vmatpush1.bf16.msra.mxu0 %v4354_v6  ;;  %v208_v45 = vld [vmem:[#allocation5 + $0x1f0] sm:$0xff]  ;;  %v397_v6 = vld [vmem:[#allocation8 + $0x98] sm:$0xff]  ;;  %v4406_v7 = vpack.c.bf16 %v406_v63, %v402_v62  ;;  %v418_v22 = vld [vmem:[#allocation8 + $0x140] sm:$0xff] }
  0xbf   :  { %4357 = vmatprep.subr.bf16.mxu0 %v4356_v11  ;;  %v403_v52 = vld [vmem:[#allocation8 + $0xc8] sm:$0xff]  ;;  %v4390_v54 = vpack.c.bf16 %v208_v45, %v204_v44  ;;  %v388_v4 = vld [vmem:[#allocation8 + $0x50] sm:$0xff]  ;;  %v414_v11 = vld [vmem:[#allocation8 + $0x120] sm:$0xff]  ;;  %v4528_v15 = vpack.c.bf16 %v401_v8, %v397_v6 }
  0xc0   :  { %v407_v53 = vld [vmem:[#allocation8 + $0xe8] sm:$0xff]  ;;  %4387 = vmatpush1.bf16.msra.mxu1 %v4386_v42  ;;  %v392_v5 = vld [vmem:[#allocation8 + $0x70] sm:$0xff]  ;;  %v4410_v19 = vpack.c.bf16 %v414_v11, %v410_v10  ;;  %v409_v20 = vld [vmem:[#allocation8 + $0xf8] sm:$0xff] }
  0xc1   :  { %4389 = vmatprep.subr.bf16.mxu1 %v4388_v43  ;;  %v4404_v61 = vpack.c.bf16 %v407_v53, %v403_v52  ;;  %v411_v0 = vld [vmem:[#allocation8 + $0x108] sm:$0xff]  ;;  %v4526_v14 = vpack.c.bf16 %v392_v5, %v388_v4  ;;  %v396_v16 = vld [vmem:[#allocation8 + $0x90] sm:$0xff]  ;;  %v422_v23 = vld [vmem:[#allocation8 + $0x160] sm:$0xff] }
  0xc2   :  { %4359 = vmatpush1.bf16.msra.mxu0 %v4358_v18  ;;  %v415_v1 = vld [vmem:[#allocation8 + $0x128] sm:$0xff]  ;;  %v400_v17 = vld [vmem:[#allocation8 + $0xb0] sm:$0xff]  ;;  %v405_v18 = vld [vmem:[#allocation8 + $0xd8] sm:$0xff]  ;;  %v4414_v31 = vpack.c.bf16 %v422_v23, %v418_v22 }
  0xc3   :  { %4393 = vmatprep.subr.bf16.mxu0 %v4392_v24  ;;  %v4408_v9 = vpack.c.bf16 %v415_v1, %v411_v0  ;;  %v419_v12 = vld [vmem:[#allocation8 + $0x148] sm:$0xff]  ;;  %v4530_v26 = vpack.c.bf16 %v400_v17, %v396_v16  ;;  %v4532_v27 = vpack.c.bf16 %v409_v20, %v405_v18  ;;  %v404_v28 = vld [vmem:[#allocation8 + $0xd0] sm:$0xff]  ;;  %v413_v30 = vld [vmem:[#allocation8 + $0x118] sm:$0xff] }
  0xc4   :  { %4391 = vmatpush1.bf16.msra.mxu1 %v4390_v54  ;;  %v423_v13 = vld [vmem:[#allocation8 + $0x168] sm:$0xff]  ;;  %v417_v32 = vld [vmem:[#allocation8 + $0x138] sm:$0xff]  ;;  %v426_v34 = vld [vmem:[#allocation8 + $0x180] sm:$0xff] }
  0xc5   :  { %297 = vmatmul.mubr.f32.vlgmr.msra.gmra.mrb[0].mxu0 %v6390_v29  ;;  %4521 = vmatprep.subr.bf16.mxu1 %v4520_v55  ;;  %v4412_v21 = vpack.c.bf16 %v423_v13, %v419_v12  ;;  %v427_v24 = vld [vmem:[#allocation8 + $0x188] sm:$0xff]  ;;  %v4536_v39 = vpack.c.bf16 %v417_v32, %v413_v30  ;;  %v412_v40 = vld [vmem:[#allocation8 + $0x110] sm:$0xff]  ;;  %v421_v42 = vld [vmem:[#allocation8 + $0x158] sm:$0xff] }
  0xc6   :  { %4395 = vmatpush1.bf16.msra.mxu0 %v4394_v35  ;;  %v431_v25 = vld [vmem:[#allocation8 + $0x1a8] sm:$0xff]  ;;  %v430_v35 = vld [vmem:[#allocation8 + $0x1a0] sm:$0xff]  ;;  %v416_v41 = vld [vmem:[#allocation8 + $0x130] sm:$0xff] }
  0xc7   :  { %4397 = vmatprep.subr.bf16.mxu0 %v4396_v37  ;;  %368 = vmatmul.mubr.f32.vlgmr.msra.gmra.mrb[0].mxu1 %v6390_v29  ;;  %v408_v29 = vld [vmem:[#allocation8 + $0xf0] sm:$0xff]  ;;  %v4416_v33 = vpack.c.bf16 %v431_v25, %v427_v24  ;;  %v435_v36 = vld [vmem:[#allocation8 + $0x1c8] sm:$0xff]  ;;  %v4418_v43 = vpack.c.bf16 %v430_v35, %v426_v34  ;;  %v425_v44 = vld [vmem:[#allocation8 + $0x178] sm:$0xff]  ;;  %v4538_v50 = vpack.c.bf16 %v416_v41, %v412_v40 }
  0xc8   :  { %4523 = vmatpush1.bf16.msra.mxu1 %v4522_v2  ;;  %v439_v37 = vld [vmem:[#allocation8 + $0x1e8] sm:$0xff]  ;;  %v4534_v38 = vpack.c.bf16 %v408_v29, %v404_v28  ;;  %v434_v46 = vld [vmem:[#allocation8 + $0x1c0] sm:$0xff]  ;;  %v4540_v51 = vpack.c.bf16 %v425_v44, %v421_v42  ;;  %v420_v52 = vld [vmem:[#allocation8 + $0x150] sm:$0xff] }
  0xc9   :  { %4525 = vmatprep.subr.bf16.mxu1 %v4524_v3  ;;  %v4420_v45 = vpack.c.bf16 %v439_v37, %v435_v36  ;;  %v443_v48 = vld [vmem:[#allocation8 + $0x208] sm:$0xff]  ;;  %v424_v53 = vld [vmem:[#allocation8 + $0x170] sm:$0xff]  ;;  %v429_v54 = vld [vmem:[#allocation8 + $0x198] sm:$0xff] }
  0xca   :  { %4399 = vmatpush1.bf16.msra.mxu0 %v4398_v47  ;;  %v438_v47 = vld [vmem:[#allocation8 + $0x1e0] sm:$0xff]  ;;  %v433_v56 = vld [vmem:[#allocation8 + $0x1b8] sm:$0xff]  ;;  %v451_v60 = vld [vmem:[#allocation8 + $0x248] sm:$0xff]  ;;  %v4542_v62 = vpack.c.bf16 %v424_v53, %v420_v52 }
  0xcb   :  { %4401 = vmatprep.subr.bf16.mxu0 %v4400_v49  ;;  %v447_v49 = vld [vmem:[#allocation8 + $0x228] sm:$0xff]  ;;  %v4422_v55 = vpack.c.bf16 %v438_v47, %v434_v46  ;;  %v442_v58 = vld [vmem:[#allocation8 + $0x200] sm:$0xff]  ;;  %v4544_v63 = vpack.c.bf16 %v433_v56, %v429_v54  ;;  %v428_v0 = vld [vmem:[#allocation8 + $0x190] sm:$0xff] }
  0xcc   :  { %4527 = vmatpush1.bf16.msra.mxu1 %v4526_v14  ;;  %v4424_v57 = vpack.c.bf16 %v447_v49, %v443_v48  ;;  %v432_v1 = vld [vmem:[#allocation8 + $0x1b0] sm:$0xff]  ;;  %v437_v2 = vld [vmem:[#allocation8 + $0x1d8] sm:$0xff]  ;;  %v450_v6 = vld [vmem:[#allocation8 + $0x240] sm:$0xff] }
  0xcd   :  { %4529 = vmatprep.subr.bf16.mxu1 %v4528_v15  ;;  %v441_v4 = vld [vmem:[#allocation8 + $0x1f8] sm:$0xff]  ;;  %v459_v8 = vld [vmem:[#allocation8 + $0x288] sm:$0xff]  ;;  %v4546_v10 = vpack.c.bf16 %v432_v1, %v428_v0  ;;  %v436_v12 = vld [vmem:[#allocation8 + $0x1d0] sm:$0xff] }
  0xce   :  { %4403 = vmatpush1.bf16.msra.mxu0 %v4402_v59  ;;  %v446_v59 = vld [vmem:[#allocation8 + $0x220] sm:$0xff]  ;;  %v4548_v11 = vpack.c.bf16 %v441_v4, %v437_v2  ;;  %v440_v13 = vld [vmem:[#allocation8 + $0x1f0] sm:$0xff]  ;;  %v445_v14 = vld [vmem:[#allocation8 + $0x218] sm:$0xff] }
  0xcf   :  { %4405 = vmatprep.subr.bf16.mxu0 %v4404_v61  ;;  %v455_v61 = vld [vmem:[#allocation8 + $0x268] sm:$0xff]  ;;  %v4426_v3 = vpack.c.bf16 %v446_v59, %v442_v58  ;;  %v449_v16 = vld [vmem:[#allocation8 + $0x238] sm:$0xff]  ;;  %v458_v18 = vld [vmem:[#allocation8 + $0x280] sm:$0xff]  ;;  %v4550_v22 = vpack.c.bf16 %v440_v13, %v436_v12 }
  0xd0   :  { %4531 = vmatpush1.bf16.msra.mxu1 %v4530_v26  ;;  %v4428_v5 = vpack.c.bf16 %v455_v61, %v451_v60  ;;  %v467_v20 = vld [vmem:[#allocation8 + $0x2c8] sm:$0xff]  ;;  %v4552_v23 = vpack.c.bf16 %v449_v16, %v445_v14  ;;  %v444_v24 = vld [vmem:[#allocation8 + $0x210] sm:$0xff]  ;;  %v453_v26 = vld [vmem:[#allocation8 + $0x258] sm:$0xff] }
  0xd1   :  { %4533 = vmatprep.subr.bf16.mxu1 %v4532_v27  ;;  %v448_v25 = vld [vmem:[#allocation8 + $0x230] sm:$0xff]  ;;  %v457_v28 = vld [vmem:[#allocation8 + $0x278] sm:$0xff]  ;;  %v466_v30 = vld [vmem:[#allocation8 + $0x2c0] sm:$0xff] }
  0xd2   :  { %4407 = vmatpush1.bf16.msra.mxu0 %v4406_v7  ;;  %v454_v7 = vld [vmem:[#allocation8 + $0x260] sm:$0xff]  ;;  %v475_v32 = vld [vmem:[#allocation8 + $0x308] sm:$0xff]  ;;  %v4554_v34 = vpack.c.bf16 %v448_v25, %v444_v24  ;;  %v4556_v35 = vpack.c.bf16 %v457_v28, %v453_v26  ;;  %v452_v36 = vld [vmem:[#allocation8 + $0x250] sm:$0xff] }
  0xd3   :  { %4409 = vmatprep.subr.bf16.mxu0 %v4408_v9  ;;  %v463_v9 = vld [vmem:[#allocation8 + $0x2a8] sm:$0xff]  ;;  %v4430_v15 = vpack.c.bf16 %v454_v7, %v450_v6  ;;  %v456_v37 = vld [vmem:[#allocation8 + $0x270] sm:$0xff]  ;;  %v465_v40 = vld [vmem:[#allocation8 + $0x2b8] sm:$0xff] }
  0xd4   :  { %4535 = vmatpush1.bf16.msra.mxu1 %v4534_v38  ;;  %v4432_v17 = vpack.c.bf16 %v463_v9, %v459_v8  ;;  %v461_v38 = vld [vmem:[#allocation8 + $0x298] sm:$0xff]  ;;  %v474_v42 = vld [vmem:[#allocation8 + $0x300] sm:$0xff]  ;;  %v483_v44 = vld [vmem:[#allocation8 + $0x348] sm:$0xff]  ;;  %v4558_v46 = vpack.c.bf16 %v456_v37, %v452_v36 }
  0xd5   :  { %4537 = vmatprep.subr.bf16.mxu1 %v4536_v39  ;;  %v4560_v47 = vpack.c.bf16 %v465_v40, %v461_v38  ;;  %v460_v48 = vld [vmem:[#allocation8 + $0x290] sm:$0xff]  ;;  %v473_v52 = vld [vmem:[#allocation8 + $0x2f8] sm:$0xff]  ;;  %v482_v54 = vld [vmem:[#allocation8 + $0x340] sm:$0xff]  ;;  %v212_v40 = vlaneseq }
  0xd6   :  { %4411 = vmatpush1.bf16.msra.mxu0 %v4410_v19  ;;  %v462_v19 = vld [vmem:[#allocation8 + $0x2a0] sm:$0xff]  ;;  %v464_v49 = vld [vmem:[#allocation8 + $0x2b0] sm:$0xff]  ;;  %v491_v56 = vld [vmem:[#allocation8 + $0x388] sm:$0xff] }
  0xd7   :  { %4413 = vmatprep.subr.bf16.mxu0 %v4412_v21  ;;  %v471_v21 = vld [vmem:[#allocation8 + $0x2e8] sm:$0xff]  ;;  %v4434_v27 = vpack.c.bf16 %v462_v19, %v458_v18  ;;  %v4562_v58 = vpack.c.bf16 %v464_v49, %v460_v48  ;;  %v468_v60 = vld [vmem:[#allocation8 + $0x2d0] sm:$0xff]  ;;  %v481_v0 = vld [vmem:[#allocation8 + $0x338] sm:$0xff] }
  0xd8   :  { %4539 = vmatpush1.bf16.msra.mxu1 %v4538_v50  ;;  %v4436_v29 = vpack.c.bf16 %v471_v21, %v467_v20  ;;  %v469_v50 = vld [vmem:[#allocation8 + $0x2d8] sm:$0xff]  ;;  %v472_v61 = vld [vmem:[#allocation8 + $0x2f0] sm:$0xff]  ;;  %v490_v2 = vld [vmem:[#allocation8 + $0x380] sm:$0xff] }
  0xd9   :  { %4541 = vmatprep.subr.bf16.mxu1 %v4540_v51  ;;  %v4564_v59 = vpack.c.bf16 %v473_v52, %v469_v50  ;;  %v4566_v4 = vpack.c.bf16 %v472_v61, %v468_v60  ;;  %v476_v6 = vld [vmem:[#allocation8 + $0x310] sm:$0xff]  ;;  %v485_v9 = vld [vmem:[#allocation8 + $0x358] sm:$0xff]  ;;  %v502_v28 = vld [vmem:[#allocation8 + $0x3e0] sm:$0xff] }
  0xda   :  { %4415 = vmatpush1.bf16.msra.mxu0 %v4414_v31  ;;  %v470_v31 = vld [vmem:[#allocation8 + $0x2e0] sm:$0xff]  ;;  %v480_v7 = vld [vmem:[#allocation8 + $0x330] sm:$0xff]  ;;  %v497_v16 = vld [vmem:[#allocation8 + $0x3b8] sm:$0xff] }
  0xdb   :  { %4417 = vmatprep.subr.bf16.mxu0 %v4416_v33  ;;  %v479_v33 = vld [vmem:[#allocation8 + $0x328] sm:$0xff]  ;;  %v4438_v39 = vpack.c.bf16 %v470_v31, %v466_v30  ;;  %v484_v13 = vld [vmem:[#allocation8 + $0x350] sm:$0xff]  ;;  %v501_v24 = vld [vmem:[#allocation8 + $0x3d8] sm:$0xff] }
  0xdc   :  { %4543 = vmatpush1.bf16.msra.mxu1 %v4542_v62  ;;  %v4440_v41 = vpack.c.bf16 %v479_v33, %v475_v32  ;;  %v477_v62 = vld [vmem:[#allocation8 + $0x318] sm:$0xff]  ;;  %v488_v14 = vld [vmem:[#allocation8 + $0x370] sm:$0xff]  ;;  %v506_v48 = vld [vmem:[#allocation8 + $0x400] sm:$0xff] }
  0xdd   :  { %4545 = vmatprep.subr.bf16.mxu1 %v4544_v63  ;;  %v492_v19 = vld [vmem:[#allocation8 + $0x390] sm:$0xff]  ;;  %v505_v26 = vld [vmem:[#allocation8 + $0x3f8] sm:$0xff]  ;;  %v510_v49 = vld [vmem:[#allocation8 + $0x420] sm:$0xff] }
  0xde   :  { %4419 = vmatpush1.bf16.msra.mxu0 %v4418_v43  ;;  %v478_v43 = vld [vmem:[#allocation8 + $0x320] sm:$0xff]  ;;  %v496_v20 = vld [vmem:[#allocation8 + $0x3b0] sm:$0xff]  ;;  %v509_v36 = vld [vmem:[#allocation8 + $0x418] sm:$0xff]  ;;  %v4458_v60 = vpack.c.bf16 %v510_v49, %v506_v48 }
  0xdf   :  { %4421 = vmatprep.subr.bf16.mxu0 %v4420_v45  ;;  %v487_v45 = vld [vmem:[#allocation8 + $0x368] sm:$0xff]  ;;  %v4442_v51 = vpack.c.bf16 %v478_v43, %v474_v42  ;;  %v4578_v21 = vpack.c.bf16 %v496_v20, %v492_v19  ;;  %v500_v31 = vld [vmem:[#allocation8 + $0x3d0] sm:$0xff]  ;;  %v513_v38 = vld [vmem:[#allocation8 + $0x438] sm:$0xff] }
  0xe0   :  { %4547 = vmatpush1.bf16.msra.mxu1 %v4546_v10  ;;  %v4444_v53 = vpack.c.bf16 %v487_v45, %v483_v44  ;;  %v489_v10 = vld [vmem:[#allocation8 + $0x378] sm:$0xff]  ;;  %v504_v32 = vld [vmem:[#allocation8 + $0x3f0] sm:$0xff]  ;;  %v535_v20 = vld [vmem:[#allocation8 + $0x4e8] sm:$0xff] }
  0xe1   :  { %4549 = vmatprep.subr.bf16.mxu1 %v4548_v11  ;;  %v4570_v11 = vpack.c.bf16 %v480_v7, %v476_v6  ;;  %v4572_v12 = vpack.c.bf16 %v489_v10, %v485_v9  ;;  %v4582_v33 = vpack.c.bf16 %v504_v32, %v500_v31  ;;  %v6399_v43 = vld [vmem:[#allocation7] sm:$0xf]  ;;  %v508_v52 = vld [vmem:[#allocation8 + $0x410] sm:$0xff]  ;;  %v527_v7 = vld [vmem:[#allocation8 + $0x4a8] sm:$0xff] }
  0xe2   :  { %4423 = vmatpush1.bf16.msra.mxu0 %v4422_v55  ;;  %v486_v55 = vld [vmem:[#allocation8 + $0x360] sm:$0xff]  ;;  %v529_v9 = vld [vmem:[#allocation8 + $0x4b8] sm:$0xff]  ;;  %v532_v31 = vld [vmem:[#allocation8 + $0x4d0] sm:$0xff] }
  0xe3   :  { %4425 = vmatprep.subr.bf16.mxu0 %v4424_v57  ;;  %v495_v57 = vld [vmem:[#allocation8 + $0x3a8] sm:$0xff]  ;;  %v4446_v63 = vpack.c.bf16 %v486_v55, %v482_v54  ;;  %v536_v32 = vld [vmem:[#allocation8 + $0x4f0] sm:$0xff] }
  0xe4   :  { %4551 = vmatpush1.bf16.msra.mxu1 %v4550_v22  ;;  %v4448_v1 = vpack.c.bf16 %v495_v57, %v491_v56  ;;  %v499_v22 = vld [vmem:[#allocation8 + $0x3c8] sm:$0xff]  ;;  %v517_v57 = vld [vmem:[#allocation8 + $0x458] sm:$0xff]  ;;  %v540_v49 = vld [vmem:[#allocation8 + $0x510] sm:$0xff] }
  0xe5   :  { %4553 = vmatprep.subr.bf16.mxu1 %v4552_v23  ;;  %v503_v23 = vld [vmem:[#allocation8 + $0x3e8] sm:$0xff] }
  0xe6   :  { %4427 = vmatpush1.bf16.msra.mxu0 %v4426_v3  ;;  %v494_v3 = vld [vmem:[#allocation8 + $0x3a0] sm:$0xff]  ;;  %v4452_v25 = vpack.c.bf16 %v503_v23, %v499_v22  ;;  %v515_v54 = vld [vmem:[#allocation8 + $0x448] sm:$0xff]  ;;  %v537_v22 = vld [vmem:[#allocation8 + $0x4f8] sm:$0xff] }
  0xe7   :  { %4429 = vmatprep.subr.bf16.mxu0 %v4428_v5  ;;  %v4568_v5 = vpack.c.bf16 %v481_v0, %v477_v62  ;;  %v4450_v8 = vpack.c.bf16 %v494_v3, %v490_v2  ;;  %v519_v56 = vld [vmem:[#allocation8 + $0x468] sm:$0xff]  ;;  %v514_v62 = vld [vmem:[#allocation8 + $0x440] sm:$0xff]  ;;  %v516_v3 = vld [vmem:[#allocation8 + $0x450] sm:$0xff] }
  0xe8   :  { %4555 = vmatpush1.bf16.msra.mxu1 %v4554_v34  ;;  %v507_v34 = vld [vmem:[#allocation8 + $0x408] sm:$0xff] }
  0xe9   :  { %4557 = vmatprep.subr.bf16.mxu1 %v4556_v35  ;;  %v511_v35 = vld [vmem:[#allocation8 + $0x428] sm:$0xff] }
  0xea   :  { %4431 = vmatpush1.bf16.msra.mxu0 %v4430_v15  ;;  %v493_v15 = vld [vmem:[#allocation8 + $0x398] sm:$0xff]  ;;  %v4456_v37 = vpack.c.bf16 %v511_v35, %v507_v34  ;;  %v543_v35 = vld [vmem:[#allocation8 + $0x528] sm:$0xff] }
  0xeb   :  { %4433 = vmatprep.subr.bf16.mxu0 %v4432_v17  ;;  %v4574_v17 = vpack.c.bf16 %v488_v14, %v484_v13  ;;  %v4576_v18 = vpack.c.bf16 %v497_v16, %v493_v15  ;;  %v526_v13 = vld [vmem:[#allocation8 + $0x4a0] sm:$0xff]  ;;  %v524_v16 = vld [vmem:[#allocation8 + $0x490] sm:$0xff] }
  0xec   :  { %4559 = vmatpush1.bf16.msra.mxu1 %v4558_v46 }
  0xed   :  { %4561 = vmatprep.subr.bf16.mxu1 %v4560_v47 }
  0xee   :  { %4435 = vmatpush1.bf16.msra.mxu0 %v4434_v27  ;;  %v498_v27 = vld [vmem:[#allocation8 + $0x3c0] sm:$0xff] }
  0xef   :  { %4437 = vmatprep.subr.bf16.mxu0 %v4436_v29  ;;  %v4580_v29 = vpack.c.bf16 %v505_v26, %v501_v24  ;;  %v4454_v30 = vpack.c.bf16 %v502_v28, %v498_v27  ;;  %v530_v26 = vld [vmem:[#allocation8 + $0x4c0] sm:$0xff] }
  0xf0   :  { %4563 = vmatpush1.bf16.msra.mxu1 %v4562_v58  ;;  %v521_v58 = vld [vmem:[#allocation8 + $0x478] sm:$0xff]  ;;  %v534_v27 = vld [vmem:[#allocation8 + $0x4e0] sm:$0xff] }
  0xf1   :  { %4565 = vmatprep.subr.bf16.mxu1 %v4564_v59  ;;  %v4588_v2 = vpack.c.bf16 %v521_v58, %v517_v57  ;;  %v546_v57 = vld [vmem:[#allocation8 + $0x540] sm:$0xff] }
  0xf2   :  { %4439 = vmatpush1.bf16.msra.mxu0 %v4438_v39  ;;  %v4584_v39 = vpack.c.bf16 %v513_v38, %v509_v36  ;;  %v541_v36 = vld [vmem:[#allocation8 + $0x518] sm:$0xff]  ;;  %v550_v58 = vld [vmem:[#allocation8 + $0x560] sm:$0xff] }
  0xf3   :  { %4441 = vmatprep.subr.bf16.mxu0 %v4440_v41  ;;  %v6394_v41 = vshrl.u32 %v212_v40, 7  ;;  %v4598_v40 = vpack.c.bf16 %v536_v32, %v532_v31  ;;  %v570_v31 = vld [vmem:[#allocation8 + $0x600] sm:$0xff] }
  0xf4   :  { %4567 = vmatpush1.bf16.msra.mxu1 %v4566_v4  ;;  %v520_v4 = vld [vmem:[#allocation8 + $0x470] sm:$0xff]  ;;  %v574_v32 = vld [vmem:[#allocation8 + $0x620] sm:$0xff] }
  0xf5   :  { %4569 = vmatprep.subr.bf16.mxu1 %v4568_v5  ;;  %v6397_v42 = vsub.s32 0, %v6394_v41  ;;  %v6402_v44 = vsub.s32 1, %v6394_v41  ;;  %v523_v5 = vld [vmem:[#allocation8 + $0x488] sm:$0xff]  ;;  %v6409_v6 = vsub.s32 3, %v6394_v41 }
  0xf6   :  { %4443 = vmatpush1.bf16.msra.mxu0 %v4442_v51  ;;  %v4464_v14 = vpack.c.bf16 %v527_v7, %v523_v5  ;;  %v554_v5 = vld [vmem:[#allocation8 + $0x580] sm:$0xff] }
  0xf7   :  { %4445 = vmatprep.subr.bf16.mxu0 %v4444_v53  ;;  %v215_v45 = vrot.slane %v6399_v43, %v6397_v42  ;;  %v219_v46 = vrot.slane %v6399_v43, %v6402_v44  ;;  %v512_v53 = vld [vmem:[#allocation8 + $0x430] sm:$0xff]  ;;  %v227_v19 = vrot.slane %v6399_v43, %v6409_v6  ;;  %v558_v7 = vld [vmem:[#allocation8 + $0x5a0] sm:$0xff] }
  0xf8   :  { %4571 = vmatpush1.bf16.msra.mxu1 %v4570_v11  ;;  %v4586_v61 = vpack.c.bf16 %v512_v53, %v508_v52  ;;  %v4590_v11 = vpack.c.bf16 %v520_v4, %v516_v3  ;;  %v551_v52 = vld [vmem:[#allocation8 + $0x568] sm:$0xff]  ;;  %v549_v53 = vld [vmem:[#allocation8 + $0x558] sm:$0xff]  ;;  %v4478_v3 = vpack.c.bf16 %v550_v58, %v546_v57 }
  0xf9   :  { %4573 = vmatprep.subr.bf16.mxu1 %v4572_v12  ;;  %v522_v12 = vld [vmem:[#allocation8 + $0x480] sm:$0xff] }
  0xfa   :  { %4447 = vmatpush1.bf16.msra.mxu0 %v4446_v63  ;;  %v518_v63 = vld [vmem:[#allocation8 + $0x460] sm:$0xff]  ;;  %v4466_v24 = vpack.c.bf16 %v526_v13, %v522_v12  ;;  %v563_v12 = vld [vmem:[#allocation8 + $0x5c8] sm:$0xff] }
  0xfb   :  { %4449 = vmatprep.subr.bf16.mxu0 %v4448_v1  ;;  %v4460_v1 = vpack.c.bf16 %v519_v56, %v515_v54  ;;  %v4462_v10 = vpack.c.bf16 %v518_v63, %v514_v62  ;;  %v553_v54 = vld [vmem:[#allocation8 + $0x578] sm:$0xff]  ;;  %v552_v62 = vld [vmem:[#allocation8 + $0x570] sm:$0xff]  ;;  %v555_v63 = vld [vmem:[#allocation8 + $0x588] sm:$0xff] }
  0xfc   :  { %4575 = vmatpush1.bf16.msra.mxu1 %v4574_v17  ;;  %v528_v17 = vld [vmem:[#allocation8 + $0x4b0] sm:$0xff]  ;;  %v567_v13 = vld [vmem:[#allocation8 + $0x5e8] sm:$0xff] }
  0xfd   :  { %4577 = vmatprep.subr.bf16.mxu1 %v4576_v18  ;;  %v531_v18 = vld [vmem:[#allocation8 + $0x4c8] sm:$0xff] }
  0xfe   :  { %4451 = vmatpush1.bf16.msra.mxu0 %v4450_v8  ;;  %v525_v8 = vld [vmem:[#allocation8 + $0x498] sm:$0xff] }
  0xff   :  { %4453 = vmatprep.subr.bf16.mxu0 %v4452_v25  ;;  %v4592_v15 = vpack.c.bf16 %v529_v9, %v525_v8  ;;  %v4594_v25 = vpack.c.bf16 %v528_v17, %v524_v16  ;;  %v4482_v16 = vpack.c.bf16 %v558_v7, %v554_v5 }
 0x100   :  { %4579 = vmatpush1.bf16.msra.mxu1 %v4578_v21  ;;  %v533_v21 = vld [vmem:[#allocation8 + $0x4d8] sm:$0xff] }
 0x101   :  { %4581 = vmatprep.subr.bf16.mxu1 %v4580_v29  ;;  %v4468_v29 = vpack.c.bf16 %v535_v20, %v531_v18  ;;  %v562_v18 = vld [vmem:[#allocation8 + $0x5c0] sm:$0xff]  ;;  %v4484_v20 = vpack.c.bf16 %v567_v13, %v563_v12  ;;  %v596_v12 = vld [vmem:[#allocation8 + $0x6d0] sm:$0xff] }
 0x102   :  { %4455 = vmatpush1.bf16.msra.mxu0 %v4454_v30  ;;  %v4596_v30 = vpack.c.bf16 %v537_v22, %v533_v21  ;;  %v564_v22 = vld [vmem:[#allocation8 + $0x5d0] sm:$0xff] }
 0x103   :  { %4457 = vmatprep.subr.bf16.mxu0 %v4456_v37  ;;  %v545_v37 = vld [vmem:[#allocation8 + $0x538] sm:$0xff]  ;;  %v600_v13 = vld [vmem:[#allocation8 + $0x6f0] sm:$0xff] }
 0x104   :  { %4583 = vmatpush1.bf16.msra.mxu1 %v4582_v33  ;;  %v539_v33 = vld [vmem:[#allocation8 + $0x508] sm:$0xff]  ;;  %v4600_v48 = vpack.c.bf16 %v545_v37, %v541_v36  ;;  %v576_v36 = vld [vmem:[#allocation8 + $0x630] sm:$0xff] }
 0x105   :  { %4585 = vmatprep.subr.bf16.mxu1 %v4584_v39  ;;  %v4470_v39 = vpack.c.bf16 %v534_v27, %v530_v26  ;;  %v575_v26 = vld [vmem:[#allocation8 + $0x628] sm:$0xff]  ;;  %v573_v27 = vld [vmem:[#allocation8 + $0x618] sm:$0xff] }
 0x106   :  { %v579_v37 = vld [vmem:[#allocation8 + $0x648] sm:$0xff] }
 0x198   :  { %v298_v47 = vpop.f32.mrb[0].mxu0 }
 0x199   :  { %v299_v50 = vadd.f32 %v298_v47, %v215_v45  ;;  %v300_v51 = vpop.f32.mrb[1].mxu0  ;;  %v538_v45 = vld [vmem:[#allocation8 + $0x500] sm:$0xff]  ;;  %v4472_v47 = vpack.c.bf16 %v543_v35, %v539_v33  ;;  %v572_v35 = vld [vmem:[#allocation8 + $0x610] sm:$0xff] }
 0x19a   :  { %v301_v55 = vadd.f32 %v300_v51, %v219_v46  ;;  %v6413_v23 = vpop.f32.mrb[0].mxu1  ;;  %v542_v46 = vld [vmem:[#allocation8 + $0x520] sm:$0xff]  ;;  %v547_v51 = vld [vmem:[#allocation8 + $0x548] sm:$0xff] }
 0x19b   :  { %v374_v0 = vmax.f32 %v299_v50, 0.0  ;;  %v371_v28 = vpop.f32.mrb[1].mxu1  ;;  %v544_v50 = vld [vmem:[#allocation8 + $0x530] sm:$0xff] }
 0x19c   :  { %v375_v59 = vmax.f32 %v301_v55, 0.0  ;;  %v372_v34 = vadd.f32 %v371_v28, %v227_v19  ;;  %v4474_v55 = vpack.c.bf16 %v542_v46, %v538_v45  ;;  %v4602_v56 = vpack.c.bf16 %v544_v50, %v540_v49  ;;  %v566_v19 = vld [vmem:[#allocation8 + $0x5e0] sm:$0xff]  ;;  %v577_v28 = vld [vmem:[#allocation8 + $0x638] sm:$0xff] }
 0x19d   :  { %v4490_v45 = vpack.c.bf16 %v574_v32, %v570_v31  ;;  %v4618_v46 = vpack.c.bf16 %v576_v36, %v572_v35 }
 0x19e   :  { %720 = vmatprep.mubr.f32.mxu0 %v375_v59  ;;  %862 = vmatprep.mubr.f32.mxu1 %v375_v59  ;;  %v377_v38 = vmax.f32 %v372_v34, 0.0  ;;  %v4476_v59 = vpack.c.bf16 %v551_v52, %v547_v51  ;;  %v4616_v34 = vpack.c.bf16 %v577_v28, %v573_v27  ;;  %v580_v51 = vld [vmem:[#allocation8 + $0x650] sm:$0xff]  ;;  %v611_v27 = vld [vmem:[#allocation8 + $0x748] sm:$0xff] }
 0x19f   :  { %721 = vmatmul.mubr.f32.vlgmr.msra.gmra.mrb[2].mxu0 %v374_v0  ;;  %863 = vmatmul.mubr.f32.vlgmr.msra.gmra.mrb[2].mxu1 %v374_v0  ;;  %v559_v0 = vld [vmem:[#allocation8 + $0x5a8] sm:$0xff]  ;;  %v584_v52 = vld [vmem:[#allocation8 + $0x670] sm:$0xff] }
 0x1a0   :  { %4459 = vmatpush1.bf16.msra.mxu0 %v4458_v60  ;;  %4587 = vmatpush1.bf16.msra.mxu1 %v4586_v61  ;;  %v4604_v60 = vpack.c.bf16 %v553_v54, %v549_v53  ;;  %v548_v61 = vld [vmem:[#allocation8 + $0x550] sm:$0xff]  ;;  %v4480_v8 = vpack.c.bf16 %v559_v0, %v555_v63  ;;  %v587_v53 = vld [vmem:[#allocation8 + $0x688] sm:$0xff]  ;;  %v4622_v58 = vpack.c.bf16 %v584_v52, %v580_v51  ;;  %v6416_v51 = vsub.s32 2, %v6394_v41 }
 0x1a1   :  { %4461 = vmatprep.subr.bf16.mxu0 %v4460_v1  ;;  %4589 = vmatprep.subr.bf16.mxu1 %v4588_v2  ;;  %v557_v1 = vld [vmem:[#allocation8 + $0x598] sm:$0xff]  ;;  %v4606_v4 = vpack.c.bf16 %v552_v62, %v548_v61  ;;  %v591_v54 = vld [vmem:[#allocation8 + $0x6a8] sm:$0xff]  ;;  %v588_v63 = vld [vmem:[#allocation8 + $0x690] sm:$0xff] }
 0x1a2   :  { %791 = vmatprep.mubr.f32.mxu0 %v377_v38  ;;  %933 = vmatprep.mubr.f32.mxu1 %v377_v38  ;;  %v561_v2 = vld [vmem:[#allocation8 + $0x5b8] sm:$0xff]  ;;  %v583_v38 = vld [vmem:[#allocation8 + $0x668] sm:$0xff]  ;;  %v4496_v61 = vpack.c.bf16 %v591_v54, %v587_v53  ;;  %v592_v0 = vld [vmem:[#allocation8 + $0x6b0] sm:$0xff] }
 0x1a3   :  { %v4608_v9 = vpack.c.bf16 %v561_v2, %v557_v1  ;;  %v4492_v49 = vpack.c.bf16 %v583_v38, %v579_v37  ;;  %v595_v1 = vld [vmem:[#allocation8 + $0x6c8] sm:$0xff]  ;;  %v4626_v7 = vpack.c.bf16 %v592_v0, %v588_v63  ;;  %v612_v37 = vld [vmem:[#allocation8 + $0x750] sm:$0xff]  ;;  %v630_v63 = vld [vmem:[#allocation8 + $0x7e0] sm:$0xff]  ;;  %v223_v0 = vrot.slane %v6399_v43, %v6416_v51 }
 0x1a4   :  { %4463 = vmatpush1.bf16.msra.mxu0 %v4462_v10  ;;  %4591 = vmatpush1.bf16.msra.mxu1 %v4590_v11  ;;  %v556_v10 = vld [vmem:[#allocation8 + $0x590] sm:$0xff]  ;;  %v599_v2 = vld [vmem:[#allocation8 + $0x6e8] sm:$0xff] }
 0x1a5   :  { %4465 = vmatprep.subr.bf16.mxu0 %v4464_v14  ;;  %4593 = vmatprep.subr.bf16.mxu1 %v4592_v15  ;;  %v560_v11 = vld [vmem:[#allocation8 + $0x5b0] sm:$0xff]  ;;  %v565_v14 = vld [vmem:[#allocation8 + $0x5d8] sm:$0xff]  ;;  %v615_v28 = vld [vmem:[#allocation8 + $0x768] sm:$0xff] }
 0x1a6   :  { %v569_v15 = vld [vmem:[#allocation8 + $0x5f8] sm:$0xff]  ;;  %v4610_v17 = vpack.c.bf16 %v560_v11, %v556_v10  ;;  %v4500_v10 = vpack.c.bf16 %v599_v2, %v595_v1  ;;  %v4508_v35 = vpack.c.bf16 %v615_v28, %v611_v27  ;;  %v616_v38 = vld [vmem:[#allocation8 + $0x770] sm:$0xff] }
 0x1a7   :  { %v4612_v21 = vpack.c.bf16 %v569_v15, %v565_v14  ;;  %v603_v14 = vld [vmem:[#allocation8 + $0x708] sm:$0xff]  ;;  %v620_v54 = vld [vmem:[#allocation8 + $0x790] sm:$0xff] }
 0x1a8   :  { %4467 = vmatpush1.bf16.msra.mxu0 %v4466_v24  ;;  %4595 = vmatpush1.bf16.msra.mxu1 %v4594_v25  ;;  %v568_v24 = vld [vmem:[#allocation8 + $0x5f0] sm:$0xff]  ;;  %v571_v25 = vld [vmem:[#allocation8 + $0x608] sm:$0xff] }
 0x1a9   :  { %4469 = vmatprep.subr.bf16.mxu0 %v4468_v29  ;;  %4597 = vmatprep.subr.bf16.mxu1 %v4596_v30  ;;  %v4486_v29 = vpack.c.bf16 %v566_v19, %v562_v18  ;;  %v4614_v30 = vpack.c.bf16 %v568_v24, %v564_v22  ;;  %v4488_v33 = vpack.c.bf16 %v575_v26, %v571_v25  ;;  %v607_v15 = vld [vmem:[#allocation8 + $0x728] sm:$0xff]  ;;  %v604_v25 = vld [vmem:[#allocation8 + $0x710] sm:$0xff] }
 0x1aa   :  { %v4630_v19 = vpack.c.bf16 %v600_v13, %v596_v12  ;;  %v4504_v22 = vpack.c.bf16 %v607_v15, %v603_v14  ;;  %v608_v26 = vld [vmem:[#allocation8 + $0x730] sm:$0xff]  ;;  %v944_v12 = vld [vmem:[#allocation11] sm:$0xff]  ;;  %v370_v14 = vadd.f32 %v6413_v23, %v223_v0 }
 0x1ab   :  { %v4634_v32 = vpack.c.bf16 %v608_v26, %v604_v25  ;;  %v960_v13 = vld [vmem:[#allocation11 + $0x80] sm:$0xff] }
 0x1ac   :  { %4471 = vmatpush1.bf16.msra.mxu0 %v4470_v39  ;;  %4599 = vmatpush1.bf16.msra.mxu1 %v4598_v40  ;;  %v581_v39 = vld [vmem:[#allocation8 + $0x658] sm:$0xff]  ;;  %v976_v25 = vld [vmem:[#allocation11 + $0x100] sm:$0xff]  ;;  %v376_v27 = vmax.f32 %v370_v14, 0.0 }
 0x1ad   :  { %4473 = vmatprep.subr.bf16.mxu0 %v4472_v47  ;;  %4601 = vmatprep.subr.bf16.mxu1 %v4600_v48  ;;  %v585_v40 = vld [vmem:[#allocation8 + $0x678] sm:$0xff]  ;;  %v578_v47 = vld [vmem:[#allocation8 + $0x640] sm:$0xff] }
 0x1ae   :  { %v582_v48 = vld [vmem:[#allocation8 + $0x660] sm:$0xff]  ;;  %v4620_v50 = vpack.c.bf16 %v585_v40, %v581_v39  ;;  %v619_v39 = vld [vmem:[#allocation8 + $0x788] sm:$0xff] }
 0x1af   :  { %v4494_v57 = vpack.c.bf16 %v582_v48, %v578_v47  ;;  %v623_v40 = vld [vmem:[#allocation8 + $0x7a8] sm:$0xff]  ;;  %v4638_v48 = vpack.c.bf16 %v616_v38, %v612_v37 }
 0x1b0   :  { %4475 = vmatpush1.bf16.msra.mxu0 %v4474_v55  ;;  %4603 = vmatpush1.bf16.msra.mxu1 %v4602_v56  ;;  %v589_v55 = vld [vmem:[#allocation8 + $0x698] sm:$0xff]  ;;  %v4512_v52 = vpack.c.bf16 %v623_v40, %v619_v39  ;;  %v992_v26 = vld [vmem:[#allocation11 + $0x180] sm:$0xff] }
 0x1b1   :  { %4477 = vmatprep.subr.bf16.mxu0 %v4476_v59  ;;  %4605 = vmatprep.subr.bf16.mxu1 %v4604_v60  ;;  %v593_v56 = vld [vmem:[#allocation8 + $0x6b8] sm:$0xff]  ;;  %v586_v59 = vld [vmem:[#allocation8 + $0x680] sm:$0xff] }
 0x1b2   :  { %v590_v60 = vld [vmem:[#allocation8 + $0x6a0] sm:$0xff]  ;;  %v4624_v62 = vpack.c.bf16 %v593_v56, %v589_v55  ;;  %v624_v55 = vld [vmem:[#allocation8 + $0x7b0] sm:$0xff]  ;;  %v627_v56 = vld [vmem:[#allocation8 + $0x7c8] sm:$0xff] }
 0x1b3   :  { %v4498_v5 = vpack.c.bf16 %v590_v60, %v586_v59  ;;  %v633_v59 = vld [vmem:[#allocation8 + $0x7f8] sm:$0xff]  ;;  %v1008_v37 = vld [vmem:[#allocation11 + $0x200] sm:$0xff] }
 0x1b4   :  { %4479 = vmatpush1.bf16.msra.mxu0 %v4478_v3  ;;  %4607 = vmatpush1.bf16.msra.mxu1 %v4606_v4  ;;  %v597_v3 = vld [vmem:[#allocation8 + $0x6d8] sm:$0xff]  ;;  %v1024_v38 = vld [vmem:[#allocation11 + $0x280] sm:$0xff] }
 0x1b5   :  { %4481 = vmatprep.subr.bf16.mxu0 %v4480_v8  ;;  %4609 = vmatprep.subr.bf16.mxu1 %v4608_v9  ;;  %v601_v4 = vld [vmem:[#allocation8 + $0x6f8] sm:$0xff]  ;;  %v594_v8 = vld [vmem:[#allocation8 + $0x6c0] sm:$0xff] }
 0x1b6   :  { %v598_v9 = vld [vmem:[#allocation8 + $0x6e0] sm:$0xff]  ;;  %v4628_v11 = vpack.c.bf16 %v601_v4, %v597_v3  ;;  %v628_v3 = vld [vmem:[#allocation8 + $0x7d0] sm:$0xff] }
 0x1b7   :  { %v4502_v18 = vpack.c.bf16 %v598_v9, %v594_v8  ;;  %v632_v4 = vld [vmem:[#allocation8 + $0x7f0] sm:$0xff]  ;;  %v947_v8 = vld [vmem:[#allocation11 + $0x18] sm:$0xff] }
 0x1b8   :  { %4483 = vmatpush1.bf16.msra.mxu0 %v4482_v16  ;;  %4611 = vmatpush1.bf16.msra.mxu1 %v4610_v17  ;;  %v605_v16 = vld [vmem:[#allocation8 + $0x718] sm:$0xff] }
 0x1b9   :  { %4485 = vmatprep.subr.bf16.mxu0 %v4484_v20  ;;  %4613 = vmatprep.subr.bf16.mxu1 %v4612_v21  ;;  %v609_v17 = vld [vmem:[#allocation8 + $0x738] sm:$0xff]  ;;  %v602_v20 = vld [vmem:[#allocation8 + $0x700] sm:$0xff] }
 0x1ba   :  { %v606_v21 = vld [vmem:[#allocation8 + $0x720] sm:$0xff]  ;;  %v4632_v24 = vpack.c.bf16 %v609_v17, %v605_v16  ;;  %v946_v16 = vld [vmem:[#allocation11 + $0x10] sm:$0xff] }
 0x1bb   :  { %v4506_v31 = vpack.c.bf16 %v606_v21, %v602_v20  ;;  %v963_v9 = vld [vmem:[#allocation11 + $0x98] sm:$0xff]  ;;  %v962_v17 = vld [vmem:[#allocation11 + $0x90] sm:$0xff] }
 0x1bc   :  { %4487 = vmatpush1.bf16.msra.mxu0 %v4486_v29  ;;  %4615 = vmatpush1.bf16.msra.mxu1 %v4614_v30  ;;  %v613_v29 = vld [vmem:[#allocation8 + $0x758] sm:$0xff]  ;;  %v4776_v15 = vpack.c.bf16 %v963_v9, %v947_v8  ;;  %v1105_v9 = vld [vmem:[#allocation11 + $0x508] sm:$0xff] }
 0x1bd   :  { %4489 = vmatprep.subr.bf16.mxu0 %v4488_v33  ;;  %4617 = vmatprep.subr.bf16.mxu1 %v4616_v34  ;;  %v617_v30 = vld [vmem:[#allocation8 + $0x778] sm:$0xff]  ;;  %v610_v33 = vld [vmem:[#allocation8 + $0x740] sm:$0xff] }
 0x1be   :  { %v614_v34 = vld [vmem:[#allocation8 + $0x760] sm:$0xff]  ;;  %v4636_v36 = vpack.c.bf16 %v617_v30, %v613_v29  ;;  %v978_v29 = vld [vmem:[#allocation11 + $0x110] sm:$0xff] }
 0x1bf   :  { %v4510_v47 = vpack.c.bf16 %v614_v34, %v610_v33  ;;  %v979_v20 = vld [vmem:[#allocation11 + $0x118] sm:$0xff]  ;;  %v994_v30 = vld [vmem:[#allocation11 + $0x190] sm:$0xff] }
 0x1c0   :  { %4491 = vmatpush1.bf16.msra.mxu0 %v4490_v45  ;;  %4619 = vmatpush1.bf16.msra.mxu1 %v4618_v46  ;;  %v621_v45 = vld [vmem:[#allocation8 + $0x798] sm:$0xff] }
 0x1c1   :  { %4493 = vmatprep.subr.bf16.mxu0 %v4492_v49  ;;  %4621 = vmatprep.subr.bf16.mxu1 %v4620_v50  ;;  %v625_v46 = vld [vmem:[#allocation8 + $0x7b8] sm:$0xff]  ;;  %v618_v49 = vld [vmem:[#allocation8 + $0x780] sm:$0xff] }
 0x1c2   :  { %v622_v50 = vld [vmem:[#allocation8 + $0x7a0] sm:$0xff]  ;;  %v4640_v53 = vpack.c.bf16 %v625_v46, %v621_v45  ;;  %v1010_v45 = vld [vmem:[#allocation11 + $0x210] sm:$0xff] }
 0x1c3   :  { %v4514_v60 = vpack.c.bf16 %v622_v50, %v618_v49  ;;  %v995_v21 = vld [vmem:[#allocation11 + $0x198] sm:$0xff]  ;;  %v1026_v46 = vld [vmem:[#allocation11 + $0x290] sm:$0xff] }
 0x1c4   :  { %4495 = vmatpush1.bf16.msra.mxu0 %v4494_v57  ;;  %4623 = vmatpush1.bf16.msra.mxu1 %v4622_v58  ;;  %v631_v57 = vld [vmem:[#allocation8 + $0x7e8] sm:$0xff]  ;;  %v629_v58 = vld [vmem:[#allocation8 + $0x7d8] sm:$0xff]  ;;  %v4780_v28 = vpack.c.bf16 %v995_v21, %v979_v20 }
 0x1c5   :  { %4497 = vmatprep.subr.bf16.mxu0 %v4496_v61  ;;  %4625 = vmatprep.subr.bf16.mxu1 %v4624_v62  ;;  %v4642_v61 = vpack.c.bf16 %v624_v55, %v620_v54  ;;  %v626_v62 = vld [vmem:[#allocation8 + $0x7c0] sm:$0xff]  ;;  %v4516_v1 = vpack.c.bf16 %v631_v57, %v627_v56  ;;  %v4644_v2 = vpack.c.bf16 %v633_v59, %v629_v58  ;;  %v1042_v58 = vld [vmem:[#allocation11 + $0x310] sm:$0xff]  ;;  %v1137_v20 = vld [vmem:[#allocation11 + $0x608] sm:$0xff] }
 0x1c6   :  { %v1011_v33 = vld [vmem:[#allocation11 + $0x218] sm:$0xff]  ;;  %v1040_v54 = vld [vmem:[#allocation11 + $0x300] sm:$0xff]  ;;  %v1058_v59 = vld [vmem:[#allocation11 + $0x390] sm:$0xff] }
 0x1c7   :  { %v1027_v34 = vld [vmem:[#allocation11 + $0x298] sm:$0xff]  ;;  %v1056_v55 = vld [vmem:[#allocation11 + $0x380] sm:$0xff]  ;;  %v1090_v8 = vld [vmem:[#allocation11 + $0x490] sm:$0xff] }
 0x1c8   :  { %4499 = vmatpush1.bf16.msra.mxu0 %v4498_v5  ;;  %4627 = vmatpush1.bf16.msra.mxu1 %v4626_v7  ;;  %v945_v5 = vld [vmem:[#allocation11 + $0x8] sm:$0xff]  ;;  %v4784_v40 = vpack.c.bf16 %v1027_v34, %v1011_v33  ;;  %v1043_v49 = vld [vmem:[#allocation11 + $0x318] sm:$0xff]  ;;  %v4662_v0 = vpack.c.bf16 %v1056_v55, %v1040_v54  ;;  %v1200_v55 = vld [vmem:[#allocation11 + $0x800] sm:$0xff] }
 0x1c9   :  { %4501 = vmatprep.subr.bf16.mxu0 %v4500_v10  ;;  %4629 = vmatprep.subr.bf16.mxu1 %v4628_v11  ;;  %v961_v7 = vld [vmem:[#allocation11 + $0x88] sm:$0xff]  ;;  %v4518_v10 = vpack.c.bf16 %v630_v63, %v626_v62  ;;  %v4646_v11 = vpack.c.bf16 %v632_v4, %v628_v3  ;;  %v1059_v50 = vld [vmem:[#allocation11 + $0x398] sm:$0xff]  ;;  %v1088_v3 = vld [vmem:[#allocation11 + $0x480] sm:$0xff] }
 0x1ca   :  { %v4648_v43 = vpack.c.bf16 %v961_v7, %v945_v5  ;;  %v4788_v57 = vpack.c.bf16 %v1059_v50, %v1043_v49  ;;  %v1075_v62 = vld [vmem:[#allocation11 + $0x418] sm:$0xff]  ;;  %v1074_v7 = vld [vmem:[#allocation11 + $0x410] sm:$0xff]  ;;  %v1153_v21 = vld [vmem:[#allocation11 + $0x688] sm:$0xff] }
 0x1cb   :  { %v1091_v63 = vld [vmem:[#allocation11 + $0x498] sm:$0xff]  ;;  %v4794_v14 = vpack.c.bf16 %v1090_v8, %v1074_v7  ;;  %v1185_v33 = vld [vmem:[#allocation11 + $0x788] sm:$0xff]  ;;  %v1234_v8 = vld [vmem:[#allocation11 + $0x910] sm:$0xff] }
 0x1cc   :  { %4503 = vmatpush1.bf16.msra.mxu0 %v4502_v18  ;;  %4631 = vmatpush1.bf16.msra.mxu1 %v4630_v19  ;;  %v977_v18 = vld [vmem:[#allocation11 + $0x108] sm:$0xff]  ;;  %v4792_v5 = vpack.c.bf16 %v1091_v63, %v1075_v62  ;;  %v1171_v34 = vld [vmem:[#allocation11 + $0x718] sm:$0xff] }
 0x1cd   :  { %4505 = vmatprep.subr.bf16.mxu0 %v4504_v22  ;;  %4633 = vmatprep.subr.bf16.mxu1 %v4632_v24  ;;  %v993_v19 = vld [vmem:[#allocation11 + $0x188] sm:$0xff]  ;;  %v4650_v22 = vpack.c.bf16 %v960_v13, %v944_v12  ;;  %v4778_v24 = vpack.c.bf16 %v962_v17, %v946_v16  ;;  %v1123_v12 = vld [vmem:[#allocation11 + $0x598] sm:$0xff] }
 0x1ce   :  { %v4652_v23 = vpack.c.bf16 %v993_v19, %v977_v18  ;;  %v1106_v18 = vld [vmem:[#allocation11 + $0x510] sm:$0xff]  ;;  %v1217_v49 = vld [vmem:[#allocation11 + $0x888] sm:$0xff]  ;;  %v1203_v50 = vld [vmem:[#allocation11 + $0x818] sm:$0xff] }
 0x1cf   :  { %v1122_v19 = vld [vmem:[#allocation11 + $0x590] sm:$0xff]  ;;  %v1249_v62 = vld [vmem:[#allocation11 + $0x988] sm:$0xff]  ;;  %v1235_v63 = vld [vmem:[#allocation11 + $0x918] sm:$0xff] }
 0x1d0   :  { %4507 = vmatpush1.bf16.msra.mxu0 %v4506_v31  ;;  %4635 = vmatpush1.bf16.msra.mxu1 %v4634_v32  ;;  %v1009_v31 = vld [vmem:[#allocation11 + $0x208] sm:$0xff] }
 0x1d1   :  { %4509 = vmatprep.subr.bf16.mxu0 %v4508_v35  ;;  %4637 = vmatprep.subr.bf16.mxu1 %v4636_v36  ;;  %v1025_v32 = vld [vmem:[#allocation11 + $0x288] sm:$0xff]  ;;  %v4654_v35 = vpack.c.bf16 %v992_v26, %v976_v25  ;;  %v4782_v36 = vpack.c.bf16 %v994_v30, %v978_v29  ;;  %v4798_v26 = vpack.c.bf16 %v1122_v19, %v1106_v18  ;;  %v1138_v30 = vld [vmem:[#allocation11 + $0x610] sm:$0xff] }
 0x1d2   :  { %v4656_v39 = vpack.c.bf16 %v1025_v32, %v1009_v31  ;;  %v1154_v31 = vld [vmem:[#allocation11 + $0x690] sm:$0xff]  ;;  %v1169_v32 = vld [vmem:[#allocation11 + $0x708] sm:$0xff] }
 0x1d3   :  { %v1266_v19 = vld [vmem:[#allocation11 + $0xa10] sm:$0xff] }
 0x1d4   :  { %4511 = vmatpush1.bf16.msra.mxu0 %v4510_v47  ;;  %4639 = vmatpush1.bf16.msra.mxu1 %v4638_v48  ;;  %v1041_v47 = vld [vmem:[#allocation11 + $0x308] sm:$0xff] }
 0x1d5   :  { %4513 = vmatprep.subr.bf16.mxu0 %v4512_v52  ;;  %4641 = vmatprep.subr.bf16.mxu1 %v4640_v53  ;;  %v1057_v48 = vld [vmem:[#allocation11 + $0x388] sm:$0xff]  ;;  %v4658_v52 = vpack.c.bf16 %v1024_v38, %v1008_v37  ;;  %v4786_v53 = vpack.c.bf16 %v1026_v46, %v1010_v45  ;;  %v4802_v37 = vpack.c.bf16 %v1154_v31, %v1138_v30  ;;  %v1168_v38 = vld [vmem:[#allocation11 + $0x700] sm:$0xff]  ;;  %v1170_v46 = vld [vmem:[#allocation11 + $0x710] sm:$0xff] }
 0x1d6   :  { %v4660_v56 = vpack.c.bf16 %v1057_v48, %v1041_v47  ;;  %v1186_v47 = vld [vmem:[#allocation11 + $0x790] sm:$0xff]  ;;  %v1201_v48 = vld [vmem:[#allocation11 + $0x808] sm:$0xff] }
 0x1d7   :  { %v4806_v54 = vpack.c.bf16 %v1186_v47, %v1170_v46  ;;  %v1298_v31 = vld [vmem:[#allocation11 + $0xb10] sm:$0xff] }
 0x1d8   :  { %4515 = vmatpush1.bf16.msra.mxu0 %v4514_v60  ;;  %4643 = vmatpush1.bf16.msra.mxu1 %v4642_v61  ;;  %v1073_v60 = vld [vmem:[#allocation11 + $0x408] sm:$0xff]  ;;  %v1330_v47 = vld [vmem:[#allocation11 + $0xc10] sm:$0xff] }
 0x1d9   :  { %4517 = vmatprep.subr.bf16.mxu0 %v4516_v1  ;;  %4645 = vmatprep.subr.bf16.mxu1 %v4644_v2  ;;  %v1089_v61 = vld [vmem:[#allocation11 + $0x488] sm:$0xff]  ;;  %v4790_v1 = vpack.c.bf16 %v1058_v59, %v1042_v58  ;;  %v1072_v2 = vld [vmem:[#allocation11 + $0x400] sm:$0xff]  ;;  %v1202_v59 = vld [vmem:[#allocation11 + $0x810] sm:$0xff] }
 0x1da   :  { %v4664_v4 = vpack.c.bf16 %v1089_v61, %v1073_v60  ;;  %v4666_v13 = vpack.c.bf16 %v1088_v3, %v1072_v2  ;;  %v1218_v60 = vld [vmem:[#allocation11 + $0x890] sm:$0xff]  ;;  %v1233_v61 = vld [vmem:[#allocation11 + $0x908] sm:$0xff]  ;;  %v1232_v3 = vld [vmem:[#allocation11 + $0x900] sm:$0xff] }
 0x1db   :  { %v4810_v2 = vpack.c.bf16 %v1218_v60, %v1202_v59  ;;  %v1362_v60 = vld [vmem:[#allocation11 + $0xd10] sm:$0xff] }
 0x1dc   :  { %4519 = vmatpush1.bf16.msra.mxu0 %v4518_v10  ;;  %4647 = vmatpush1.bf16.msra.mxu1 %v4646_v11  ;;  %v1121_v10 = vld [vmem:[#allocation11 + $0x588] sm:$0xff]  ;;  %v1107_v11 = vld [vmem:[#allocation11 + $0x518] sm:$0xff] }
 0x1dd   :  { %4649 = vmatprep.subr.bf16.mxu0 %v4648_v43  ;;  %4777 = vmatprep.subr.bf16.mxu1 %v4776_v15  ;;  %v1104_v43 = vld [vmem:[#allocation11 + $0x500] sm:$0xff]  ;;  %v4668_v16 = vpack.c.bf16 %v1121_v10, %v1105_v9  ;;  %v4796_v17 = vpack.c.bf16 %v1123_v12, %v1107_v11  ;;  %v1250_v9 = vld [vmem:[#allocation11 + $0x990] sm:$0xff]  ;;  %v1265_v10 = vld [vmem:[#allocation11 + $0xa08] sm:$0xff] }
 0x1de   :  { %v1120_v15 = vld [vmem:[#allocation11 + $0x580] sm:$0xff]  ;;  %v1281_v11 = vld [vmem:[#allocation11 + $0xa88] sm:$0xff]  ;;  %v1267_v12 = vld [vmem:[#allocation11 + $0xa18] sm:$0xff] }
 0x1df   :  { %792 = vmatmul.mubr.f32.vlgmr.msra.gmra.mrb[2].mxu0 %v376_v27  ;;  %934 = vmatmul.mubr.f32.vlgmr.msra.gmra.mrb[2].mxu1 %v376_v27  ;;  %v4670_v25 = vpack.c.bf16 %v1120_v15, %v1104_v43  ;;  %v1136_v27 = vld [vmem:[#allocation11 + $0x600] sm:$0xff]  ;;  %v4814_v43 = vpack.c.bf16 %v1250_v9, %v1234_v8  ;;  %v1394_v9 = vld [vmem:[#allocation11 + $0xe10] sm:$0xff] }
 0x1e0   :  { %4651 = vmatpush1.bf16.msra.mxu0 %v4650_v22  ;;  %4779 = vmatpush1.bf16.msra.mxu1 %v4778_v24  ;;  %v1139_v22 = vld [vmem:[#allocation11 + $0x618] sm:$0xff]  ;;  %v1264_v15 = vld [vmem:[#allocation11 + $0xa00] sm:$0xff] }
 0x1e1   :  { %4653 = vmatprep.subr.bf16.mxu0 %v4652_v23  ;;  %4781 = vmatprep.subr.bf16.mxu1 %v4780_v28  ;;  %v1155_v24 = vld [vmem:[#allocation11 + $0x698] sm:$0xff]  ;;  %v1152_v23 = vld [vmem:[#allocation11 + $0x680] sm:$0xff]  ;;  %v4672_v28 = vpack.c.bf16 %v1153_v21, %v1137_v20  ;;  %v1282_v20 = vld [vmem:[#allocation11 + $0xa90] sm:$0xff] }
 0x1e2   :  { %v4800_v29 = vpack.c.bf16 %v1155_v24, %v1139_v22  ;;  %v1297_v21 = vld [vmem:[#allocation11 + $0xb08] sm:$0xff]  ;;  %v1299_v24 = vld [vmem:[#allocation11 + $0xb18] sm:$0xff]  ;;  %v1408_v8 = vld [vmem:[#allocation11 + $0xe80] sm:$0xff] }
 0x1e3   :  { %v1313_v22 = vld [vmem:[#allocation11 + $0xb88] sm:$0xff] }
 0x1e4   :  { %4655 = vmatpush1.bf16.msra.mxu0 %v4654_v35  ;;  %4783 = vmatpush1.bf16.msra.mxu1 %v4782_v36  ;;  %v1187_v35 = vld [vmem:[#allocation11 + $0x798] sm:$0xff]  ;;  %v4674_v36 = vpack.c.bf16 %v1152_v23, %v1136_v27  ;;  %v4818_v27 = vpack.c.bf16 %v1282_v20, %v1266_v19  ;;  %v1296_v23 = vld [vmem:[#allocation11 + $0xb00] sm:$0xff] }
 0x1e5   :  { %4657 = vmatprep.subr.bf16.mxu0 %v4656_v39  ;;  %4785 = vmatprep.subr.bf16.mxu1 %v4784_v40  ;;  %v1184_v39 = vld [vmem:[#allocation11 + $0x780] sm:$0xff]  ;;  %v4676_v40 = vpack.c.bf16 %v1185_v33, %v1169_v32  ;;  %v4804_v45 = vpack.c.bf16 %v1187_v35, %v1171_v34  ;;  %v1314_v32 = vld [vmem:[#allocation11 + $0xb90] sm:$0xff]  ;;  %v1329_v33 = vld [vmem:[#allocation11 + $0xc08] sm:$0xff] }
 0x1e6   :  { %v1345_v34 = vld [vmem:[#allocation11 + $0xc88] sm:$0xff]  ;;  %v1331_v35 = vld [vmem:[#allocation11 + $0xc18] sm:$0xff] }
 0x1e8   :  { %4659 = vmatpush1.bf16.msra.mxu0 %v4658_v52  ;;  %4787 = vmatpush1.bf16.msra.mxu1 %v4786_v53  ;;  %v1219_v52 = vld [vmem:[#allocation11 + $0x898] sm:$0xff]  ;;  %v4678_v53 = vpack.c.bf16 %v1184_v39, %v1168_v38  ;;  %v4822_v38 = vpack.c.bf16 %v1314_v32, %v1298_v31  ;;  %v1328_v39 = vld [vmem:[#allocation11 + $0xc00] sm:$0xff] }
 0x1e9   :  { %4661 = vmatprep.subr.bf16.mxu0 %v4660_v56  ;;  %4789 = vmatprep.subr.bf16.mxu1 %v4788_v57  ;;  %v1216_v56 = vld [vmem:[#allocation11 + $0x880] sm:$0xff]  ;;  %v4680_v57 = vpack.c.bf16 %v1217_v49, %v1201_v48  ;;  %v4808_v58 = vpack.c.bf16 %v1219_v52, %v1203_v50  ;;  %v1346_v48 = vld [vmem:[#allocation11 + $0xc90] sm:$0xff]  ;;  %v1361_v49 = vld [vmem:[#allocation11 + $0xd08] sm:$0xff] }
 0x1ea   :  { %v1377_v50 = vld [vmem:[#allocation11 + $0xd88] sm:$0xff]  ;;  %v1363_v52 = vld [vmem:[#allocation11 + $0xd18] sm:$0xff] }
 0x1ec   :  { %4663 = vmatpush1.bf16.msra.mxu0 %v4662_v0  ;;  %4791 = vmatpush1.bf16.msra.mxu1 %v4790_v1  ;;  %v1251_v0 = vld [vmem:[#allocation11 + $0x998] sm:$0xff]  ;;  %v4682_v1 = vpack.c.bf16 %v1216_v56, %v1200_v55  ;;  %v4826_v55 = vpack.c.bf16 %v1346_v48, %v1330_v47  ;;  %v1360_v56 = vld [vmem:[#allocation11 + $0xd00] sm:$0xff]  ;;  %v1489_v48 = vld [vmem:[#allocation11 + $0x1108] sm:$0xff] }
 0x1ed   :  { %4665 = vmatprep.subr.bf16.mxu0 %v4664_v4  ;;  %4793 = vmatprep.subr.bf16.mxu1 %v4792_v5  ;;  %v1248_v4 = vld [vmem:[#allocation11 + $0x980] sm:$0xff]  ;;  %v4684_v5 = vpack.c.bf16 %v1249_v62, %v1233_v61  ;;  %v4812_v7 = vpack.c.bf16 %v1251_v0, %v1235_v63  ;;  %v1378_v61 = vld [vmem:[#allocation11 + $0xd90] sm:$0xff]  ;;  %v1393_v62 = vld [vmem:[#allocation11 + $0xe08] sm:$0xff] }
 0x1ee   :  { %v1409_v63 = vld [vmem:[#allocation11 + $0xe88] sm:$0xff]  ;;  %v1395_v0 = vld [vmem:[#allocation11 + $0xe18] sm:$0xff] }
 0x1f0   :  { %4667 = vmatpush1.bf16.msra.mxu0 %v4666_v13  ;;  %4795 = vmatpush1.bf16.msra.mxu1 %v4794_v14  ;;  %v1283_v13 = vld [vmem:[#allocation11 + $0xa98] sm:$0xff]  ;;  %v4686_v14 = vpack.c.bf16 %v1248_v4, %v1232_v3  ;;  %v4830_v3 = vpack.c.bf16 %v1378_v61, %v1362_v60  ;;  %v1392_v4 = vld [vmem:[#allocation11 + $0xe00] sm:$0xff]  ;;  %v1490_v60 = vld [vmem:[#allocation11 + $0x1110] sm:$0xff] }
 0x1f1   :  { %4669 = vmatprep.subr.bf16.mxu0 %v4668_v16  ;;  %4797 = vmatprep.subr.bf16.mxu1 %v4796_v17  ;;  %v1280_v16 = vld [vmem:[#allocation11 + $0xa80] sm:$0xff]  ;;  %v4688_v17 = vpack.c.bf16 %v1281_v11, %v1265_v10  ;;  %v4816_v18 = vpack.c.bf16 %v1283_v13, %v1267_v12  ;;  %v1410_v10 = vld [vmem:[#allocation11 + $0xe90] sm:$0xff]  ;;  %v4706_v11 = vpack.c.bf16 %v1408_v8, %v1392_v4  ;;  %v1425_v13 = vld [vmem:[#allocation11 + $0xf08] sm:$0xff] }
 0x1f2   :  { %v4834_v12 = vpack.c.bf16 %v1410_v10, %v1394_v9  ;;  %v1506_v61 = vld [vmem:[#allocation11 + $0x1190] sm:$0xff]  ;;  %v1520_v8 = vld [vmem:[#allocation11 + $0x1200] sm:$0xff] }
 0x1f3   :  { %v1536_v9 = vld [vmem:[#allocation11 + $0x1280] sm:$0xff] }
 0x1f4   :  { %4671 = vmatpush1.bf16.msra.mxu0 %v4670_v25  ;;  %4799 = vmatpush1.bf16.msra.mxu1 %v4798_v26  ;;  %v1315_v25 = vld [vmem:[#allocation11 + $0xb98] sm:$0xff]  ;;  %v4690_v26 = vpack.c.bf16 %v1280_v16, %v1264_v15 }
 0x1f5   :  { %4673 = vmatprep.subr.bf16.mxu0 %v4672_v28  ;;  %4801 = vmatprep.subr.bf16.mxu1 %v4800_v29  ;;  %v1312_v28 = vld [vmem:[#allocation11 + $0xb80] sm:$0xff]  ;;  %v4692_v29 = vpack.c.bf16 %v1313_v22, %v1297_v21  ;;  %v4820_v30 = vpack.c.bf16 %v1315_v25, %v1299_v24  ;;  %v1443_v16 = vld [vmem:[#allocation11 + $0xf98] sm:$0xff]  ;;  %v1426_v21 = vld [vmem:[#allocation11 + $0xf10] sm:$0xff] }
 0x1f6   :  { %v1442_v22 = vld [vmem:[#allocation11 + $0xf90] sm:$0xff]  ;;  %v1457_v25 = vld [vmem:[#allocation11 + $0x1008] sm:$0xff] }
 0x1f7   :  { %v4838_v24 = vpack.c.bf16 %v1442_v22, %v1426_v21 }
 0x1f8   :  { %4675 = vmatpush1.bf16.msra.mxu0 %v4674_v36  ;;  %4803 = vmatpush1.bf16.msra.mxu1 %v4802_v37  ;;  %v1347_v36 = vld [vmem:[#allocation11 + $0xc98] sm:$0xff]  ;;  %v4694_v37 = vpack.c.bf16 %v1312_v28, %v1296_v23 }
 0x1f9   :  { %4677 = vmatprep.subr.bf16.mxu0 %v4676_v40  ;;  %4805 = vmatprep.subr.bf16.mxu1 %v4804_v45  ;;  %v1344_v40 = vld [vmem:[#allocation11 + $0xc80] sm:$0xff]  ;;  %v4696_v45 = vpack.c.bf16 %v1345_v34, %v1329_v33  ;;  %v4824_v46 = vpack.c.bf16 %v1347_v36, %v1331_v35  ;;  %v1475_v28 = vld [vmem:[#allocation11 + $0x1098] sm:$0xff] }
 0x1fa   :  { %v1456_v36 = vld [vmem:[#allocation11 + $0x1000] sm:$0xff] }
 0x1fc   :  { %4679 = vmatpush1.bf16.msra.mxu0 %v4678_v53  ;;  %4807 = vmatpush1.bf16.msra.mxu1 %v4806_v54  ;;  %v1379_v53 = vld [vmem:[#allocation11 + $0xd98] sm:$0xff]  ;;  %v4698_v54 = vpack.c.bf16 %v1344_v40, %v1328_v39  ;;  %v1472_v40 = vld [vmem:[#allocation11 + $0x1080] sm:$0xff] }
 0x1fd   :  { %4681 = vmatprep.subr.bf16.mxu0 %v4680_v57  ;;  %4809 = vmatprep.subr.bf16.mxu1 %v4808_v58  ;;  %v1376_v57 = vld [vmem:[#allocation11 + $0xd80] sm:$0xff]  ;;  %v4700_v58 = vpack.c.bf16 %v1377_v50, %v1361_v49  ;;  %v4828_v59 = vpack.c.bf16 %v1379_v53, %v1363_v52  ;;  %v1505_v50 = vld [vmem:[#allocation11 + $0x1188] sm:$0xff]  ;;  %v1491_v52 = vld [vmem:[#allocation11 + $0x1118] sm:$0xff] }
 0x1fe   :  { %v1507_v53 = vld [vmem:[#allocation11 + $0x1198] sm:$0xff] }
 0x200   :  { %4683 = vmatpush1.bf16.msra.mxu0 %v4682_v1  ;;  %4811 = vmatpush1.bf16.msra.mxu1 %v4810_v2  ;;  %v1411_v1 = vld [vmem:[#allocation11 + $0xe98] sm:$0xff]  ;;  %v4702_v2 = vpack.c.bf16 %v1376_v57, %v1360_v56  ;;  %v1488_v57 = vld [vmem:[#allocation11 + $0x1100] sm:$0xff] }
 0x201   :  { %4685 = vmatprep.subr.bf16.mxu0 %v4684_v5  ;;  %4813 = vmatprep.subr.bf16.mxu1 %v4812_v7  ;;  %v4704_v5 = vpack.c.bf16 %v1409_v63, %v1393_v62  ;;  %v4832_v7 = vpack.c.bf16 %v1411_v1, %v1395_v0  ;;  %v1521_v62 = vld [vmem:[#allocation11 + $0x1208] sm:$0xff]  ;;  %v4716_v63 = vpack.c.bf16 %v1505_v50, %v1489_v48  ;;  %v1632_v50 = vld [vmem:[#allocation11 + $0x1580] sm:$0xff] }
 0x202   :  { %v4844_v0 = vpack.c.bf16 %v1507_v53, %v1491_v52  ;;  %v1537_v1 = vld [vmem:[#allocation11 + $0x1288] sm:$0xff] }
 0x203   :  { %v4720_v10 = vpack.c.bf16 %v1537_v1, %v1521_v62  ;;  %v1664_v1 = vld [vmem:[#allocation11 + $0x1680] sm:$0xff] }
 0x204   :  { %4687 = vmatpush1.bf16.msra.mxu0 %v4686_v14  ;;  %4815 = vmatpush1.bf16.msra.mxu1 %v4814_v43  ;;  %v1441_v14 = vld [vmem:[#allocation11 + $0xf88] sm:$0xff]  ;;  %v1427_v43 = vld [vmem:[#allocation11 + $0xf18] sm:$0xff] }
 0x205   :  { %4689 = vmatprep.subr.bf16.mxu0 %v4688_v17  ;;  %4817 = vmatprep.subr.bf16.mxu1 %v4816_v18  ;;  %v4708_v15 = vpack.c.bf16 %v1441_v14, %v1425_v13  ;;  %v1424_v17 = vld [vmem:[#allocation11 + $0xf00] sm:$0xff]  ;;  %v4836_v19 = vpack.c.bf16 %v1443_v16, %v1427_v43  ;;  %v1538_v13 = vld [vmem:[#allocation11 + $0x1290] sm:$0xff]  ;;  %v1553_v14 = vld [vmem:[#allocation11 + $0x1308] sm:$0xff] }
 0x206   :  { %v1440_v18 = vld [vmem:[#allocation11 + $0xf80] sm:$0xff]  ;;  %v1569_v43 = vld [vmem:[#allocation11 + $0x1388] sm:$0xff]  ;;  %v1571_v16 = vld [vmem:[#allocation11 + $0x1398] sm:$0xff] }
 0x207   :  { %v4710_v20 = vpack.c.bf16 %v1440_v18, %v1424_v17  ;;  %v4722_v17 = vpack.c.bf16 %v1536_v9, %v1520_v8  ;;  %v4724_v21 = vpack.c.bf16 %v1569_v43, %v1553_v14  ;;  %v1681_v8 = vld [vmem:[#allocation11 + $0x1708] sm:$0xff]  ;;  %v1680_v14 = vld [vmem:[#allocation11 + $0x1700] sm:$0xff] }
 0x208   :  { %4691 = vmatpush1.bf16.msra.mxu0 %v4690_v26  ;;  %4819 = vmatpush1.bf16.msra.mxu1 %v4818_v27  ;;  %v1473_v26 = vld [vmem:[#allocation11 + $0x1088] sm:$0xff]  ;;  %v1459_v27 = vld [vmem:[#allocation11 + $0x1018] sm:$0xff]  ;;  %v1696_v43 = vld [vmem:[#allocation11 + $0x1780] sm:$0xff] }
 0x209   :  { %4693 = vmatprep.subr.bf16.mxu0 %v4692_v29  ;;  %4821 = vmatprep.subr.bf16.mxu1 %v4820_v30  ;;  %v4712_v23 = vpack.c.bf16 %v1473_v26, %v1457_v25  ;;  %v4840_v29 = vpack.c.bf16 %v1475_v28, %v1459_v27  ;;  %v6421_v30 = vld [vmem:[#allocation10] sm:$0xf]  ;;  %v1570_v25 = vld [vmem:[#allocation11 + $0x1390] sm:$0xff]  ;;  %v1585_v26 = vld [vmem:[#allocation11 + $0x1408] sm:$0xff] }
 0x20a   :  { %v639_v31 = vrot.slane %v6421_v30, %v6397_v42  ;;  %v643_v32 = vrot.slane %v6421_v30, %v6402_v44  ;;  %v651_v33 = vrot.slane %v6421_v30, %v6409_v6  ;;  %v1601_v27 = vld [vmem:[#allocation11 + $0x1488] sm:$0xff]  ;;  %v1603_v28 = vld [vmem:[#allocation11 + $0x1498] sm:$0xff] }
 0x20b   :  { %v1697_v9 = vld [vmem:[#allocation11 + $0x1788] sm:$0xff] }
 0x20c   :  { %4695 = vmatpush1.bf16.msra.mxu0 %v4694_v37  ;;  %4823 = vmatpush1.bf16.msra.mxu1 %v4822_v38 }
 0x20d   :  { %4697 = vmatprep.subr.bf16.mxu0 %v4696_v45  ;;  %4825 = vmatprep.subr.bf16.mxu1 %v4824_v46  ;;  %v1458_v45 = vld [vmem:[#allocation11 + $0x1010] sm:$0xff] }
 0x20e   :  { %v1474_v46 = vld [vmem:[#allocation11 + $0x1090] sm:$0xff] }
 0x20f   :  { %v4842_v56 = vpack.c.bf16 %v1474_v46, %v1458_v45  ;;  %v1619_v45 = vld [vmem:[#allocation11 + $0x1518] sm:$0xff] }
 0x210   :  { %4699 = vmatpush1.bf16.msra.mxu0 %v4698_v54  ;;  %4827 = vmatpush1.bf16.msra.mxu1 %v4826_v55  ;;  %v4714_v55 = vpack.c.bf16 %v1472_v40, %v1456_v36  ;;  %v1633_v40 = vld [vmem:[#allocation11 + $0x1588] sm:$0xff]  ;;  %v1635_v46 = vld [vmem:[#allocation11 + $0x1598] sm:$0xff] }
 0x211   :  { %4701 = vmatprep.subr.bf16.mxu0 %v4700_v58  ;;  %4829 = vmatprep.subr.bf16.mxu1 %v4828_v59  ;;  %v1504_v58 = vld [vmem:[#allocation11 + $0x1180] sm:$0xff]  ;;  %v4860_v53 = vpack.c.bf16 %v1635_v46, %v1619_v45 }
 0x214   :  { %4703 = vmatpush1.bf16.msra.mxu0 %v4702_v2  ;;  %4831 = vmatpush1.bf16.msra.mxu1 %v4830_v3  ;;  %v1523_v2 = vld [vmem:[#allocation11 + $0x1218] sm:$0xff] }
 0x215   :  { %4705 = vmatprep.subr.bf16.mxu0 %v4704_v5  ;;  %4833 = vmatprep.subr.bf16.mxu1 %v4832_v7  ;;  %v1539_v3 = vld [vmem:[#allocation11 + $0x1298] sm:$0xff]  ;;  %v4718_v5 = vpack.c.bf16 %v1504_v58, %v1488_v57  ;;  %v4846_v7 = vpack.c.bf16 %v1506_v61, %v1490_v60  ;;  %v1649_v57 = vld [vmem:[#allocation11 + $0x1608] sm:$0xff] }
 0x216   :  { %v1665_v58 = vld [vmem:[#allocation11 + $0x1688] sm:$0xff]  ;;  %v1651_v60 = vld [vmem:[#allocation11 + $0x1618] sm:$0xff] }
 0x217   :  { %v1667_v61 = vld [vmem:[#allocation11 + $0x1698] sm:$0xff] }
 0x218   :  { %4707 = vmatpush1.bf16.msra.mxu0 %v4706_v11  ;;  %4835 = vmatpush1.bf16.msra.mxu1 %v4834_v12  ;;  %v4848_v11 = vpack.c.bf16 %v1539_v3, %v1523_v2  ;;  %v1522_v12 = vld [vmem:[#allocation11 + $0x1210] sm:$0xff]  ;;  %v4736_v2 = vpack.c.bf16 %v1665_v58, %v1649_v57  ;;  %v4864_v3 = vpack.c.bf16 %v1667_v61, %v1651_v60  ;;  %v1776_v57 = vld [vmem:[#allocation11 + $0x1a00] sm:$0xff] }
 0x219   :  { %4709 = vmatprep.subr.bf16.mxu0 %v4708_v15  ;;  %4837 = vmatprep.subr.bf16.mxu1 %v4836_v19  ;;  %v1555_v15 = vld [vmem:[#allocation11 + $0x1318] sm:$0xff]  ;;  %v4850_v18 = vpack.c.bf16 %v1538_v13, %v1522_v12  ;;  %v1552_v19 = vld [vmem:[#allocation11 + $0x1300] sm:$0xff] }
 0x21a   :  { %v4852_v22 = vpack.c.bf16 %v1571_v16, %v1555_v15  ;;  %v4740_v15 = vpack.c.bf16 %v1697_v9, %v1681_v8  ;;  %v1792_v58 = vld [vmem:[#allocation11 + $0x1a80] sm:$0xff] }
 0x21b   :  { %v1808_v8 = vld [vmem:[#allocation11 + $0x1b00] sm:$0xff] }
 0x21c   :  { %4711 = vmatpush1.bf16.msra.mxu0 %v4710_v20  ;;  %4839 = vmatpush1.bf16.msra.mxu1 %v4838_v24  ;;  %v1568_v20 = vld [vmem:[#allocation11 + $0x1380] sm:$0xff]  ;;  %v1554_v24 = vld [vmem:[#allocation11 + $0x1310] sm:$0xff] }
 0x21d   :  { %4713 = vmatprep.subr.bf16.mxu0 %v4712_v23  ;;  %4841 = vmatprep.subr.bf16.mxu1 %v4840_v29  ;;  %v1587_v23 = vld [vmem:[#allocation11 + $0x1418] sm:$0xff]  ;;  %v4726_v29 = vpack.c.bf16 %v1568_v20, %v1552_v19  ;;  %v1713_v19 = vld [vmem:[#allocation11 + $0x1808] sm:$0xff]  ;;  %v1824_v9 = vld [vmem:[#allocation11 + $0x1b80] sm:$0xff] }
 0x21e   :  { %v4856_v36 = vpack.c.bf16 %v1603_v28, %v1587_v23  ;;  %v1729_v20 = vld [vmem:[#allocation11 + $0x1888] sm:$0xff] }
 0x21f   :  { %v4744_v23 = vpack.c.bf16 %v1729_v20, %v1713_v19  ;;  %v1840_v19 = vld [vmem:[#allocation11 + $0x1c00] sm:$0xff] }
 0x220   :  { %v1856_v20 = vld [vmem:[#allocation11 + $0x1c80] sm:$0xff] }
 0x2b2   :  { %v793_v34 = vpop.f32.mrb[2].mxu0  ;;  %v6429_v35 = vpop.f32.mrb[2].mxu1 }
 0x2b3   :  { %v5928_v37 = vadd.f32 %v793_v34, %v639_v31  ;;  %v795_v38 = vpop.f32.mrb[3].mxu0  ;;  %v937_v39 = vpop.f32.mrb[3].mxu1  ;;  %v4854_v31 = vpack.c.bf16 %v1570_v25, %v1554_v24  ;;  %v4728_v34 = vpack.c.bf16 %v1601_v27, %v1585_v26  ;;  %v4742_v24 = vpack.c.bf16 %v1696_v43, %v1680_v14  ;;  %v1712_v26 = vld [vmem:[#allocation11 + $0x1800] sm:$0xff]  ;;  %v1841_v14 = vld [vmem:[#allocation11 + $0x1c08] sm:$0xff] }
 0x2b4   :  { %v5929_v47 = vadd.f32 %v795_v38, %v643_v32  ;;  %v5931_v49 = vadd.f32 %v937_v39, %v651_v33  ;;  %v1584_v32 = vld [vmem:[#allocation11 + $0x1400] sm:$0xff]  ;;  %v1602_v38 = vld [vmem:[#allocation11 + $0x1490] sm:$0xff]  ;;  %v1617_v39 = vld [vmem:[#allocation11 + $0x1508] sm:$0xff] }
 0x2b5   :  { %v6433_v59 = vmax.f32 %v5928_v37, 0.0  ;;  %v1600_v33 = vld [vmem:[#allocation11 + $0x1480] sm:$0xff]  ;;  %v1586_v37 = vld [vmem:[#allocation11 + $0x1410] sm:$0xff]  ;;  %v4732_v52 = vpack.c.bf16 %v1633_v40, %v1617_v39  ;;  %v1857_v43 = vld [vmem:[#allocation11 + $0x1c88] sm:$0xff] }
 0x2b6   :  { %v6431_v54 = vmax.f32 %v5929_v47, 0.0  ;;  %v6437_v4 = vmax.f32 %v5931_v49, 0.0  ;;  %v4730_v47 = vpack.c.bf16 %v1600_v33, %v1584_v32  ;;  %v4858_v48 = vpack.c.bf16 %v1602_v38, %v1586_v37  ;;  %v1616_v49 = vld [vmem:[#allocation11 + $0x1500] sm:$0xff]  ;;  %v1745_v32 = vld [vmem:[#allocation11 + $0x1908] sm:$0xff] }
 0x2b7   :  { %v4734_v62 = vpack.c.bf16 %v1632_v50, %v1616_v49  ;;  %v1728_v27 = vld [vmem:[#allocation11 + $0x1880] sm:$0xff]  ;;  %v1761_v33 = vld [vmem:[#allocation11 + $0x1988] sm:$0xff] }
 0x2b8   :  { %2116 = vmatprep.mubr.f32.mxu0 %v6431_v54  ;;  %2258 = vmatprep.mubr.f32.mxu1 %v6431_v54  ;;  %v4746_v37 = vpack.c.bf16 %v1728_v27, %v1712_v26  ;;  %v1744_v39 = vld [vmem:[#allocation11 + $0x1900] sm:$0xff]  ;;  %v4748_v45 = vpack.c.bf16 %v1761_v33, %v1745_v32  ;;  %v1777_v49 = vld [vmem:[#allocation11 + $0x1a08] sm:$0xff] }
 0x2b9   :  { %2117 = vmatmul.mubr.f32.vlgmr.msra.gmra.mrb[4].mxu0 %v6433_v59  ;;  %2259 = vmatmul.mubr.f32.vlgmr.msra.gmra.mrb[4].mxu1 %v6433_v59  ;;  %v1760_v40 = vld [vmem:[#allocation11 + $0x1980] sm:$0xff]  ;;  %v1793_v50 = vld [vmem:[#allocation11 + $0x1a88] sm:$0xff] }
 0x2ba   :  { %4715 = vmatpush1.bf16.msra.mxu0 %v4714_v55  ;;  %4843 = vmatpush1.bf16.msra.mxu1 %v4842_v56  ;;  %v1618_v55 = vld [vmem:[#allocation11 + $0x1510] sm:$0xff]  ;;  %v4752_v60 = vpack.c.bf16 %v1793_v50, %v1777_v49  ;;  %v1873_v26 = vld [vmem:[#allocation11 + $0x1d08] sm:$0xff]  ;;  %v1872_v32 = vld [vmem:[#allocation11 + $0x1d00] sm:$0xff] }
 0x2bb   :  { %2187 = vmatprep.mubr.f32.mxu0 %v6437_v4  ;;  %2329 = vmatprep.mubr.f32.mxu1 %v6437_v4  ;;  %v1634_v56 = vld [vmem:[#allocation11 + $0x1590] sm:$0xff]  ;;  %v1889_v27 = vld [vmem:[#allocation11 + $0x1d88] sm:$0xff]  ;;  %v1888_v33 = vld [vmem:[#allocation11 + $0x1d80] sm:$0xff] }
 0x2bc   :  { %4717 = vmatprep.subr.bf16.mxu0 %v4716_v63  ;;  %4845 = vmatprep.subr.bf16.mxu1 %v4844_v0  ;;  %v4862_v63 = vpack.c.bf16 %v1634_v56, %v1618_v55  ;;  %v1648_v0 = vld [vmem:[#allocation11 + $0x1600] sm:$0xff]  ;;  %v4750_v55 = vpack.c.bf16 %v1760_v40, %v1744_v39  ;;  %v1905_v39 = vld [vmem:[#allocation11 + $0x1e08] sm:$0xff] }
 0x2bd   :  { %v4738_v12 = vpack.c.bf16 %v1664_v1, %v1648_v0  ;;  %v1809_v0 = vld [vmem:[#allocation11 + $0x1b08] sm:$0xff]  ;;  %v1904_v49 = vld [vmem:[#allocation11 + $0x1e00] sm:$0xff] }
 0x2be   :  { %4719 = vmatpush1.bf16.msra.mxu0 %v4718_v5  ;;  %4847 = vmatpush1.bf16.msra.mxu1 %v4846_v7  ;;  %v1650_v5 = vld [vmem:[#allocation11 + $0x1610] sm:$0xff]  ;;  %v1825_v1 = vld [vmem:[#allocation11 + $0x1b88] sm:$0xff]  ;;  %v1920_v50 = vld [vmem:[#allocation11 + $0x1e80] sm:$0xff] }
 0x2bf   :  { %4721 = vmatprep.subr.bf16.mxu0 %v4720_v10  ;;  %4849 = vmatprep.subr.bf16.mxu1 %v4848_v11  ;;  %v1666_v7 = vld [vmem:[#allocation11 + $0x1690] sm:$0xff]  ;;  %v1683_v10 = vld [vmem:[#allocation11 + $0x1718] sm:$0xff]  ;;  %v1921_v40 = vld [vmem:[#allocation11 + $0x1e88] sm:$0xff] }
 0x2c0   :  { %v1699_v11 = vld [vmem:[#allocation11 + $0x1798] sm:$0xff]  ;;  %v4866_v13 = vpack.c.bf16 %v1666_v7, %v1650_v5  ;;  %v4754_v5 = vpack.c.bf16 %v1792_v58, %v1776_v57  ;;  %v1937_v57 = vld [vmem:[#allocation11 + $0x1f08] sm:$0xff] }
 0x2c1   :  { %v4868_v16 = vpack.c.bf16 %v1699_v11, %v1683_v10  ;;  %v4756_v10 = vpack.c.bf16 %v1825_v1, %v1809_v0  ;;  %v1953_v58 = vld [vmem:[#allocation11 + $0x1f88] sm:$0xff]  ;;  %v1936_v0 = vld [vmem:[#allocation11 + $0x1f00] sm:$0xff] }
 0x2c2   :  { %4723 = vmatpush1.bf16.msra.mxu0 %v4722_v17  ;;  %4851 = vmatpush1.bf16.msra.mxu1 %v4850_v18  ;;  %v1682_v17 = vld [vmem:[#allocation11 + $0x1710] sm:$0xff]  ;;  %v1952_v1 = vld [vmem:[#allocation11 + $0x1f80] sm:$0xff] }
 0x2c3   :  { %4725 = vmatprep.subr.bf16.mxu0 %v4724_v21  ;;  %4853 = vmatprep.subr.bf16.mxu1 %v4852_v22  ;;  %v1698_v18 = vld [vmem:[#allocation11 + $0x1790] sm:$0xff]  ;;  %v1715_v21 = vld [vmem:[#allocation11 + $0x1818] sm:$0xff] }
 0x2c4   :  { %v1731_v22 = vld [vmem:[#allocation11 + $0x1898] sm:$0xff]  ;;  %v4870_v25 = vpack.c.bf16 %v1698_v18, %v1682_v17  ;;  %v4758_v17 = vpack.c.bf16 %v1824_v9, %v1808_v8  ;;  %v1954_v8 = vld [vmem:[#allocation11 + $0x1f90] sm:$0xff]  ;;  %v949_v9 = vld [vmem:[#allocation11 + $0x28] sm:$0xff] }
 0x2c5   :  { %v4872_v28 = vpack.c.bf16 %v1731_v22, %v1715_v21  ;;  %v4760_v21 = vpack.c.bf16 %v1857_v43, %v1841_v14 }
 0x2c6   :  { %4727 = vmatpush1.bf16.msra.mxu0 %v4726_v29  ;;  %4855 = vmatpush1.bf16.msra.mxu1 %v4854_v31  ;;  %v1714_v29 = vld [vmem:[#allocation11 + $0x1810] sm:$0xff] }
 0x2c7   :  { %4729 = vmatprep.subr.bf16.mxu0 %v4728_v34  ;;  %4857 = vmatprep.subr.bf16.mxu1 %v4856_v36  ;;  %v1730_v31 = vld [vmem:[#allocation11 + $0x1890] sm:$0xff]  ;;  %v1747_v34 = vld [vmem:[#allocation11 + $0x1918] sm:$0xff] }
 0x2c8   :  { %v1763_v36 = vld [vmem:[#allocation11 + $0x1998] sm:$0xff]  ;;  %v4874_v38 = vpack.c.bf16 %v1730_v31, %v1714_v29  ;;  %v4762_v29 = vpack.c.bf16 %v1856_v20, %v1840_v19  ;;  %v966_v19 = vld [vmem:[#allocation11 + $0xb0] sm:$0xff]  ;;  %v981_v20 = vld [vmem:[#allocation11 + $0x128] sm:$0xff] }
 0x2c9   :  { %v4876_v46 = vpack.c.bf16 %v1763_v36, %v1747_v34  ;;  %v4764_v34 = vpack.c.bf16 %v1889_v27, %v1873_v26  ;;  %v980_v27 = vld [vmem:[#allocation11 + $0x120] sm:$0xff] }
 0x2ca   :  { %4731 = vmatpush1.bf16.msra.mxu0 %v4730_v47  ;;  %4859 = vmatpush1.bf16.msra.mxu1 %v4858_v48  ;;  %v1746_v47 = vld [vmem:[#allocation11 + $0x1910] sm:$0xff] }
 0x2cb   :  { %4733 = vmatprep.subr.bf16.mxu0 %v4732_v52  ;;  %4861 = vmatprep.subr.bf16.mxu1 %v4860_v53  ;;  %v1762_v48 = vld [vmem:[#allocation11 + $0x1990] sm:$0xff]  ;;  %v1779_v52 = vld [vmem:[#allocation11 + $0x1a18] sm:$0xff] }
 0x2cc   :  { %v1795_v53 = vld [vmem:[#allocation11 + $0x1a98] sm:$0xff]  ;;  %v4878_v56 = vpack.c.bf16 %v1762_v48, %v1746_v47  ;;  %v4766_v47 = vpack.c.bf16 %v1888_v33, %v1872_v32  ;;  %v998_v32 = vld [vmem:[#allocation11 + $0x1b0] sm:$0xff]  ;;  %v1013_v33 = vld [vmem:[#allocation11 + $0x228] sm:$0xff] }
 0x2cd   :  { %v4880_v61 = vpack.c.bf16 %v1795_v53, %v1779_v52  ;;  %v4768_v52 = vpack.c.bf16 %v1921_v40, %v1905_v39 }
 0x2ce   :  { %4735 = vmatpush1.bf16.msra.mxu0 %v4734_v62  ;;  %4863 = vmatpush1.bf16.msra.mxu1 %v4862_v63  ;;  %v1778_v62 = vld [vmem:[#allocation11 + $0x1a10] sm:$0xff] }
 0x2cf   :  { %4737 = vmatprep.subr.bf16.mxu0 %v4736_v2  ;;  %4865 = vmatprep.subr.bf16.mxu1 %v4864_v3  ;;  %v1794_v63 = vld [vmem:[#allocation11 + $0x1a90] sm:$0xff]  ;;  %v1811_v2 = vld [vmem:[#allocation11 + $0x1b18] sm:$0xff] }
 0x2d0   :  { %v1827_v3 = vld [vmem:[#allocation11 + $0x1b98] sm:$0xff]  ;;  %v4882_v7 = vpack.c.bf16 %v1794_v63, %v1778_v62  ;;  %v4770_v62 = vpack.c.bf16 %v1920_v50, %v1904_v49  ;;  %v1030_v49 = vld [vmem:[#allocation11 + $0x2b0] sm:$0xff]  ;;  %v1045_v50 = vld [vmem:[#allocation11 + $0x328] sm:$0xff] }
 0x2d1   :  { %v4884_v11 = vpack.c.bf16 %v1827_v3, %v1811_v2  ;;  %v647_v2 = vrot.slane %v6421_v30, %v6416_v51  ;;  %v4772_v3 = vpack.c.bf16 %v1953_v58, %v1937_v57 }
 0x2d2   :  { %4739 = vmatpush1.bf16.msra.mxu0 %v4738_v12  ;;  %4867 = vmatpush1.bf16.msra.mxu1 %v4866_v13  ;;  %v1810_v12 = vld [vmem:[#allocation11 + $0x1b10] sm:$0xff] }
 0x2d3   :  { %4741 = vmatprep.subr.bf16.mxu0 %v4740_v15  ;;  %4869 = vmatprep.subr.bf16.mxu1 %v4868_v16  ;;  %v1826_v13 = vld [vmem:[#allocation11 + $0x1b90] sm:$0xff]  ;;  %v1843_v15 = vld [vmem:[#allocation11 + $0x1c18] sm:$0xff]  ;;  %v5930_v43 = vadd.f32 %v6429_v35, %v647_v2  ;;  %v1093_v2 = vld [vmem:[#allocation11 + $0x4a8] sm:$0xff] }
 0x2d4   :  { %v1859_v16 = vld [vmem:[#allocation11 + $0x1c98] sm:$0xff]  ;;  %v4886_v18 = vpack.c.bf16 %v1826_v13, %v1810_v12  ;;  %v4774_v13 = vpack.c.bf16 %v1952_v1, %v1936_v0  ;;  %v1062_v0 = vld [vmem:[#allocation11 + $0x3b0] sm:$0xff]  ;;  %v1077_v1 = vld [vmem:[#allocation11 + $0x428] sm:$0xff] }
 0x2d5   :  { %v4888_v22 = vpack.c.bf16 %v1859_v16, %v1843_v15  ;;  %v967_v12 = vld [vmem:[#allocation11 + $0xb8] sm:$0xff]  ;;  %v948_v16 = vld [vmem:[#allocation11 + $0x20] sm:$0xff]  ;;  %v6446_v26 = vmax.f32 %v5930_v43, 0.0  ;;  %v1109_v43 = vld [vmem:[#allocation11 + $0x528] sm:$0xff] }
 0x2d6   :  { %4743 = vmatpush1.bf16.msra.mxu0 %v4742_v24  ;;  %4871 = vmatpush1.bf16.msra.mxu1 %v4870_v25  ;;  %v1842_v24 = vld [vmem:[#allocation11 + $0x1c10] sm:$0xff] }
 0x2d7   :  { %4745 = vmatprep.subr.bf16.mxu0 %v4744_v23  ;;  %4873 = vmatprep.subr.bf16.mxu1 %v4872_v28  ;;  %v1858_v25 = vld [vmem:[#allocation11 + $0x1c90] sm:$0xff]  ;;  %v1875_v23 = vld [vmem:[#allocation11 + $0x1d18] sm:$0xff] }
 0x2d8   :  { %v1891_v28 = vld [vmem:[#allocation11 + $0x1d98] sm:$0xff]  ;;  %v4890_v31 = vpack.c.bf16 %v1858_v25, %v1842_v24 }
 0x2d9   :  { %v4892_v36 = vpack.c.bf16 %v1891_v28, %v1875_v23  ;;  %v999_v24 = vld [vmem:[#allocation11 + $0x1b8] sm:$0xff]  ;;  %v996_v23 = vld [vmem:[#allocation11 + $0x1a0] sm:$0xff]  ;;  %v982_v28 = vld [vmem:[#allocation11 + $0x130] sm:$0xff] }
 0x2da   :  { %4747 = vmatpush1.bf16.msra.mxu0 %v4746_v37  ;;  %4875 = vmatpush1.bf16.msra.mxu1 %v4874_v38  ;;  %v1874_v37 = vld [vmem:[#allocation11 + $0x1d10] sm:$0xff]  ;;  %v5038_v39 = vpack.c.bf16 %v998_v32, %v982_v28  ;;  %v1159_v28 = vld [vmem:[#allocation11 + $0x6b8] sm:$0xff] }
 0x2db   :  { %4749 = vmatprep.subr.bf16.mxu0 %v4748_v45  ;;  %4877 = vmatprep.subr.bf16.mxu1 %v4876_v46  ;;  %v1890_v38 = vld [vmem:[#allocation11 + $0x1d90] sm:$0xff]  ;;  %v1907_v45 = vld [vmem:[#allocation11 + $0x1e18] sm:$0xff] }
 0x2dc   :  { %v1923_v46 = vld [vmem:[#allocation11 + $0x1e98] sm:$0xff]  ;;  %v4894_v48 = vpack.c.bf16 %v1890_v38, %v1874_v37  ;;  %v4910_v38 = vpack.c.bf16 %v996_v23, %v980_v27  ;;  %v1157_v27 = vld [vmem:[#allocation11 + $0x6a8] sm:$0xff] }
 0x2dd   :  { %v4896_v53 = vpack.c.bf16 %v1923_v46, %v1907_v45  ;;  %v1031_v37 = vld [vmem:[#allocation11 + $0x2b8] sm:$0xff]  ;;  %v1012_v45 = vld [vmem:[#allocation11 + $0x220] sm:$0xff] }
 0x2de   :  { %4751 = vmatpush1.bf16.msra.mxu0 %v4750_v55  ;;  %4879 = vmatpush1.bf16.msra.mxu1 %v4878_v56  ;;  %v1906_v55 = vld [vmem:[#allocation11 + $0x1e10] sm:$0xff]  ;;  %v1028_v46 = vld [vmem:[#allocation11 + $0x2a0] sm:$0xff]  ;;  %v1143_v23 = vld [vmem:[#allocation11 + $0x638] sm:$0xff] }
 0x2df   :  { %4753 = vmatprep.subr.bf16.mxu0 %v4752_v60  ;;  %4881 = vmatprep.subr.bf16.mxu1 %v4880_v61  ;;  %v1922_v56 = vld [vmem:[#allocation11 + $0x1e90] sm:$0xff]  ;;  %v1939_v60 = vld [vmem:[#allocation11 + $0x1f18] sm:$0xff] }
 0x2e0   :  { %v1955_v61 = vld [vmem:[#allocation11 + $0x1f98] sm:$0xff]  ;;  %v4898_v63 = vpack.c.bf16 %v1922_v56, %v1906_v55  ;;  %v4914_v56 = vpack.c.bf16 %v1028_v46, %v1012_v45 }
 0x2e1   :  { %v1063_v55 = vld [vmem:[#allocation11 + $0x3b8] sm:$0xff] }
 0x2e2   :  { %4755 = vmatpush1.bf16.msra.mxu0 %v4754_v5  ;;  %4883 = vmatpush1.bf16.msra.mxu1 %v4882_v7  ;;  %v4900_v5 = vpack.c.bf16 %v1955_v61, %v1939_v60  ;;  %v1938_v7 = vld [vmem:[#allocation11 + $0x1f10] sm:$0xff]  ;;  %v1044_v60 = vld [vmem:[#allocation11 + $0x320] sm:$0xff]  ;;  %v1175_v45 = vld [vmem:[#allocation11 + $0x738] sm:$0xff] }
 0x2e3   :  { %4757 = vmatprep.subr.bf16.mxu0 %v4756_v10  ;;  %4885 = vmatprep.subr.bf16.mxu1 %v4884_v11  ;;  %v965_v10 = vld [vmem:[#allocation11 + $0xa8] sm:$0xff]  ;;  %v951_v11 = vld [vmem:[#allocation11 + $0x38] sm:$0xff]  ;;  %v4902_v14 = vpack.c.bf16 %v1954_v8, %v1938_v7  ;;  %v1060_v61 = vld [vmem:[#allocation11 + $0x3a0] sm:$0xff] }
 0x2e4   :  { %v4904_v15 = vpack.c.bf16 %v965_v10, %v949_v9  ;;  %v5032_v30 = vpack.c.bf16 %v967_v12, %v951_v11  ;;  %v4918_v7 = vpack.c.bf16 %v1060_v61, %v1044_v60  ;;  %v4920_v9 = vpack.c.bf16 %v1093_v2, %v1077_v1  ;;  %v1076_v10 = vld [vmem:[#allocation11 + $0x420] sm:$0xff]  ;;  %v1078_v12 = vld [vmem:[#allocation11 + $0x430] sm:$0xff]  ;;  %v1191_v46 = vld [vmem:[#allocation11 + $0x7b8] sm:$0xff] }
 0x2e5   :  { %v1092_v11 = vld [vmem:[#allocation11 + $0x4a0] sm:$0xff]  ;;  %v1207_v60 = vld [vmem:[#allocation11 + $0x838] sm:$0xff] }
 0x2e6   :  { %4759 = vmatpush1.bf16.msra.mxu0 %v4758_v17  ;;  %4887 = vmatpush1.bf16.msra.mxu1 %v4886_v18  ;;  %v964_v17 = vld [vmem:[#allocation11 + $0xa0] sm:$0xff]  ;;  %v950_v18 = vld [vmem:[#allocation11 + $0x30] sm:$0xff]  ;;  %v1223_v61 = vld [vmem:[#allocation11 + $0x8b8] sm:$0xff] }
 0x2e7   :  { %4761 = vmatprep.subr.bf16.mxu0 %v4760_v21  ;;  %4889 = vmatprep.subr.bf16.mxu1 %v4888_v22  ;;  %v997_v21 = vld [vmem:[#allocation11 + $0x1a8] sm:$0xff]  ;;  %v983_v22 = vld [vmem:[#allocation11 + $0x138] sm:$0xff]  ;;  %v4906_v25 = vpack.c.bf16 %v964_v17, %v948_v16  ;;  %v5034_v35 = vpack.c.bf16 %v966_v19, %v950_v18  ;;  %v4922_v17 = vpack.c.bf16 %v1092_v11, %v1076_v10  ;;  %v1204_v1 = vld [vmem:[#allocation11 + $0x820] sm:$0xff] }
 0x2e8   :  { %v1127_v16 = vld [vmem:[#allocation11 + $0x5b8] sm:$0xff]  ;;  %v1220_v2 = vld [vmem:[#allocation11 + $0x8a0] sm:$0xff] }
 0x2e9   :  { %v1239_v10 = vld [vmem:[#allocation11 + $0x938] sm:$0xff] }
 0x2ea   :  { %4763 = vmatpush1.bf16.msra.mxu0 %v4762_v29  ;;  %4891 = vmatpush1.bf16.msra.mxu1 %v4890_v31  ;;  %v4908_v29 = vpack.c.bf16 %v997_v21, %v981_v20  ;;  %v5036_v31 = vpack.c.bf16 %v999_v24, %v983_v22  ;;  %v1108_v20 = vld [vmem:[#allocation11 + $0x520] sm:$0xff]  ;;  %v1110_v22 = vld [vmem:[#allocation11 + $0x530] sm:$0xff]  ;;  %v1255_v11 = vld [vmem:[#allocation11 + $0x9b8] sm:$0xff] }
 0x2eb   :  { %4765 = vmatprep.subr.bf16.mxu0 %v4764_v34  ;;  %4893 = vmatprep.subr.bf16.mxu1 %v4892_v36  ;;  %v1029_v34 = vld [vmem:[#allocation11 + $0x2a8] sm:$0xff]  ;;  %v1015_v36 = vld [vmem:[#allocation11 + $0x238] sm:$0xff]  ;;  %v1124_v21 = vld [vmem:[#allocation11 + $0x5a0] sm:$0xff] }
 0x2ec   :  { %v4912_v40 = vpack.c.bf16 %v1029_v34, %v1013_v33  ;;  %v1140_v33 = vld [vmem:[#allocation11 + $0x620] sm:$0xff] }
 0x2ed   :  { %v1156_v34 = vld [vmem:[#allocation11 + $0x6a0] sm:$0xff] }
 0x2ee   :  { %4767 = vmatpush1.bf16.msra.mxu0 %v4766_v47  ;;  %4895 = vmatpush1.bf16.msra.mxu1 %v4894_v48  ;;  %v1014_v47 = vld [vmem:[#allocation11 + $0x230] sm:$0xff]  ;;  %v5040_v48 = vpack.c.bf16 %v1031_v37, %v1015_v36  ;;  %v5056_v37 = vpack.c.bf16 %v1159_v28, %v1143_v23 }
 0x2ef   :  { %4769 = vmatprep.subr.bf16.mxu0 %v4768_v52  ;;  %4897 = vmatprep.subr.bf16.mxu1 %v4896_v53  ;;  %v1061_v52 = vld [vmem:[#allocation11 + $0x3a8] sm:$0xff]  ;;  %v1047_v53 = vld [vmem:[#allocation11 + $0x338] sm:$0xff]  ;;  %v5042_v57 = vpack.c.bf16 %v1030_v49, %v1014_v47  ;;  %v1142_v36 = vld [vmem:[#allocation11 + $0x630] sm:$0xff]  ;;  %v4930_v47 = vpack.c.bf16 %v1156_v34, %v1140_v33 }
 0x2f0   :  { %v4916_v58 = vpack.c.bf16 %v1061_v52, %v1045_v50  ;;  %v1172_v50 = vld [vmem:[#allocation11 + $0x720] sm:$0xff]  ;;  %v1270_v23 = vld [vmem:[#allocation11 + $0xa30] sm:$0xff]  ;;  %v1303_v33 = vld [vmem:[#allocation11 + $0xb38] sm:$0xff] }
 0x2f1   :  { %v1188_v52 = vld [vmem:[#allocation11 + $0x7a0] sm:$0xff]  ;;  %v1319_v34 = vld [vmem:[#allocation11 + $0xbb8] sm:$0xff] }
 0x2f2   :  { %4771 = vmatpush1.bf16.msra.mxu0 %v4770_v62  ;;  %4899 = vmatpush1.bf16.msra.mxu1 %v4898_v63  ;;  %v1046_v62 = vld [vmem:[#allocation11 + $0x330] sm:$0xff]  ;;  %v5044_v63 = vpack.c.bf16 %v1063_v55, %v1047_v53  ;;  %v5060_v55 = vpack.c.bf16 %v1191_v46, %v1175_v45  ;;  %v5076_v46 = vpack.c.bf16 %v1319_v34, %v1303_v33 }
 0x2f3   :  { %4773 = vmatprep.subr.bf16.mxu0 %v4772_v3  ;;  %4901 = vmatprep.subr.bf16.mxu1 %v4900_v5  ;;  %v1079_v3 = vld [vmem:[#allocation11 + $0x438] sm:$0xff]  ;;  %v5046_v8 = vpack.c.bf16 %v1062_v0, %v1046_v62  ;;  %v1174_v53 = vld [vmem:[#allocation11 + $0x730] sm:$0xff]  ;;  %v4934_v62 = vpack.c.bf16 %v1188_v52, %v1172_v50 }
 0x2f4   :  { %v1095_v5 = vld [vmem:[#allocation11 + $0x4b8] sm:$0xff]  ;;  %v1302_v45 = vld [vmem:[#allocation11 + $0xb30] sm:$0xff] }
 0x2f5   :  { %v1335_v50 = vld [vmem:[#allocation11 + $0xc38] sm:$0xff]  ;;  %v1430_v33 = vld [vmem:[#allocation11 + $0xf30] sm:$0xff] }
 0x2f6   :  { %4775 = vmatpush1.bf16.msra.mxu0 %v4774_v13  ;;  %4903 = vmatpush1.bf16.msra.mxu1 %v4902_v14  ;;  %v5048_v13 = vpack.c.bf16 %v1095_v5, %v1079_v3  ;;  %v1094_v14 = vld [vmem:[#allocation11 + $0x4b0] sm:$0xff]  ;;  %v5064_v5 = vpack.c.bf16 %v1223_v61, %v1207_v60  ;;  %v1351_v52 = vld [vmem:[#allocation11 + $0xcb8] sm:$0xff] }
 0x2f7   :  { %4905 = vmatprep.subr.bf16.mxu0 %v4904_v15  ;;  %5033 = vmatprep.subr.bf16.mxu1 %v5032_v30  ;;  %v1125_v15 = vld [vmem:[#allocation11 + $0x5a8] sm:$0xff]  ;;  %v1111_v30 = vld [vmem:[#allocation11 + $0x538] sm:$0xff]  ;;  %v5050_v18 = vpack.c.bf16 %v1094_v14, %v1078_v12  ;;  %v1206_v3 = vld [vmem:[#allocation11 + $0x830] sm:$0xff]  ;;  %v4938_v12 = vpack.c.bf16 %v1220_v2, %v1204_v1  ;;  %v5080_v61 = vpack.c.bf16 %v1351_v52, %v1335_v50 }
 0x2f8   :  { %v4924_v19 = vpack.c.bf16 %v1125_v15, %v1109_v43  ;;  %v5052_v24 = vpack.c.bf16 %v1127_v16, %v1111_v30  ;;  %v1236_v43 = vld [vmem:[#allocation11 + $0x920] sm:$0xff]  ;;  %v1238_v30 = vld [vmem:[#allocation11 + $0x930] sm:$0xff]  ;;  %v5068_v16 = vpack.c.bf16 %v1255_v11, %v1239_v10  ;;  %v1367_v1 = vld [vmem:[#allocation11 + $0xd38] sm:$0xff] }
 0x2f9   :  { %2188 = vmatmul.mubr.f32.vlgmr.msra.gmra.mrb[4].mxu0 %v6446_v26  ;;  %2330 = vmatmul.mubr.f32.vlgmr.msra.gmra.mrb[4].mxu1 %v6446_v26  ;;  %v1252_v15 = vld [vmem:[#allocation11 + $0x9a0] sm:$0xff]  ;;  %v1334_v60 = vld [vmem:[#allocation11 + $0xc30] sm:$0xff]  ;;  %v1383_v2 = vld [vmem:[#allocation11 + $0xdb8] sm:$0xff] }
 0x2fa   :  { %4907 = vmatpush1.bf16.msra.mxu0 %v4906_v25  ;;  %2400 = vmatprep.mubr.f32.mxu0 %v6431_v54  ;;  %v1126_v25 = vld [vmem:[#allocation11 + $0x5b0] sm:$0xff]  ;;  %v5084_v11 = vpack.c.bf16 %v1383_v2, %v1367_v1 }
 0x2fb   :  { %5035 = vmatpush1.bf16.msra.mxu1 %v5034_v35  ;;  %2542 = vmatprep.mubr.f32.mxu1 %v6431_v54  ;;  %v1141_v35 = vld [vmem:[#allocation11 + $0x628] sm:$0xff]  ;;  %v1366_v10 = vld [vmem:[#allocation11 + $0xd30] sm:$0xff] }
 0x2fc   :  { %4909 = vmatprep.subr.bf16.mxu0 %v4908_v29  ;;  %5037 = vmatprep.subr.bf16.mxu1 %v5036_v31  ;;  %v4926_v29 = vpack.c.bf16 %v1124_v21, %v1108_v20  ;;  %v5054_v31 = vpack.c.bf16 %v1126_v25, %v1110_v22  ;;  %v4928_v32 = vpack.c.bf16 %v1157_v27, %v1141_v35  ;;  %v1271_v20 = vld [vmem:[#allocation11 + $0xa38] sm:$0xff]  ;;  %v1268_v35 = vld [vmem:[#allocation11 + $0xa20] sm:$0xff]  ;;  %v1462_v52 = vld [vmem:[#allocation11 + $0x1030] sm:$0xff] }
 0x2fd   :  { %v1287_v21 = vld [vmem:[#allocation11 + $0xab8] sm:$0xff]  ;;  %v4942_v22 = vpack.c.bf16 %v1252_v15, %v1236_v43  ;;  %v1284_v27 = vld [vmem:[#allocation11 + $0xaa0] sm:$0xff]  ;;  %v1510_v2 = vld [vmem:[#allocation11 + $0x11b0] sm:$0xff] }
 0x2fe   :  { %4911 = vmatpush1.bf16.msra.mxu0 %v4910_v38  ;;  %v1158_v38 = vld [vmem:[#allocation11 + $0x6b0] sm:$0xff]  ;;  %v5072_v28 = vpack.c.bf16 %v1287_v21, %v1271_v20  ;;  %v1399_v43 = vld [vmem:[#allocation11 + $0xe38] sm:$0xff] }
 0x2ff   :  { %5039 = vmatpush1.bf16.msra.mxu1 %v5038_v39  ;;  %4913 = vmatprep.subr.bf16.mxu0 %v4912_v40  ;;  %v1173_v39 = vld [vmem:[#allocation11 + $0x728] sm:$0xff]  ;;  %v1415_v15 = vld [vmem:[#allocation11 + $0xeb8] sm:$0xff]  ;;  %v1398_v20 = vld [vmem:[#allocation11 + $0xe30] sm:$0xff] }
 0x300   :  { %5041 = vmatprep.subr.bf16.mxu1 %v5040_v48  ;;  %v1189_v40 = vld [vmem:[#allocation11 + $0x7a8] sm:$0xff]  ;;  %v5058_v48 = vpack.c.bf16 %v1158_v38, %v1142_v36  ;;  %v4946_v36 = vpack.c.bf16 %v1284_v27, %v1268_v35  ;;  %v5088_v21 = vpack.c.bf16 %v1415_v15, %v1399_v43  ;;  %v1431_v35 = vld [vmem:[#allocation11 + $0xf38] sm:$0xff]  ;;  %v1526_v43 = vld [vmem:[#allocation11 + $0x1230] sm:$0xff] }
 0x301   :  { %v4932_v49 = vpack.c.bf16 %v1189_v40, %v1173_v39  ;;  %v1300_v39 = vld [vmem:[#allocation11 + $0xb20] sm:$0xff]  ;;  %v1447_v27 = vld [vmem:[#allocation11 + $0xfb8] sm:$0xff] }
 0x302   :  { %4915 = vmatpush1.bf16.msra.mxu0 %v4914_v56  ;;  %v1190_v56 = vld [vmem:[#allocation11 + $0x7b0] sm:$0xff]  ;;  %v1316_v40 = vld [vmem:[#allocation11 + $0xba0] sm:$0xff]  ;;  %v5092_v34 = vpack.c.bf16 %v1447_v27, %v1431_v35 }
 0x303   :  { %5043 = vmatpush1.bf16.msra.mxu1 %v5042_v57  ;;  %4917 = vmatprep.subr.bf16.mxu0 %v4916_v58  ;;  %v1205_v57 = vld [vmem:[#allocation11 + $0x828] sm:$0xff]  ;;  %v1558_v35 = vld [vmem:[#allocation11 + $0x1330] sm:$0xff] }
 0x304   :  { %5045 = vmatprep.subr.bf16.mxu1 %v5044_v63  ;;  %v1221_v58 = vld [vmem:[#allocation11 + $0x8a8] sm:$0xff]  ;;  %v5062_v63 = vpack.c.bf16 %v1190_v56, %v1174_v53  ;;  %v4950_v53 = vpack.c.bf16 %v1316_v40, %v1300_v39  ;;  %v1463_v39 = vld [vmem:[#allocation11 + $0x1038] sm:$0xff] }
 0x305   :  { %v4936_v0 = vpack.c.bf16 %v1221_v58, %v1205_v57  ;;  %v1332_v57 = vld [vmem:[#allocation11 + $0xc20] sm:$0xff]  ;;  %v1479_v40 = vld [vmem:[#allocation11 + $0x10b8] sm:$0xff] }
 0x306   :  { %4919 = vmatpush1.bf16.msra.mxu0 %v4918_v7  ;;  %v1222_v7 = vld [vmem:[#allocation11 + $0x8b0] sm:$0xff]  ;;  %v1348_v58 = vld [vmem:[#allocation11 + $0xca0] sm:$0xff]  ;;  %v5096_v50 = vpack.c.bf16 %v1479_v40, %v1463_v39 }
 0x307   :  { %5047 = vmatpush1.bf16.msra.mxu1 %v5046_v8  ;;  %4921 = vmatprep.subr.bf16.mxu0 %v4920_v9  ;;  %v1237_v8 = vld [vmem:[#allocation11 + $0x928] sm:$0xff]  ;;  %v1590_v39 = vld [vmem:[#allocation11 + $0x1430] sm:$0xff] }
 0x308   :  { %5049 = vmatprep.subr.bf16.mxu1 %v5048_v13  ;;  %v1253_v9 = vld [vmem:[#allocation11 + $0x9a8] sm:$0xff]  ;;  %v5066_v13 = vpack.c.bf16 %v1222_v7, %v1206_v3  ;;  %v4954_v3 = vpack.c.bf16 %v1348_v58, %v1332_v57  ;;  %v1495_v58 = vld [vmem:[#allocation11 + $0x1138] sm:$0xff] }
 0x309   :  { %v4940_v14 = vpack.c.bf16 %v1253_v9, %v1237_v8  ;;  %v1364_v8 = vld [vmem:[#allocation11 + $0xd20] sm:$0xff] }
 0x30a   :  { %4923 = vmatpush1.bf16.msra.mxu0 %v4922_v17  ;;  %v1254_v17 = vld [vmem:[#allocation11 + $0x9b0] sm:$0xff]  ;;  %v1380_v9 = vld [vmem:[#allocation11 + $0xda0] sm:$0xff] }
 0x30b   :  { %5051 = vmatpush1.bf16.msra.mxu1 %v5050_v18  ;;  %4925 = vmatprep.subr.bf16.mxu0 %v4924_v19  ;;  %v1269_v18 = vld [vmem:[#allocation11 + $0xa28] sm:$0xff] }
 0x30c   :  { %5053 = vmatprep.subr.bf16.mxu1 %v5052_v24  ;;  %v1285_v19 = vld [vmem:[#allocation11 + $0xaa8] sm:$0xff]  ;;  %v5070_v24 = vpack.c.bf16 %v1254_v17, %v1238_v30  ;;  %v4958_v30 = vpack.c.bf16 %v1380_v9, %v1364_v8  ;;  %v1527_v8 = vld [vmem:[#allocation11 + $0x1238] sm:$0xff] }
 0x30d   :  { %v4944_v25 = vpack.c.bf16 %v1285_v19, %v1269_v18  ;;  %v1396_v18 = vld [vmem:[#allocation11 + $0xe20] sm:$0xff]  ;;  %v1543_v9 = vld [vmem:[#allocation11 + $0x12b8] sm:$0xff] }
 0x30e   :  { %4927 = vmatpush1.bf16.msra.mxu0 %v4926_v29  ;;  %v1286_v29 = vld [vmem:[#allocation11 + $0xab0] sm:$0xff]  ;;  %v1412_v19 = vld [vmem:[#allocation11 + $0xea0] sm:$0xff]  ;;  %v5104_v15 = vpack.c.bf16 %v1543_v9, %v1527_v8 }
 0x30f   :  { %5055 = vmatpush1.bf16.msra.mxu1 %v5054_v31  ;;  %4929 = vmatprep.subr.bf16.mxu0 %v4928_v32  ;;  %v1301_v31 = vld [vmem:[#allocation11 + $0xb28] sm:$0xff]  ;;  %v1654_v8 = vld [vmem:[#allocation11 + $0x1630] sm:$0xff] }
 0x310   :  { %5057 = vmatprep.subr.bf16.mxu1 %v5056_v37  ;;  %v1317_v32 = vld [vmem:[#allocation11 + $0xba8] sm:$0xff]  ;;  %v5074_v37 = vpack.c.bf16 %v1286_v29, %v1270_v23  ;;  %v4962_v23 = vpack.c.bf16 %v1412_v19, %v1396_v18  ;;  %v1559_v18 = vld [vmem:[#allocation11 + $0x1338] sm:$0xff] }
 0x311   :  { %v4948_v38 = vpack.c.bf16 %v1317_v32, %v1301_v31  ;;  %v1428_v31 = vld [vmem:[#allocation11 + $0xf20] sm:$0xff]  ;;  %v1575_v19 = vld [vmem:[#allocation11 + $0x13b8] sm:$0xff] }
 0x312   :  { %4931 = vmatpush1.bf16.msra.mxu0 %v4930_v47  ;;  %v1318_v47 = vld [vmem:[#allocation11 + $0xbb0] sm:$0xff]  ;;  %v1444_v32 = vld [vmem:[#allocation11 + $0xfa0] sm:$0xff]  ;;  %v5108_v27 = vpack.c.bf16 %v1575_v19, %v1559_v18 }
 0x313   :  { %5059 = vmatpush1.bf16.msra.mxu1 %v5058_v48  ;;  %4933 = vmatprep.subr.bf16.mxu0 %v4932_v49  ;;  %v1333_v48 = vld [vmem:[#allocation11 + $0xc28] sm:$0xff]  ;;  %v1686_v18 = vld [vmem:[#allocation11 + $0x1730] sm:$0xff] }
 0x314   :  { %5061 = vmatprep.subr.bf16.mxu1 %v5060_v55  ;;  %v1349_v49 = vld [vmem:[#allocation11 + $0xca8] sm:$0xff]  ;;  %v5078_v55 = vpack.c.bf16 %v1318_v47, %v1302_v45  ;;  %v4966_v45 = vpack.c.bf16 %v1444_v32, %v1428_v31  ;;  %v1591_v31 = vld [vmem:[#allocation11 + $0x1438] sm:$0xff] }
 0x315   :  { %v4952_v56 = vpack.c.bf16 %v1349_v49, %v1333_v48  ;;  %v1460_v48 = vld [vmem:[#allocation11 + $0x1020] sm:$0xff]  ;;  %v1607_v32 = vld [vmem:[#allocation11 + $0x14b8] sm:$0xff] }
 0x316   :  { %4935 = vmatpush1.bf16.msra.mxu0 %v4934_v62  ;;  %v1350_v62 = vld [vmem:[#allocation11 + $0xcb0] sm:$0xff]  ;;  %v1476_v49 = vld [vmem:[#allocation11 + $0x10a0] sm:$0xff]  ;;  %v5112_v40 = vpack.c.bf16 %v1607_v32, %v1591_v31 }
 0x317   :  { %5063 = vmatpush1.bf16.msra.mxu1 %v5062_v63  ;;  %4937 = vmatprep.subr.bf16.mxu0 %v4936_v0  ;;  %v1365_v63 = vld [vmem:[#allocation11 + $0xd28] sm:$0xff]  ;;  %v4970_v57 = vpack.c.bf16 %v1476_v49, %v1460_v48  ;;  %v1623_v48 = vld [vmem:[#allocation11 + $0x1538] sm:$0xff]  ;;  %v1718_v31 = vld [vmem:[#allocation11 + $0x1830] sm:$0xff] }
 0x318   :  { %5065 = vmatprep.subr.bf16.mxu1 %v5064_v5  ;;  %v1381_v0 = vld [vmem:[#allocation11 + $0xda8] sm:$0xff]  ;;  %v5082_v5 = vpack.c.bf16 %v1350_v62, %v1334_v60  ;;  %v1511_v60 = vld [vmem:[#allocation11 + $0x11b8] sm:$0xff]  ;;  %v1492_v62 = vld [vmem:[#allocation11 + $0x1120] sm:$0xff] }
 0x319   :  { %v4956_v7 = vpack.c.bf16 %v1381_v0, %v1365_v63  ;;  %v1508_v63 = vld [vmem:[#allocation11 + $0x11a0] sm:$0xff]  ;;  %v1494_v0 = vld [vmem:[#allocation11 + $0x1130] sm:$0xff]  ;;  %v1639_v49 = vld [vmem:[#allocation11 + $0x15b8] sm:$0xff] }
 0x31a   :  { %4939 = vmatpush1.bf16.msra.mxu0 %v4938_v12  ;;  %v1382_v12 = vld [vmem:[#allocation11 + $0xdb0] sm:$0xff] }
 0x31b   :  { %5067 = vmatpush1.bf16.msra.mxu1 %v5066_v13  ;;  %4941 = vmatprep.subr.bf16.mxu0 %v4940_v14  ;;  %v1397_v13 = vld [vmem:[#allocation11 + $0xe28] sm:$0xff] }
 0x31c   :  { %5069 = vmatprep.subr.bf16.mxu1 %v5068_v16  ;;  %v1413_v14 = vld [vmem:[#allocation11 + $0xea8] sm:$0xff]  ;;  %v5086_v16 = vpack.c.bf16 %v1382_v12, %v1366_v10  ;;  %v4974_v10 = vpack.c.bf16 %v1508_v63, %v1492_v62  ;;  %v1655_v63 = vld [vmem:[#allocation11 + $0x1638] sm:$0xff] }
 0x31d   :  { %v4960_v17 = vpack.c.bf16 %v1413_v14, %v1397_v13  ;;  %v1524_v13 = vld [vmem:[#allocation11 + $0x1220] sm:$0xff]  ;;  %v1669_v62 = vld [vmem:[#allocation11 + $0x16a8] sm:$0xff] }
 0x31e   :  { %4943 = vmatpush1.bf16.msra.mxu0 %v4942_v22  ;;  %v1414_v22 = vld [vmem:[#allocation11 + $0xeb0] sm:$0xff]  ;;  %v1540_v14 = vld [vmem:[#allocation11 + $0x12a0] sm:$0xff] }
 0x31f   :  { %5071 = vmatpush1.bf16.msra.mxu1 %v5070_v24  ;;  %4945 = vmatprep.subr.bf16.mxu0 %v4944_v25  ;;  %v1429_v24 = vld [vmem:[#allocation11 + $0xf28] sm:$0xff] }
 0x320   :  { %5073 = vmatprep.subr.bf16.mxu1 %v5072_v28  ;;  %v1445_v25 = vld [vmem:[#allocation11 + $0xfa8] sm:$0xff]  ;;  %v5090_v28 = vpack.c.bf16 %v1414_v22, %v1398_v20  ;;  %v4978_v20 = vpack.c.bf16 %v1540_v14, %v1524_v13  ;;  %v1687_v13 = vld [vmem:[#allocation11 + $0x1738] sm:$0xff] }
 0x321   :  { %v4964_v29 = vpack.c.bf16 %v1445_v25, %v1429_v24  ;;  %v1556_v24 = vld [vmem:[#allocation11 + $0x1320] sm:$0xff]  ;;  %v1703_v14 = vld [vmem:[#allocation11 + $0x17b8] sm:$0xff] }
 0x322   :  { %4947 = vmatpush1.bf16.msra.mxu0 %v4946_v36  ;;  %v1446_v36 = vld [vmem:[#allocation11 + $0xfb0] sm:$0xff]  ;;  %v1572_v25 = vld [vmem:[#allocation11 + $0x13a0] sm:$0xff]  ;;  %v5124_v19 = vpack.c.bf16 %v1703_v14, %v1687_v13 }
 0x323   :  { %5075 = vmatpush1.bf16.msra.mxu1 %v5074_v37  ;;  %4949 = vmatprep.subr.bf16.mxu0 %v4948_v38  ;;  %v1461_v37 = vld [vmem:[#allocation11 + $0x1028] sm:$0xff]  ;;  %v1814_v13 = vld [vmem:[#allocation11 + $0x1b30] sm:$0xff] }
 0x324   :  { %5077 = vmatprep.subr.bf16.mxu1 %v5076_v46  ;;  %v1477_v38 = vld [vmem:[#allocation11 + $0x10a8] sm:$0xff]  ;;  %v5094_v46 = vpack.c.bf16 %v1446_v36, %v1430_v33  ;;  %v4982_v33 = vpack.c.bf16 %v1572_v25, %v1556_v24  ;;  %v1719_v24 = vld [vmem:[#allocation11 + $0x1838] sm:$0xff] }
 0x325   :  { %v4968_v47 = vpack.c.bf16 %v1477_v38, %v1461_v37  ;;  %v1588_v37 = vld [vmem:[#allocation11 + $0x1420] sm:$0xff]  ;;  %v1735_v25 = vld [vmem:[#allocation11 + $0x18b8] sm:$0xff] }
 0x326   :  { %4951 = vmatpush1.bf16.msra.mxu0 %v4950_v53  ;;  %v1478_v53 = vld [vmem:[#allocation11 + $0x10b0] sm:$0xff]  ;;  %v1604_v38 = vld [vmem:[#allocation11 + $0x14a0] sm:$0xff]  ;;  %v5128_v32 = vpack.c.bf16 %v1735_v25, %v1719_v24 }
 0x327   :  { %5079 = vmatpush1.bf16.msra.mxu1 %v5078_v55  ;;  %4953 = vmatprep.subr.bf16.mxu0 %v4952_v56  ;;  %v1493_v55 = vld [vmem:[#allocation11 + $0x1128] sm:$0xff]  ;;  %v1846_v24 = vld [vmem:[#allocation11 + $0x1c30] sm:$0xff] }
 0x328   :  { %5081 = vmatprep.subr.bf16.mxu1 %v5080_v61  ;;  %v1509_v56 = vld [vmem:[#allocation11 + $0x11a8] sm:$0xff]  ;;  %v5098_v61 = vpack.c.bf16 %v1478_v53, %v1462_v52 }
 0x329   :  { %v4972_v1 = vpack.c.bf16 %v1509_v56, %v1493_v55  ;;  %v1620_v55 = vld [vmem:[#allocation11 + $0x1520] sm:$0xff] }
 0x32a   :  { %4955 = vmatpush1.bf16.msra.mxu0 %v4954_v3  ;;  %v1525_v3 = vld [vmem:[#allocation11 + $0x1228] sm:$0xff]  ;;  %v1636_v56 = vld [vmem:[#allocation11 + $0x15a0] sm:$0xff] }
 0x32b   :  { %5083 = vmatpush1.bf16.msra.mxu1 %v5082_v5  ;;  %4957 = vmatprep.subr.bf16.mxu0 %v4956_v7  ;;  %v1541_v5 = vld [vmem:[#allocation11 + $0x12a8] sm:$0xff]  ;;  %v5100_v7 = vpack.c.bf16 %v1511_v60, %v1495_v58  ;;  %v5116_v58 = vpack.c.bf16 %v1639_v49, %v1623_v48  ;;  %v1638_v60 = vld [vmem:[#allocation11 + $0x15b0] sm:$0xff] }
 0x32c   :  { %5085 = vmatprep.subr.bf16.mxu1 %v5084_v11  ;;  %v5102_v11 = vpack.c.bf16 %v1510_v2, %v1494_v0  ;;  %v4976_v12 = vpack.c.bf16 %v1541_v5, %v1525_v3  ;;  %v1671_v0 = vld [vmem:[#allocation11 + $0x16b8] sm:$0xff]  ;;  %v1652_v5 = vld [vmem:[#allocation11 + $0x1620] sm:$0xff]  ;;  %v1750_v48 = vld [vmem:[#allocation11 + $0x1930] sm:$0xff] }
 0x32d   :  { %v5120_v9 = vpack.c.bf16 %v1671_v0, %v1655_v63  ;;  %v1782_v63 = vld [vmem:[#allocation11 + $0x1a30] sm:$0xff] }
 0x32e   :  { %4959 = vmatpush1.bf16.msra.mxu0 %v4958_v30  ;;  %v1542_v30 = vld [vmem:[#allocation11 + $0x12b0] sm:$0xff] }
 0x32f   :  { %5087 = vmatpush1.bf16.msra.mxu1 %v5086_v16  ;;  %4961 = vmatprep.subr.bf16.mxu0 %v4960_v17  ;;  %v1557_v16 = vld [vmem:[#allocation11 + $0x1328] sm:$0xff] }
 0x330   :  { %5089 = vmatprep.subr.bf16.mxu1 %v5088_v21  ;;  %v1573_v17 = vld [vmem:[#allocation11 + $0x13a8] sm:$0xff]  ;;  %v5106_v21 = vpack.c.bf16 %v1542_v30, %v1526_v43 }
 0x331   :  { %v4980_v22 = vpack.c.bf16 %v1573_v17, %v1557_v16  ;;  %v1684_v16 = vld [vmem:[#allocation11 + $0x1720] sm:$0xff] }
 0x332   :  { %4963 = vmatpush1.bf16.msra.mxu0 %v4962_v23  ;;  %v1574_v23 = vld [vmem:[#allocation11 + $0x13b0] sm:$0xff]  ;;  %v1700_v17 = vld [vmem:[#allocation11 + $0x17a0] sm:$0xff] }
 0x333   :  { %5091 = vmatpush1.bf16.msra.mxu1 %v5090_v28  ;;  %4965 = vmatprep.subr.bf16.mxu0 %v4964_v29  ;;  %v1589_v28 = vld [vmem:[#allocation11 + $0x1428] sm:$0xff] }
 0x334   :  { %5093 = vmatprep.subr.bf16.mxu1 %v5092_v34  ;;  %v1605_v29 = vld [vmem:[#allocation11 + $0x14a8] sm:$0xff]  ;;  %v5110_v34 = vpack.c.bf16 %v1574_v23, %v1558_v35  ;;  %v4998_v35 = vpack.c.bf16 %v1700_v17, %v1684_v16  ;;  %v1847_v16 = vld [vmem:[#allocation11 + $0x1c38] sm:$0xff] }
 0x335   :  { %v4984_v36 = vpack.c.bf16 %v1605_v29, %v1589_v28  ;;  %v1716_v28 = vld [vmem:[#allocation11 + $0x1820] sm:$0xff]  ;;  %v1863_v17 = vld [vmem:[#allocation11 + $0x1cb8] sm:$0xff] }
 0x336   :  { %4967 = vmatpush1.bf16.msra.mxu0 %v4966_v45  ;;  %v1606_v45 = vld [vmem:[#allocation11 + $0x14b0] sm:$0xff]  ;;  %v1732_v29 = vld [vmem:[#allocation11 + $0x18a0] sm:$0xff]  ;;  %v5144_v25 = vpack.c.bf16 %v1863_v17, %v1847_v16 }
 0x337   :  { %5095 = vmatpush1.bf16.msra.mxu1 %v5094_v46  ;;  %4969 = vmatprep.subr.bf16.mxu0 %v4968_v47  ;;  %v1621_v46 = vld [vmem:[#allocation11 + $0x1528] sm:$0xff]  ;;  %v5114_v52 = vpack.c.bf16 %v1606_v45, %v1590_v39  ;;  %v5002_v39 = vpack.c.bf16 %v1732_v29, %v1716_v28  ;;  %v1879_v28 = vld [vmem:[#allocation11 + $0x1d38] sm:$0xff]  ;;  %v954_v17 = vld [vmem:[#allocation11 + $0x50] sm:$0xff] }
 0x338   :  { %5097 = vmatprep.subr.bf16.mxu1 %v5096_v50  ;;  %v1637_v47 = vld [vmem:[#allocation11 + $0x15a8] sm:$0xff]  ;;  %v4986_v50 = vpack.c.bf16 %v1604_v38, %v1588_v37  ;;  %v1751_v37 = vld [vmem:[#allocation11 + $0x1938] sm:$0xff] }
 0x339   :  { %2401 = vmatmul.mubr.f32.vlgmr.msra.gmra.mrb[6].mxu0 %v6433_v59  ;;  %v4988_v53 = vpack.c.bf16 %v1637_v47, %v1621_v46  ;;  %v1767_v38 = vld [vmem:[#allocation11 + $0x19b8] sm:$0xff]  ;;  %v1748_v46 = vld [vmem:[#allocation11 + $0x1920] sm:$0xff] }
 0x33a   :  { %2543 = vmatmul.mubr.f32.vlgmr.msra.gmra.mrb[6].mxu1 %v6433_v59  ;;  %4971 = vmatpush1.bf16.msra.mxu0 %v4970_v57  ;;  %v1622_v57 = vld [vmem:[#allocation11 + $0x1530] sm:$0xff]  ;;  %v1764_v47 = vld [vmem:[#allocation11 + $0x19a0] sm:$0xff]  ;;  %v5132_v49 = vpack.c.bf16 %v1767_v38, %v1751_v37  ;;  %v1895_v29 = vld [vmem:[#allocation11 + $0x1db8] sm:$0xff] }
 0x33b   :  { %2471 = vmatprep.mubr.f32.mxu0 %v6437_v4  ;;  %5099 = vmatpush1.bf16.msra.mxu1 %v5098_v61  ;;  %v1653_v61 = vld [vmem:[#allocation11 + $0x1628] sm:$0xff]  ;;  %v5118_v2 = vpack.c.bf16 %v1638_v60, %v1622_v57  ;;  %v5006_v57 = vpack.c.bf16 %v1764_v47, %v1748_v46  ;;  %v1878_v37 = vld [vmem:[#allocation11 + $0x1d30] sm:$0xff]  ;;  %v5148_v38 = vpack.c.bf16 %v1895_v29, %v1879_v28  ;;  %v1911_v46 = vld [vmem:[#allocation11 + $0x1e38] sm:$0xff] }
 0x33c   :  { %2613 = vmatprep.mubr.f32.mxu1 %v6437_v4  ;;  %4973 = vmatprep.subr.bf16.mxu0 %v4972_v1  ;;  %v4990_v1 = vpack.c.bf16 %v1636_v56, %v1620_v55  ;;  %v4992_v3 = vpack.c.bf16 %v1669_v62, %v1653_v61  ;;  %v1783_v55 = vld [vmem:[#allocation11 + $0x1a38] sm:$0xff]  ;;  %v1780_v61 = vld [vmem:[#allocation11 + $0x1a20] sm:$0xff]  ;;  %v1002_v29 = vld [vmem:[#allocation11 + $0x1d0] sm:$0xff] }
 0x33d   :  { %5101 = vmatprep.subr.bf16.mxu1 %v5100_v7  ;;  %v1668_v7 = vld [vmem:[#allocation11 + $0x16a0] sm:$0xff]  ;;  %v1799_v56 = vld [vmem:[#allocation11 + $0x1ab8] sm:$0xff] }
 0x33e   :  { %4975 = vmatpush1.bf16.msra.mxu0 %v4974_v10  ;;  %v1670_v10 = vld [vmem:[#allocation11 + $0x16b0] sm:$0xff]  ;;  %v4994_v43 = vpack.c.bf16 %v1668_v7, %v1652_v5  ;;  %v1796_v62 = vld [vmem:[#allocation11 + $0x1aa0] sm:$0xff]  ;;  %v5136_v0 = vpack.c.bf16 %v1799_v56, %v1783_v55  ;;  %v1815_v5 = vld [vmem:[#allocation11 + $0x1b38] sm:$0xff] }
 0x33f   :  { %5103 = vmatpush1.bf16.msra.mxu1 %v5102_v11  ;;  %4977 = vmatprep.subr.bf16.mxu0 %v4976_v12  ;;  %v1685_v11 = vld [vmem:[#allocation11 + $0x1728] sm:$0xff]  ;;  %v1831_v7 = vld [vmem:[#allocation11 + $0x1bb8] sm:$0xff]  ;;  %v1910_v55 = vld [vmem:[#allocation11 + $0x1e30] sm:$0xff] }
 0x340   :  { %5105 = vmatprep.subr.bf16.mxu1 %v5104_v15  ;;  %v1701_v12 = vld [vmem:[#allocation11 + $0x17a8] sm:$0xff]  ;;  %v5122_v15 = vpack.c.bf16 %v1670_v10, %v1654_v8  ;;  %v5010_v8 = vpack.c.bf16 %v1796_v62, %v1780_v61  ;;  %v5140_v14 = vpack.c.bf16 %v1831_v7, %v1815_v5  ;;  %v1927_v47 = vld [vmem:[#allocation11 + $0x1eb8] sm:$0xff]  ;;  %v1942_v5 = vld [vmem:[#allocation11 + $0x1f30] sm:$0xff] }
 0x341   :  { %v4996_v30 = vpack.c.bf16 %v1701_v12, %v1685_v11  ;;  %v1812_v11 = vld [vmem:[#allocation11 + $0x1b20] sm:$0xff]  ;;  %v5152_v56 = vpack.c.bf16 %v1927_v47, %v1911_v46  ;;  %v1943_v61 = vld [vmem:[#allocation11 + $0x1f38] sm:$0xff]  ;;  %v1018_v46 = vld [vmem:[#allocation11 + $0x250] sm:$0xff] }
 0x342   :  { %4979 = vmatpush1.bf16.msra.mxu0 %v4978_v20  ;;  %v1702_v20 = vld [vmem:[#allocation11 + $0x17b0] sm:$0xff]  ;;  %v1828_v12 = vld [vmem:[#allocation11 + $0x1ba0] sm:$0xff]  ;;  %v1959_v62 = vld [vmem:[#allocation11 + $0x1fb8] sm:$0xff] }
 0x343   :  { %5107 = vmatpush1.bf16.msra.mxu1 %v5106_v21  ;;  %4981 = vmatprep.subr.bf16.mxu0 %v4980_v22  ;;  %v1717_v21 = vld [vmem:[#allocation11 + $0x1828] sm:$0xff]  ;;  %v5156_v7 = vpack.c.bf16 %v1959_v62, %v1943_v61  ;;  %v1050_v61 = vld [vmem:[#allocation11 + $0x350] sm:$0xff] }
 0x344   :  { %5109 = vmatprep.subr.bf16.mxu1 %v5108_v27  ;;  %v1733_v22 = vld [vmem:[#allocation11 + $0x18a8] sm:$0xff]  ;;  %v5126_v27 = vpack.c.bf16 %v1702_v20, %v1686_v18  ;;  %v5014_v18 = vpack.c.bf16 %v1828_v12, %v1812_v11  ;;  %v955_v11 = vld [vmem:[#allocation11 + $0x58] sm:$0xff] }
 0x345   :  { %v5000_v23 = vpack.c.bf16 %v1733_v22, %v1717_v21  ;;  %v1844_v21 = vld [vmem:[#allocation11 + $0x1c20] sm:$0xff]  ;;  %v971_v12 = vld [vmem:[#allocation11 + $0xd8] sm:$0xff] }
 0x346   :  { %4983 = vmatpush1.bf16.msra.mxu0 %v4982_v33  ;;  %v1734_v33 = vld [vmem:[#allocation11 + $0x18b0] sm:$0xff]  ;;  %v1860_v22 = vld [vmem:[#allocation11 + $0x1ca0] sm:$0xff]  ;;  %v5288_v16 = vpack.c.bf16 %v971_v12, %v955_v11 }
 0x347   :  { %5111 = vmatpush1.bf16.msra.mxu1 %v5110_v34  ;;  %4985 = vmatprep.subr.bf16.mxu0 %v4984_v36  ;;  %v1749_v34 = vld [vmem:[#allocation11 + $0x1928] sm:$0xff]  ;;  %v1082_v11 = vld [vmem:[#allocation11 + $0x450] sm:$0xff] }
 0x348   :  { %5113 = vmatprep.subr.bf16.mxu1 %v5112_v40  ;;  %v1765_v36 = vld [vmem:[#allocation11 + $0x19a8] sm:$0xff]  ;;  %v5130_v40 = vpack.c.bf16 %v1734_v33, %v1718_v31  ;;  %v5018_v31 = vpack.c.bf16 %v1860_v22, %v1844_v21  ;;  %v987_v22 = vld [vmem:[#allocation11 + $0x158] sm:$0xff] }
 0x349   :  { %v5004_v45 = vpack.c.bf16 %v1765_v36, %v1749_v34  ;;  %v1876_v34 = vld [vmem:[#allocation11 + $0x1d20] sm:$0xff] }
 0x34a   :  { %4987 = vmatpush1.bf16.msra.mxu0 %v4986_v50  ;;  %v1766_v50 = vld [vmem:[#allocation11 + $0x19b0] sm:$0xff]  ;;  %v1892_v36 = vld [vmem:[#allocation11 + $0x1da0] sm:$0xff] }
 0x34b   :  { %5115 = vmatpush1.bf16.msra.mxu1 %v5114_v52  ;;  %4989 = vmatprep.subr.bf16.mxu0 %v4988_v53  ;;  %v1781_v52 = vld [vmem:[#allocation11 + $0x1a28] sm:$0xff] }
 0x34c   :  { %5117 = vmatprep.subr.bf16.mxu1 %v5116_v58  ;;  %v1797_v53 = vld [vmem:[#allocation11 + $0x1aa8] sm:$0xff]  ;;  %v5134_v58 = vpack.c.bf16 %v1766_v50, %v1750_v48  ;;  %v5022_v48 = vpack.c.bf16 %v1892_v36, %v1876_v34  ;;  %v1019_v34 = vld [vmem:[#allocation11 + $0x258] sm:$0xff] }
 0x34d   :  { %v5008_v60 = vpack.c.bf16 %v1797_v53, %v1781_v52  ;;  %v1908_v52 = vld [vmem:[#allocation11 + $0x1e20] sm:$0xff]  ;;  %v1035_v36 = vld [vmem:[#allocation11 + $0x2d8] sm:$0xff] }
 0x34e   :  { %4991 = vmatpush1.bf16.msra.mxu0 %v4990_v1  ;;  %v1798_v1 = vld [vmem:[#allocation11 + $0x1ab0] sm:$0xff]  ;;  %v1924_v53 = vld [vmem:[#allocation11 + $0x1ea0] sm:$0xff]  ;;  %v5296_v47 = vpack.c.bf16 %v1035_v36, %v1019_v34 }
 0x34f   :  { %5119 = vmatpush1.bf16.msra.mxu1 %v5118_v2  ;;  %4993 = vmatprep.subr.bf16.mxu0 %v4992_v3  ;;  %v1813_v2 = vld [vmem:[#allocation11 + $0x1b28] sm:$0xff]  ;;  %v1146_v34 = vld [vmem:[#allocation11 + $0x650] sm:$0xff] }
 0x350   :  { %5121 = vmatprep.subr.bf16.mxu1 %v5120_v9  ;;  %v1829_v3 = vld [vmem:[#allocation11 + $0x1ba8] sm:$0xff]  ;;  %v5138_v9 = vpack.c.bf16 %v1798_v1, %v1782_v63  ;;  %v5026_v63 = vpack.c.bf16 %v1924_v53, %v1908_v52  ;;  %v1051_v52 = vld [vmem:[#allocation11 + $0x358] sm:$0xff] }
 0x351   :  { %v5012_v10 = vpack.c.bf16 %v1829_v3, %v1813_v2  ;;  %v1940_v2 = vld [vmem:[#allocation11 + $0x1f20] sm:$0xff]  ;;  %v1067_v53 = vld [vmem:[#allocation11 + $0x3d8] sm:$0xff] }
 0x352   :  { %4995 = vmatpush1.bf16.msra.mxu0 %v4994_v43  ;;  %v1830_v43 = vld [vmem:[#allocation11 + $0x1bb0] sm:$0xff]  ;;  %v1956_v3 = vld [vmem:[#allocation11 + $0x1fa0] sm:$0xff]  ;;  %v5300_v62 = vpack.c.bf16 %v1067_v53, %v1051_v52 }
 0x353   :  { %5123 = vmatpush1.bf16.msra.mxu1 %v5122_v15  ;;  %4997 = vmatprep.subr.bf16.mxu0 %v4996_v30  ;;  %v1845_v15 = vld [vmem:[#allocation11 + $0x1c28] sm:$0xff]  ;;  %v1178_v52 = vld [vmem:[#allocation11 + $0x750] sm:$0xff] }
 0x354   :  { %5125 = vmatprep.subr.bf16.mxu1 %v5124_v19  ;;  %v1861_v30 = vld [vmem:[#allocation11 + $0x1ca8] sm:$0xff]  ;;  %v5142_v19 = vpack.c.bf16 %v1830_v43, %v1814_v13  ;;  %v5030_v13 = vpack.c.bf16 %v1956_v3, %v1940_v2  ;;  %v1083_v2 = vld [vmem:[#allocation11 + $0x458] sm:$0xff] }
 0x355   :  { %v5016_v20 = vpack.c.bf16 %v1861_v30, %v1845_v15  ;;  %v952_v15 = vld [vmem:[#allocation11 + $0x40] sm:$0xff]  ;;  %v1099_v3 = vld [vmem:[#allocation11 + $0x4d8] sm:$0xff] }
 0x356   :  { %4999 = vmatpush1.bf16.msra.mxu0 %v4998_v35  ;;  %v1862_v35 = vld [vmem:[#allocation11 + $0x1cb0] sm:$0xff]  ;;  %v968_v30 = vld [vmem:[#allocation11 + $0xc0] sm:$0xff]  ;;  %v5304_v12 = vpack.c.bf16 %v1099_v3, %v1083_v2 }
 0x357   :  { %5127 = vmatpush1.bf16.msra.mxu1 %v5126_v27  ;;  %5001 = vmatprep.subr.bf16.mxu0 %v5000_v23  ;;  %v1877_v27 = vld [vmem:[#allocation11 + $0x1d28] sm:$0xff]  ;;  %v5162_v21 = vpack.c.bf16 %v968_v30, %v952_v15  ;;  %v1115_v15 = vld [vmem:[#allocation11 + $0x558] sm:$0xff]  ;;  %v1210_v2 = vld [vmem:[#allocation11 + $0x850] sm:$0xff] }
 0x358   :  { %5129 = vmatprep.subr.bf16.mxu1 %v5128_v32  ;;  %v1893_v23 = vld [vmem:[#allocation11 + $0x1da8] sm:$0xff]  ;;  %v5146_v32 = vpack.c.bf16 %v1862_v35, %v1846_v24  ;;  %v1003_v24 = vld [vmem:[#allocation11 + $0x1d8] sm:$0xff]  ;;  %v984_v35 = vld [vmem:[#allocation11 + $0x140] sm:$0xff] }
 0x359   :  { %v5020_v33 = vpack.c.bf16 %v1893_v23, %v1877_v27  ;;  %v1000_v27 = vld [vmem:[#allocation11 + $0x1c0] sm:$0xff]  ;;  %v986_v23 = vld [vmem:[#allocation11 + $0x150] sm:$0xff]  ;;  %v1131_v30 = vld [vmem:[#allocation11 + $0x5d8] sm:$0xff] }
 0x35a   :  { %5003 = vmatpush1.bf16.msra.mxu0 %v5002_v39  ;;  %v1894_v39 = vld [vmem:[#allocation11 + $0x1db0] sm:$0xff] }
 0x35b   :  { %5131 = vmatpush1.bf16.msra.mxu1 %v5130_v40  ;;  %5005 = vmatprep.subr.bf16.mxu0 %v5004_v45  ;;  %v1909_v40 = vld [vmem:[#allocation11 + $0x1e28] sm:$0xff] }
 0x35c   :  { %5133 = vmatprep.subr.bf16.mxu1 %v5132_v49  ;;  %v1925_v45 = vld [vmem:[#allocation11 + $0x1ea8] sm:$0xff]  ;;  %v5150_v49 = vpack.c.bf16 %v1894_v39, %v1878_v37  ;;  %v5166_v37 = vpack.c.bf16 %v1000_v27, %v984_v35  ;;  %v1147_v27 = vld [vmem:[#allocation11 + $0x658] sm:$0xff] }
 0x35d   :  { %v5024_v50 = vpack.c.bf16 %v1925_v45, %v1909_v40  ;;  %v1016_v40 = vld [vmem:[#allocation11 + $0x240] sm:$0xff]  ;;  %v1161_v35 = vld [vmem:[#allocation11 + $0x6c8] sm:$0xff] }
 0x35e   :  { %5007 = vmatpush1.bf16.msra.mxu0 %v5006_v57  ;;  %v1926_v57 = vld [vmem:[#allocation11 + $0x1eb0] sm:$0xff]  ;;  %v1032_v45 = vld [vmem:[#allocation11 + $0x2c0] sm:$0xff] }
 0x35f   :  { %5135 = vmatpush1.bf16.msra.mxu1 %v5134_v58  ;;  %5009 = vmatprep.subr.bf16.mxu0 %v5008_v60  ;;  %v1941_v58 = vld [vmem:[#allocation11 + $0x1f28] sm:$0xff] }
 0x360   :  { %5137 = vmatprep.subr.bf16.mxu1 %v5136_v0  ;;  %v1957_v60 = vld [vmem:[#allocation11 + $0x1fa8] sm:$0xff]  ;;  %v5154_v0 = vpack.c.bf16 %v1926_v57, %v1910_v55  ;;  %v5170_v55 = vpack.c.bf16 %v1032_v45, %v1016_v40  ;;  %v1179_v40 = vld [vmem:[#allocation11 + $0x758] sm:$0xff] }
 0x361   :  { %v5028_v1 = vpack.c.bf16 %v1957_v60, %v1941_v58  ;;  %v1048_v58 = vld [vmem:[#allocation11 + $0x340] sm:$0xff]  ;;  %v1195_v45 = vld [vmem:[#allocation11 + $0x7d8] sm:$0xff] }
 0x362   :  { %5011 = vmatpush1.bf16.msra.mxu0 %v5010_v8  ;;  %v1958_v8 = vld [vmem:[#allocation11 + $0x1fb0] sm:$0xff]  ;;  %v1064_v60 = vld [vmem:[#allocation11 + $0x3c0] sm:$0xff]  ;;  %v5316_v53 = vpack.c.bf16 %v1195_v45, %v1179_v40 }
 0x363   :  { %5139 = vmatpush1.bf16.msra.mxu1 %v5138_v9  ;;  %5013 = vmatprep.subr.bf16.mxu0 %v5012_v10  ;;  %v953_v9 = vld [vmem:[#allocation11 + $0x48] sm:$0xff]  ;;  %v1306_v40 = vld [vmem:[#allocation11 + $0xb50] sm:$0xff] }
 0x364   :  { %5141 = vmatprep.subr.bf16.mxu1 %v5140_v14  ;;  %v969_v10 = vld [vmem:[#allocation11 + $0xc8] sm:$0xff]  ;;  %v5158_v14 = vpack.c.bf16 %v1958_v8, %v1942_v5  ;;  %v5174_v5 = vpack.c.bf16 %v1064_v60, %v1048_v58  ;;  %v1211_v58 = vld [vmem:[#allocation11 + $0x858] sm:$0xff] }
 0x365   :  { %v5160_v43 = vpack.c.bf16 %v969_v10, %v953_v9  ;;  %v1080_v9 = vld [vmem:[#allocation11 + $0x440] sm:$0xff]  ;;  %v1227_v60 = vld [vmem:[#allocation11 + $0x8d8] sm:$0xff] }
 0x366   :  { %5015 = vmatpush1.bf16.msra.mxu0 %v5014_v18  ;;  %v970_v18 = vld [vmem:[#allocation11 + $0xd0] sm:$0xff]  ;;  %v1096_v10 = vld [vmem:[#allocation11 + $0x4c0] sm:$0xff]  ;;  %v5320_v3 = vpack.c.bf16 %v1227_v60, %v1211_v58 }
 0x367   :  { %5143 = vmatpush1.bf16.msra.mxu1 %v5142_v19  ;;  %5017 = vmatprep.subr.bf16.mxu0 %v5016_v20  ;;  %v985_v19 = vld [vmem:[#allocation11 + $0x148] sm:$0xff]  ;;  %v1338_v58 = vld [vmem:[#allocation11 + $0xc50] sm:$0xff] }
 0x368   :  { %5145 = vmatprep.subr.bf16.mxu1 %v5144_v25  ;;  %v1001_v20 = vld [vmem:[#allocation11 + $0x1c8] sm:$0xff]  ;;  %v5290_v25 = vpack.c.bf16 %v970_v18, %v954_v17 }
 0x369   :  { %v5164_v28 = vpack.c.bf16 %v1001_v20, %v985_v19  ;;  %v1112_v19 = vld [vmem:[#allocation11 + $0x540] sm:$0xff] }
 0x36a   :  { %5019 = vmatpush1.bf16.msra.mxu0 %v5018_v31  ;;  %v1017_v31 = vld [vmem:[#allocation11 + $0x248] sm:$0xff]  ;;  %v1128_v20 = vld [vmem:[#allocation11 + $0x5c0] sm:$0xff] }
 0x36b   :  { %5147 = vmatpush1.bf16.msra.mxu1 %v5146_v32  ;;  %5021 = vmatprep.subr.bf16.mxu0 %v5020_v33  ;;  %v1033_v32 = vld [vmem:[#allocation11 + $0x2c8] sm:$0xff]  ;;  %v5292_v33 = vpack.c.bf16 %v1003_v24, %v987_v22  ;;  %v5308_v22 = vpack.c.bf16 %v1131_v30, %v1115_v15  ;;  %v1130_v24 = vld [vmem:[#allocation11 + $0x5d0] sm:$0xff] }
 0x36c   :  { %5149 = vmatprep.subr.bf16.mxu1 %v5148_v38  ;;  %v5294_v38 = vpack.c.bf16 %v1002_v29, %v986_v23  ;;  %v5168_v39 = vpack.c.bf16 %v1033_v32, %v1017_v31  ;;  %v1163_v23 = vld [vmem:[#allocation11 + $0x6d8] sm:$0xff]  ;;  %v1144_v32 = vld [vmem:[#allocation11 + $0x640] sm:$0xff]  ;;  %v1242_v15 = vld [vmem:[#allocation11 + $0x950] sm:$0xff] }
 0x36d   :  { %v5312_v36 = vpack.c.bf16 %v1163_v23, %v1147_v27  ;;  %v1274_v27 = vld [vmem:[#allocation11 + $0xa50] sm:$0xff] }
 0x36e   :  { %5023 = vmatpush1.bf16.msra.mxu0 %v5022_v48  ;;  %v1034_v48 = vld [vmem:[#allocation11 + $0x2d0] sm:$0xff] }
 0x36f   :  { %5151 = vmatpush1.bf16.msra.mxu1 %v5150_v49  ;;  %5025 = vmatprep.subr.bf16.mxu0 %v5024_v50  ;;  %v1049_v49 = vld [vmem:[#allocation11 + $0x348] sm:$0xff] }
 0x370   :  { %5153 = vmatprep.subr.bf16.mxu1 %v5152_v56  ;;  %v1065_v50 = vld [vmem:[#allocation11 + $0x3c8] sm:$0xff]  ;;  %v5298_v56 = vpack.c.bf16 %v1034_v48, %v1018_v46 }
 0x371   :  { %v5172_v57 = vpack.c.bf16 %v1065_v50, %v1049_v49  ;;  %v1176_v49 = vld [vmem:[#allocation11 + $0x740] sm:$0xff] }
 0x372   :  { %5027 = vmatpush1.bf16.msra.mxu0 %v5026_v63  ;;  %v1066_v63 = vld [vmem:[#allocation11 + $0x3d0] sm:$0xff]  ;;  %v1192_v50 = vld [vmem:[#allocation11 + $0x7c0] sm:$0xff] }
 0x373   :  { %5155 = vmatpush1.bf16.msra.mxu1 %v5154_v0  ;;  %5029 = vmatprep.subr.bf16.mxu0 %v5028_v1  ;;  %v1081_v0 = vld [vmem:[#allocation11 + $0x448] sm:$0xff] }
 0x374   :  { %5157 = vmatprep.subr.bf16.mxu1 %v5156_v7  ;;  %v1097_v1 = vld [vmem:[#allocation11 + $0x4c8] sm:$0xff]  ;;  %v5302_v7 = vpack.c.bf16 %v1066_v63, %v1050_v61  ;;  %v5190_v61 = vpack.c.bf16 %v1192_v50, %v1176_v49  ;;  %v1339_v49 = vld [vmem:[#allocation11 + $0xc58] sm:$0xff] }
 0x375   :  { %v5176_v8 = vpack.c.bf16 %v1097_v1, %v1081_v0  ;;  %v1208_v0 = vld [vmem:[#allocation11 + $0x840] sm:$0xff]  ;;  %v1355_v50 = vld [vmem:[#allocation11 + $0xcd8] sm:$0xff] }
 0x376   :  { %5031 = vmatpush1.bf16.msra.mxu0 %v5030_v13  ;;  %v1098_v13 = vld [vmem:[#allocation11 + $0x4d0] sm:$0xff]  ;;  %v1224_v1 = vld [vmem:[#allocation11 + $0x8c0] sm:$0xff]  ;;  %v5336_v60 = vpack.c.bf16 %v1355_v50, %v1339_v49 }
 0x377   :  { %5159 = vmatpush1.bf16.msra.mxu1 %v5158_v14  ;;  %5161 = vmatprep.subr.bf16.mxu0 %v5160_v43  ;;  %v1113_v14 = vld [vmem:[#allocation11 + $0x548] sm:$0xff]  ;;  %v5306_v17 = vpack.c.bf16 %v1098_v13, %v1082_v11  ;;  %v5194_v11 = vpack.c.bf16 %v1224_v1, %v1208_v0  ;;  %v1371_v0 = vld [vmem:[#allocation11 + $0xd58] sm:$0xff]  ;;  %v1466_v50 = vld [vmem:[#allocation11 + $0x1050] sm:$0xff] }
 0x378   :  { %5289 = vmatprep.subr.bf16.mxu1 %v5288_v16  ;;  %v1129_v43 = vld [vmem:[#allocation11 + $0x5c8] sm:$0xff]  ;;  %v5178_v16 = vpack.c.bf16 %v1096_v10, %v1080_v9  ;;  %v1243_v9 = vld [vmem:[#allocation11 + $0x958] sm:$0xff] }
 0x379   :  { %2472 = vmatmul.mubr.f32.vlgmr.msra.gmra.mrb[6].mxu0 %v6446_v26  ;;  %v5180_v18 = vpack.c.bf16 %v1129_v43, %v1113_v14  ;;  %v1259_v10 = vld [vmem:[#allocation11 + $0x9d8] sm:$0xff]  ;;  %v1240_v14 = vld [vmem:[#allocation11 + $0x940] sm:$0xff] }
 0x37a   :  { %2614 = vmatmul.mubr.f32.vlgmr.msra.gmra.mrb[6].mxu1 %v6446_v26  ;;  %5163 = vmatpush1.bf16.msra.mxu0 %v5162_v21  ;;  %v1114_v21 = vld [vmem:[#allocation11 + $0x550] sm:$0xff]  ;;  %v1256_v43 = vld [vmem:[#allocation11 + $0x9c0] sm:$0xff]  ;;  %v5324_v30 = vpack.c.bf16 %v1259_v10, %v1243_v9  ;;  %v1387_v1 = vld [vmem:[#allocation11 + $0xdd8] sm:$0xff] }
 0x37b   :  { %2684 = vmatprep.mubr.f32.mxu0 %v6431_v54  ;;  %5291 = vmatpush1.bf16.msra.mxu1 %v5290_v25  ;;  %v1145_v25 = vld [vmem:[#allocation11 + $0x648] sm:$0xff]  ;;  %v5310_v29 = vpack.c.bf16 %v1130_v24, %v1114_v21  ;;  %v5198_v21 = vpack.c.bf16 %v1256_v43, %v1240_v14  ;;  %v1370_v9 = vld [vmem:[#allocation11 + $0xd50] sm:$0xff]  ;;  %v5340_v10 = vpack.c.bf16 %v1387_v1, %v1371_v0  ;;  %v1403_v14 = vld [vmem:[#allocation11 + $0xe58] sm:$0xff] }
 0x37c   :  { %2826 = vmatprep.mubr.f32.mxu1 %v6431_v54  ;;  %5165 = vmatprep.subr.bf16.mxu0 %v5164_v28  ;;  %v5182_v28 = vpack.c.bf16 %v1128_v20, %v1112_v19  ;;  %v5184_v31 = vpack.c.bf16 %v1161_v35, %v1145_v25  ;;  %v1275_v19 = vld [vmem:[#allocation11 + $0xa58] sm:$0xff]  ;;  %v1272_v25 = vld [vmem:[#allocation11 + $0xa40] sm:$0xff]  ;;  %v1514_v1 = vld [vmem:[#allocation11 + $0x11d0] sm:$0xff] }
 0x37d   :  { %5293 = vmatprep.subr.bf16.mxu1 %v5292_v33  ;;  %v1160_v33 = vld [vmem:[#allocation11 + $0x6c0] sm:$0xff]  ;;  %v1291_v20 = vld [vmem:[#allocation11 + $0xad8] sm:$0xff] }
 0x37e   :  { %5167 = vmatpush1.bf16.msra.mxu0 %v5166_v37  ;;  %v1162_v37 = vld [vmem:[#allocation11 + $0x6d0] sm:$0xff]  ;;  %v5186_v46 = vpack.c.bf16 %v1160_v33, %v1144_v32  ;;  %v1288_v35 = vld [vmem:[#allocation11 + $0xac0] sm:$0xff]  ;;  %v5328_v23 = vpack.c.bf16 %v1291_v20, %v1275_v19  ;;  %v1307_v32 = vld [vmem:[#allocation11 + $0xb58] sm:$0xff] }
 0x37f   :  { %5295 = vmatpush1.bf16.msra.mxu1 %v5294_v38  ;;  %5169 = vmatprep.subr.bf16.mxu0 %v5168_v39  ;;  %v1177_v38 = vld [vmem:[#allocation11 + $0x748] sm:$0xff]  ;;  %v1323_v33 = vld [vmem:[#allocation11 + $0xbd8] sm:$0xff]  ;;  %v1402_v19 = vld [vmem:[#allocation11 + $0xe50] sm:$0xff] }
 0x380   :  { %5297 = vmatprep.subr.bf16.mxu1 %v5296_v47  ;;  %v1193_v39 = vld [vmem:[#allocation11 + $0x7c8] sm:$0xff]  ;;  %v5314_v47 = vpack.c.bf16 %v1162_v37, %v1146_v34  ;;  %v5202_v34 = vpack.c.bf16 %v1288_v35, %v1272_v25  ;;  %v5332_v45 = vpack.c.bf16 %v1323_v33, %v1307_v32  ;;  %v1419_v43 = vld [vmem:[#allocation11 + $0xed8] sm:$0xff]  ;;  %v1434_v32 = vld [vmem:[#allocation11 + $0xf50] sm:$0xff] }
 0x381   :  { %v5188_v48 = vpack.c.bf16 %v1193_v39, %v1177_v38  ;;  %v1304_v38 = vld [vmem:[#allocation11 + $0xb40] sm:$0xff]  ;;  %v5344_v20 = vpack.c.bf16 %v1419_v43, %v1403_v14  ;;  %v1435_v25 = vld [vmem:[#allocation11 + $0xf58] sm:$0xff]  ;;  %v1530_v14 = vld [vmem:[#allocation11 + $0x1250] sm:$0xff] }
 0x382   :  { %5171 = vmatpush1.bf16.msra.mxu0 %v5170_v55  ;;  %v1194_v55 = vld [vmem:[#allocation11 + $0x7d0] sm:$0xff]  ;;  %v1320_v39 = vld [vmem:[#allocation11 + $0xbc0] sm:$0xff]  ;;  %v1451_v35 = vld [vmem:[#allocation11 + $0xfd8] sm:$0xff] }
 0x383   :  { %5299 = vmatpush1.bf16.msra.mxu1 %v5298_v56  ;;  %5173 = vmatprep.subr.bf16.mxu0 %v5172_v57  ;;  %v1209_v56 = vld [vmem:[#allocation11 + $0x848] sm:$0xff]  ;;  %v5348_v33 = vpack.c.bf16 %v1451_v35, %v1435_v25  ;;  %v1562_v25 = vld [vmem:[#allocation11 + $0x1350] sm:$0xff] }
 0x384   :  { %5301 = vmatprep.subr.bf16.mxu1 %v5300_v62  ;;  %v1225_v57 = vld [vmem:[#allocation11 + $0x8c8] sm:$0xff]  ;;  %v5318_v62 = vpack.c.bf16 %v1194_v55, %v1178_v52  ;;  %v5206_v52 = vpack.c.bf16 %v1320_v39, %v1304_v38  ;;  %v1467_v38 = vld [vmem:[#allocation11 + $0x1058] sm:$0xff] }
 0x385   :  { %v5192_v63 = vpack.c.bf16 %v1225_v57, %v1209_v56  ;;  %v1336_v56 = vld [vmem:[#allocation11 + $0xc40] sm:$0xff]  ;;  %v1483_v39 = vld [vmem:[#allocation11 + $0x10d8] sm:$0xff] }
 0x386   :  { %5175 = vmatpush1.bf16.msra.mxu0 %v5174_v5  ;;  %v1226_v5 = vld [vmem:[#allocation11 + $0x8d0] sm:$0xff]  ;;  %v1352_v57 = vld [vmem:[#allocation11 + $0xcc0] sm:$0xff]  ;;  %v5352_v49 = vpack.c.bf16 %v1483_v39, %v1467_v38 }
 0x387   :  { %5303 = vmatpush1.bf16.msra.mxu1 %v5302_v7  ;;  %5177 = vmatprep.subr.bf16.mxu0 %v5176_v8  ;;  %v1241_v7 = vld [vmem:[#allocation11 + $0x948] sm:$0xff]  ;;  %v1594_v38 = vld [vmem:[#allocation11 + $0x1450] sm:$0xff] }
 0x388   :  { %5305 = vmatprep.subr.bf16.mxu1 %v5304_v12  ;;  %v1257_v8 = vld [vmem:[#allocation11 + $0x9c8] sm:$0xff]  ;;  %v5322_v12 = vpack.c.bf16 %v1226_v5, %v1210_v2  ;;  %v5210_v2 = vpack.c.bf16 %v1352_v57, %v1336_v56  ;;  %v1499_v57 = vld [vmem:[#allocation11 + $0x1158] sm:$0xff] }
 0x389   :  { %v5196_v13 = vpack.c.bf16 %v1257_v8, %v1241_v7  ;;  %v1368_v7 = vld [vmem:[#allocation11 + $0xd40] sm:$0xff] }
 0x38a   :  { %5179 = vmatpush1.bf16.msra.mxu0 %v5178_v16  ;;  %v1258_v16 = vld [vmem:[#allocation11 + $0x9d0] sm:$0xff]  ;;  %v1384_v8 = vld [vmem:[#allocation11 + $0xdc0] sm:$0xff] }
 0x38b   :  { %5307 = vmatpush1.bf16.msra.mxu1 %v5306_v17  ;;  %5181 = vmatprep.subr.bf16.mxu0 %v5180_v18  ;;  %v1273_v17 = vld [vmem:[#allocation11 + $0xa48] sm:$0xff] }
 0x38c   :  { %5309 = vmatprep.subr.bf16.mxu1 %v5308_v22  ;;  %v1289_v18 = vld [vmem:[#allocation11 + $0xac8] sm:$0xff]  ;;  %v5326_v22 = vpack.c.bf16 %v1258_v16, %v1242_v15  ;;  %v5214_v15 = vpack.c.bf16 %v1384_v8, %v1368_v7  ;;  %v1531_v7 = vld [vmem:[#allocation11 + $0x1258] sm:$0xff] }
 0x38d   :  { %v5200_v24 = vpack.c.bf16 %v1289_v18, %v1273_v17  ;;  %v1400_v17 = vld [vmem:[#allocation11 + $0xe40] sm:$0xff]  ;;  %v1547_v8 = vld [vmem:[#allocation11 + $0x12d8] sm:$0xff] }
 0x38e   :  { %5183 = vmatpush1.bf16.msra.mxu0 %v5182_v28  ;;  %v1290_v28 = vld [vmem:[#allocation11 + $0xad0] sm:$0xff]  ;;  %v1416_v18 = vld [vmem:[#allocation11 + $0xec0] sm:$0xff]  ;;  %v5360_v43 = vpack.c.bf16 %v1547_v8, %v1531_v7 }
 0x38f   :  { %5311 = vmatpush1.bf16.msra.mxu1 %v5310_v29  ;;  %5185 = vmatprep.subr.bf16.mxu0 %v5184_v31  ;;  %v1305_v29 = vld [vmem:[#allocation11 + $0xb48] sm:$0xff]  ;;  %v1658_v7 = vld [vmem:[#allocation11 + $0x1650] sm:$0xff] }
 0x390   :  { %5313 = vmatprep.subr.bf16.mxu1 %v5312_v36  ;;  %v1321_v31 = vld [vmem:[#allocation11 + $0xbc8] sm:$0xff]  ;;  %v5330_v36 = vpack.c.bf16 %v1290_v28, %v1274_v27  ;;  %v5218_v27 = vpack.c.bf16 %v1416_v18, %v1400_v17  ;;  %v1563_v17 = vld [vmem:[#allocation11 + $0x1358] sm:$0xff] }
 0x391   :  { %v5204_v37 = vpack.c.bf16 %v1321_v31, %v1305_v29  ;;  %v1432_v29 = vld [vmem:[#allocation11 + $0xf40] sm:$0xff]  ;;  %v1579_v18 = vld [vmem:[#allocation11 + $0x13d8] sm:$0xff] }
 0x392   :  { %5187 = vmatpush1.bf16.msra.mxu0 %v5186_v46  ;;  %v1322_v46 = vld [vmem:[#allocation11 + $0xbd0] sm:$0xff]  ;;  %v1448_v31 = vld [vmem:[#allocation11 + $0xfc0] sm:$0xff]  ;;  %v5364_v35 = vpack.c.bf16 %v1579_v18, %v1563_v17 }
 0x393   :  { %5315 = vmatpush1.bf16.msra.mxu1 %v5314_v47  ;;  %5189 = vmatprep.subr.bf16.mxu0 %v5188_v48  ;;  %v1337_v47 = vld [vmem:[#allocation11 + $0xc48] sm:$0xff] }
 0x394   :  { %5317 = vmatprep.subr.bf16.mxu1 %v5316_v53  ;;  %v1353_v48 = vld [vmem:[#allocation11 + $0xcc8] sm:$0xff]  ;;  %v5334_v53 = vpack.c.bf16 %v1322_v46, %v1306_v40  ;;  %v5222_v40 = vpack.c.bf16 %v1448_v31, %v1432_v29  ;;  %v1595_v29 = vld [vmem:[#allocation11 + $0x1458] sm:$0xff] }
 0x395   :  { %v5208_v55 = vpack.c.bf16 %v1353_v48, %v1337_v47  ;;  %v1464_v47 = vld [vmem:[#allocation11 + $0x1040] sm:$0xff]  ;;  %v1611_v31 = vld [vmem:[#allocation11 + $0x14d8] sm:$0xff] }
 0x396   :  { %5191 = vmatpush1.bf16.msra.mxu0 %v5190_v61  ;;  %v1354_v61 = vld [vmem:[#allocation11 + $0xcd0] sm:$0xff]  ;;  %v1480_v48 = vld [vmem:[#allocation11 + $0x10c0] sm:$0xff]  ;;  %v5368_v39 = vpack.c.bf16 %v1611_v31, %v1595_v29 }
 0x397   :  { %5319 = vmatpush1.bf16.msra.mxu1 %v5318_v62  ;;  %5193 = vmatprep.subr.bf16.mxu0 %v5192_v63  ;;  %v1369_v62 = vld [vmem:[#allocation11 + $0xd48] sm:$0xff]  ;;  %v5226_v56 = vpack.c.bf16 %v1480_v48, %v1464_v47  ;;  %v1627_v47 = vld [vmem:[#allocation11 + $0x1558] sm:$0xff] }
 0x398   :  { %5321 = vmatprep.subr.bf16.mxu1 %v5320_v3  ;;  %v1385_v63 = vld [vmem:[#allocation11 + $0xdc8] sm:$0xff]  ;;  %v5338_v3 = vpack.c.bf16 %v1354_v61, %v1338_v58  ;;  %v1515_v58 = vld [vmem:[#allocation11 + $0x11d8] sm:$0xff]  ;;  %v1496_v61 = vld [vmem:[#allocation11 + $0x1140] sm:$0xff] }
 0x399   :  { %v5212_v5 = vpack.c.bf16 %v1385_v63, %v1369_v62  ;;  %v1512_v62 = vld [vmem:[#allocation11 + $0x11c0] sm:$0xff]  ;;  %v1498_v63 = vld [vmem:[#allocation11 + $0x1150] sm:$0xff]  ;;  %v1643_v48 = vld [vmem:[#allocation11 + $0x15d8] sm:$0xff] }
 0x39a   :  { %5195 = vmatpush1.bf16.msra.mxu0 %v5194_v11  ;;  %v1386_v11 = vld [vmem:[#allocation11 + $0xdd0] sm:$0xff] }
 0x39b   :  { %5323 = vmatpush1.bf16.msra.mxu1 %v5322_v12  ;;  %5197 = vmatprep.subr.bf16.mxu0 %v5196_v13  ;;  %v1401_v12 = vld [vmem:[#allocation11 + $0xe48] sm:$0xff] }
 0x39c   :  { %5325 = vmatprep.subr.bf16.mxu1 %v5324_v30  ;;  %v1417_v13 = vld [vmem:[#allocation11 + $0xec8] sm:$0xff]  ;;  %v5342_v30 = vpack.c.bf16 %v1386_v11, %v1370_v9  ;;  %v5230_v9 = vpack.c.bf16 %v1512_v62, %v1496_v61  ;;  %v1659_v62 = vld [vmem:[#allocation11 + $0x1658] sm:$0xff] }
 0x39d   :  { %v5216_v16 = vpack.c.bf16 %v1417_v13, %v1401_v12  ;;  %v1528_v12 = vld [vmem:[#allocation11 + $0x1240] sm:$0xff]  ;;  %v1673_v61 = vld [vmem:[#allocation11 + $0x16c8] sm:$0xff] }
 0x39e   :  { %5199 = vmatpush1.bf16.msra.mxu0 %v5198_v21  ;;  %v1418_v21 = vld [vmem:[#allocation11 + $0xed0] sm:$0xff]  ;;  %v1544_v13 = vld [vmem:[#allocation11 + $0x12c0] sm:$0xff] }
 0x39f   :  { %5327 = vmatpush1.bf16.msra.mxu1 %v5326_v22  ;;  %5201 = vmatprep.subr.bf16.mxu0 %v5200_v24  ;;  %v1433_v22 = vld [vmem:[#allocation11 + $0xf48] sm:$0xff] }
 0x3a0   :  { %5329 = vmatprep.subr.bf16.mxu1 %v5328_v23  ;;  %v1449_v24 = vld [vmem:[#allocation11 + $0xfc8] sm:$0xff]  ;;  %v5346_v23 = vpack.c.bf16 %v1418_v21, %v1402_v19  ;;  %v5234_v19 = vpack.c.bf16 %v1544_v13, %v1528_v12 }
 0x3a1   :  { %v5220_v28 = vpack.c.bf16 %v1449_v24, %v1433_v22  ;;  %v1560_v22 = vld [vmem:[#allocation11 + $0x1340] sm:$0xff]  ;;  %v1689_v12 = vld [vmem:[#allocation11 + $0x1748] sm:$0xff] }
 0x3a2   :  { %5203 = vmatpush1.bf16.msra.mxu0 %v5202_v34  ;;  %v1450_v34 = vld [vmem:[#allocation11 + $0xfd0] sm:$0xff]  ;;  %v1576_v24 = vld [vmem:[#allocation11 + $0x13c0] sm:$0xff]  ;;  %v1705_v13 = vld [vmem:[#allocation11 + $0x17c8] sm:$0xff] }
 0x3a3   :  { %5331 = vmatpush1.bf16.msra.mxu1 %v5330_v36  ;;  %5205 = vmatprep.subr.bf16.mxu0 %v5204_v37  ;;  %v1465_v36 = vld [vmem:[#allocation11 + $0x1048] sm:$0xff]  ;;  %v5252_v18 = vpack.c.bf16 %v1705_v13, %v1689_v12  ;;  %v1835_v12 = vld [vmem:[#allocation11 + $0x1bd8] sm:$0xff] }
 0x3a4   :  { %5333 = vmatprep.subr.bf16.mxu1 %v5332_v45  ;;  %v1481_v37 = vld [vmem:[#allocation11 + $0x10c8] sm:$0xff]  ;;  %v5350_v45 = vpack.c.bf16 %v1450_v34, %v1434_v32  ;;  %v5238_v32 = vpack.c.bf16 %v1576_v24, %v1560_v22  ;;  %v1706_v24 = vld [vmem:[#allocation11 + $0x17d0] sm:$0xff] }
 0x3a5   :  { %v5224_v46 = vpack.c.bf16 %v1481_v37, %v1465_v36  ;;  %v1592_v36 = vld [vmem:[#allocation11 + $0x1440] sm:$0xff] }
 0x3a6   :  { %5207 = vmatpush1.bf16.msra.mxu0 %v5206_v52  ;;  %v1482_v52 = vld [vmem:[#allocation11 + $0x10d0] sm:$0xff]  ;;  %v1608_v37 = vld [vmem:[#allocation11 + $0x14c0] sm:$0xff] }
 0x3a7   :  { %5335 = vmatpush1.bf16.msra.mxu1 %v5334_v53  ;;  %5209 = vmatprep.subr.bf16.mxu0 %v5208_v55  ;;  %v1497_v53 = vld [vmem:[#allocation11 + $0x1148] sm:$0xff] }
 0x3a8   :  { %5337 = vmatprep.subr.bf16.mxu1 %v5336_v60  ;;  %v1513_v55 = vld [vmem:[#allocation11 + $0x11c8] sm:$0xff]  ;;  %v5354_v60 = vpack.c.bf16 %v1482_v52, %v1466_v50 }
 0x3a9   :  { %v5228_v0 = vpack.c.bf16 %v1513_v55, %v1497_v53  ;;  %v1624_v53 = vld [vmem:[#allocation11 + $0x1540] sm:$0xff] }
 0x3aa   :  { %5211 = vmatpush1.bf16.msra.mxu0 %v5210_v2  ;;  %v1529_v2 = vld [vmem:[#allocation11 + $0x1248] sm:$0xff]  ;;  %v1640_v55 = vld [vmem:[#allocation11 + $0x15c0] sm:$0xff] }
 0x3ab   :  { %5339 = vmatpush1.bf16.msra.mxu1 %v5338_v3  ;;  %5213 = vmatprep.subr.bf16.mxu0 %v5212_v5  ;;  %v1545_v3 = vld [vmem:[#allocation11 + $0x12c8] sm:$0xff]  ;;  %v5356_v5 = vpack.c.bf16 %v1515_v58, %v1499_v57  ;;  %v5372_v57 = vpack.c.bf16 %v1643_v48, %v1627_v47  ;;  %v1642_v58 = vld [vmem:[#allocation11 + $0x15d0] sm:$0xff] }
 0x3ac   :  { %5341 = vmatprep.subr.bf16.mxu1 %v5340_v10  ;;  %v5358_v10 = vpack.c.bf16 %v1514_v1, %v1498_v63  ;;  %v5232_v11 = vpack.c.bf16 %v1545_v3, %v1529_v2  ;;  %v1675_v63 = vld [vmem:[#allocation11 + $0x16d8] sm:$0xff]  ;;  %v1656_v3 = vld [vmem:[#allocation11 + $0x1640] sm:$0xff] }
 0x3ae   :  { %5215 = vmatpush1.bf16.msra.mxu0 %v5214_v15  ;;  %v1546_v15 = vld [vmem:[#allocation11 + $0x12d0] sm:$0xff] }
 0x3af   :  { %5343 = vmatpush1.bf16.msra.mxu1 %v5342_v30  ;;  %5217 = vmatprep.subr.bf16.mxu0 %v5216_v16  ;;  %v1561_v30 = vld [vmem:[#allocation11 + $0x1348] sm:$0xff] }
 0x3b0   :  { %5345 = vmatprep.subr.bf16.mxu1 %v5344_v20  ;;  %v1577_v16 = vld [vmem:[#allocation11 + $0x13c8] sm:$0xff]  ;;  %v5362_v20 = vpack.c.bf16 %v1546_v15, %v1530_v14  ;;  %v1691_v15 = vld [vmem:[#allocation11 + $0x1758] sm:$0xff] }
 0x3b1   :  { %v5236_v21 = vpack.c.bf16 %v1577_v16, %v1561_v30  ;;  %v1707_v30 = vld [vmem:[#allocation11 + $0x17d8] sm:$0xff] }
 0x3b2   :  { %5219 = vmatpush1.bf16.msra.mxu0 %v5218_v27  ;;  %v1578_v27 = vld [vmem:[#allocation11 + $0x13d0] sm:$0xff]  ;;  %v5380_v22 = vpack.c.bf16 %v1707_v30, %v1691_v15 }
 0x3b3   :  { %5347 = vmatpush1.bf16.msra.mxu1 %v5346_v23  ;;  %5221 = vmatprep.subr.bf16.mxu0 %v5220_v28  ;;  %v1593_v23 = vld [vmem:[#allocation11 + $0x1448] sm:$0xff] }
 0x3b4   :  { %5349 = vmatprep.subr.bf16.mxu1 %v5348_v33  ;;  %v1609_v28 = vld [vmem:[#allocation11 + $0x14c8] sm:$0xff]  ;;  %v5366_v33 = vpack.c.bf16 %v1578_v27, %v1562_v25  ;;  %v1723_v27 = vld [vmem:[#allocation11 + $0x1858] sm:$0xff] }
 0x3b5   :  { %v5240_v34 = vpack.c.bf16 %v1609_v28, %v1593_v23  ;;  %v1721_v25 = vld [vmem:[#allocation11 + $0x1848] sm:$0xff]  ;;  %v1739_v23 = vld [vmem:[#allocation11 + $0x18d8] sm:$0xff] }
 0x3b6   :  { %5223 = vmatpush1.bf16.msra.mxu0 %v5222_v40  ;;  %v1610_v40 = vld [vmem:[#allocation11 + $0x14d0] sm:$0xff] }
 0x3b7   :  { %5351 = vmatpush1.bf16.msra.mxu1 %v5350_v45  ;;  %5225 = vmatprep.subr.bf16.mxu0 %v5224_v46  ;;  %v1625_v45 = vld [vmem:[#allocation11 + $0x1548] sm:$0xff]  ;;  %v5370_v50 = vpack.c.bf16 %v1610_v40, %v1594_v38  ;;  %v1755_v40 = vld [vmem:[#allocation11 + $0x1958] sm:$0xff] }
 0x3b8   :  { %5353 = vmatprep.subr.bf16.mxu1 %v5352_v49  ;;  %v1641_v46 = vld [vmem:[#allocation11 + $0x15c8] sm:$0xff]  ;;  %v5242_v49 = vpack.c.bf16 %v1608_v37, %v1592_v36  ;;  %v5384_v36 = vpack.c.bf16 %v1739_v23, %v1723_v27  ;;  %v1738_v37 = vld [vmem:[#allocation11 + $0x18d0] sm:$0xff] }
 0x3b9   :  { %2685 = vmatmul.mubr.f32.vlgmr.msra.gmra.mrb[8].mxu0 %v6433_v59  ;;  %v5244_v52 = vpack.c.bf16 %v1641_v46, %v1625_v45  ;;  %v1753_v38 = vld [vmem:[#allocation11 + $0x1948] sm:$0xff]  ;;  %v1771_v45 = vld [vmem:[#allocation11 + $0x19d8] sm:$0xff] }
 0x3ba   :  { %2827 = vmatmul.mubr.f32.vlgmr.msra.gmra.mrb[8].mxu1 %v6433_v59  ;;  %5227 = vmatpush1.bf16.msra.mxu0 %v5226_v56  ;;  %v1626_v56 = vld [vmem:[#allocation11 + $0x1550] sm:$0xff] }
 0x3bb   :  { %2755 = vmatprep.mubr.f32.mxu0 %v6437_v4  ;;  %5355 = vmatpush1.bf16.msra.mxu1 %v5354_v60  ;;  %v1657_v60 = vld [vmem:[#allocation11 + $0x1648] sm:$0xff]  ;;  %v5374_v1 = vpack.c.bf16 %v1642_v58, %v1626_v56  ;;  %v1787_v58 = vld [vmem:[#allocation11 + $0x1a58] sm:$0xff] }
 0x3bc   :  { %2897 = vmatprep.mubr.f32.mxu1 %v6437_v4  ;;  %5229 = vmatprep.subr.bf16.mxu0 %v5228_v0  ;;  %v5246_v0 = vpack.c.bf16 %v1640_v55, %v1624_v53  ;;  %v5248_v2 = vpack.c.bf16 %v1673_v61, %v1657_v60  ;;  %v5388_v53 = vpack.c.bf16 %v1771_v45, %v1755_v40  ;;  %v1770_v55 = vld [vmem:[#allocation11 + $0x19d0] sm:$0xff]  ;;  %v1785_v56 = vld [vmem:[#allocation11 + $0x1a48] sm:$0xff]  ;;  %v1803_v60 = vld [vmem:[#allocation11 + $0x1ad8] sm:$0xff] }
 0x3bd   :  { %5357 = vmatprep.subr.bf16.mxu1 %v5356_v5  ;;  %v1672_v5 = vld [vmem:[#allocation11 + $0x16c0] sm:$0xff] }
 0x3be   :  { %5231 = vmatpush1.bf16.msra.mxu0 %v5230_v9  ;;  %v5250_v16 = vpack.c.bf16 %v1672_v5, %v1656_v3  ;;  %v5392_v3 = vpack.c.bf16 %v1803_v60, %v1787_v58  ;;  %v1802_v5 = vld [vmem:[#allocation11 + $0x1ad0] sm:$0xff] }
 0x3bf   :  { %5359 = vmatpush1.bf16.msra.mxu1 %v5358_v10  ;;  %5233 = vmatprep.subr.bf16.mxu0 %v5232_v11  ;;  %v5376_v10 = vpack.c.bf16 %v1675_v63, %v1659_v62  ;;  %v1674_v11 = vld [vmem:[#allocation11 + $0x16d0] sm:$0xff] }
 0x3c0   :  { %5361 = vmatprep.subr.bf16.mxu1 %v5360_v43  ;;  %v5378_v17 = vpack.c.bf16 %v1674_v11, %v1658_v7  ;;  %v1817_v7 = vld [vmem:[#allocation11 + $0x1b48] sm:$0xff]  ;;  %v1819_v11 = vld [vmem:[#allocation11 + $0x1b58] sm:$0xff] }
 0x3c2   :  { %5235 = vmatpush1.bf16.msra.mxu0 %v5234_v19  ;;  %v1688_v19 = vld [vmem:[#allocation11 + $0x1740] sm:$0xff] }
 0x3c3   :  { %5363 = vmatpush1.bf16.msra.mxu1 %v5362_v20  ;;  %5237 = vmatprep.subr.bf16.mxu0 %v5236_v21  ;;  %v1704_v20 = vld [vmem:[#allocation11 + $0x17c0] sm:$0xff]  ;;  %v1690_v21 = vld [vmem:[#allocation11 + $0x1750] sm:$0xff] }
 0x3c4   :  { %5365 = vmatprep.subr.bf16.mxu1 %v5364_v35  ;;  %v1737_v35 = vld [vmem:[#allocation11 + $0x18c8] sm:$0xff]  ;;  %v5254_v28 = vpack.c.bf16 %v1704_v20, %v1688_v19  ;;  %v5382_v29 = vpack.c.bf16 %v1706_v24, %v1690_v21  ;;  %v5396_v19 = vpack.c.bf16 %v1835_v12, %v1819_v11  ;;  %v1834_v20 = vld [vmem:[#allocation11 + $0x1bd0] sm:$0xff]  ;;  %v1851_v24 = vld [vmem:[#allocation11 + $0x1c58] sm:$0xff] }
 0x3c5   :  { %v5256_v31 = vpack.c.bf16 %v1737_v35, %v1721_v25  ;;  %v1849_v21 = vld [vmem:[#allocation11 + $0x1c48] sm:$0xff]  ;;  %v1867_v25 = vld [vmem:[#allocation11 + $0x1cd8] sm:$0xff] }
 0x3c6   :  { %5239 = vmatpush1.bf16.msra.mxu0 %v5238_v32  ;;  %v1720_v32 = vld [vmem:[#allocation11 + $0x1840] sm:$0xff] }
 0x3c7   :  { %5367 = vmatpush1.bf16.msra.mxu1 %v5366_v33  ;;  %5241 = vmatprep.subr.bf16.mxu0 %v5240_v34  ;;  %v1736_v33 = vld [vmem:[#allocation11 + $0x18c0] sm:$0xff]  ;;  %v1722_v34 = vld [vmem:[#allocation11 + $0x1850] sm:$0xff] }
 0x3c8   :  { %5369 = vmatprep.subr.bf16.mxu1 %v5368_v39  ;;  %v1769_v39 = vld [vmem:[#allocation11 + $0x19c8] sm:$0xff]  ;;  %v5258_v46 = vpack.c.bf16 %v1736_v33, %v1720_v32  ;;  %v5386_v47 = vpack.c.bf16 %v1738_v37, %v1722_v34  ;;  %v5400_v32 = vpack.c.bf16 %v1867_v25, %v1851_v24  ;;  %v1866_v33 = vld [vmem:[#allocation11 + $0x1cd0] sm:$0xff]  ;;  %v1883_v37 = vld [vmem:[#allocation11 + $0x1d58] sm:$0xff] }
 0x3c9   :  { %v5260_v48 = vpack.c.bf16 %v1769_v39, %v1753_v38  ;;  %v1881_v34 = vld [vmem:[#allocation11 + $0x1d48] sm:$0xff]  ;;  %v1899_v38 = vld [vmem:[#allocation11 + $0x1dd8] sm:$0xff] }
 0x3ca   :  { %5243 = vmatpush1.bf16.msra.mxu0 %v5242_v49  ;;  %v1752_v49 = vld [vmem:[#allocation11 + $0x1940] sm:$0xff] }
 0x3cb   :  { %5371 = vmatpush1.bf16.msra.mxu1 %v5370_v50  ;;  %5245 = vmatprep.subr.bf16.mxu0 %v5244_v52  ;;  %v1768_v50 = vld [vmem:[#allocation11 + $0x19c0] sm:$0xff]  ;;  %v1754_v52 = vld [vmem:[#allocation11 + $0x1950] sm:$0xff] }
 0x3cc   :  { %v6464_v8 = vpop.f32.mrb[4].mxu0  ;;  %v6466_v9 = vpop.f32.mrb[4].mxu1  ;;  %5373 = vmatprep.subr.bf16.mxu1 %v5372_v57  ;;  %v1801_v57 = vld [vmem:[#allocation11 + $0x1ac8] sm:$0xff]  ;;  %v5262_v61 = vpack.c.bf16 %v1768_v50, %v1752_v49  ;;  %v5390_v62 = vpack.c.bf16 %v1770_v55, %v1754_v52  ;;  %v5404_v49 = vpack.c.bf16 %v1899_v38, %v1883_v37  ;;  %v1898_v50 = vld [vmem:[#allocation11 + $0x1dd0] sm:$0xff]  ;;  %v1915_v55 = vld [vmem:[#allocation11 + $0x1e58] sm:$0xff] }
 0x3cd   :  { %v6468_v14 = vpop.f32.mrb[5].mxu0  ;;  %v6470_v43 = vpop.f32.mrb[5].mxu1  ;;  %v5264_v63 = vpack.c.bf16 %v1801_v57, %v1785_v56  ;;  %v1913_v52 = vld [vmem:[#allocation11 + $0x1e48] sm:$0xff]  ;;  %v1931_v56 = vld [vmem:[#allocation11 + $0x1ed8] sm:$0xff]  ;;  %v988_v38 = vld [vmem:[#allocation11 + $0x160] sm:$0xff] }
 0x3ce   :  { %5247 = vmatpush1.bf16.msra.mxu0 %v5246_v0  ;;  %v1784_v0 = vld [vmem:[#allocation11 + $0x1a40] sm:$0xff] }
 0x3cf   :  { %5375 = vmatpush1.bf16.msra.mxu1 %v5374_v1  ;;  %5249 = vmatprep.subr.bf16.mxu0 %v5248_v2  ;;  %v1800_v1 = vld [vmem:[#allocation11 + $0x1ac0] sm:$0xff]  ;;  %v1786_v2 = vld [vmem:[#allocation11 + $0x1a50] sm:$0xff] }
 0x3d0   :  { %5377 = vmatprep.subr.bf16.mxu1 %v5376_v10  ;;  %v1833_v10 = vld [vmem:[#allocation11 + $0x1bc8] sm:$0xff]  ;;  %v5266_v13 = vpack.c.bf16 %v1800_v1, %v1784_v0  ;;  %v5394_v15 = vpack.c.bf16 %v1802_v5, %v1786_v2  ;;  %v5408_v0 = vpack.c.bf16 %v1931_v56, %v1915_v55  ;;  %v1930_v1 = vld [vmem:[#allocation11 + $0x1ed0] sm:$0xff]  ;;  %v1947_v5 = vld [vmem:[#allocation11 + $0x1f58] sm:$0xff] }
 0x3d1   :  { %v5268_v30 = vpack.c.bf16 %v1833_v10, %v1817_v7  ;;  %v1945_v2 = vld [vmem:[#allocation11 + $0x1f48] sm:$0xff]  ;;  %v1963_v7 = vld [vmem:[#allocation11 + $0x1fd8] sm:$0xff] }
 0x3d2   :  { %5251 = vmatpush1.bf16.msra.mxu0 %v5250_v16  ;;  %v1816_v16 = vld [vmem:[#allocation11 + $0x1b40] sm:$0xff] }
 0x3d3   :  { %5379 = vmatpush1.bf16.msra.mxu1 %v5378_v17  ;;  %5253 = vmatprep.subr.bf16.mxu0 %v5252_v18  ;;  %v1832_v17 = vld [vmem:[#allocation11 + $0x1bc0] sm:$0xff]  ;;  %v1818_v18 = vld [vmem:[#allocation11 + $0x1b50] sm:$0xff] }
 0x3d4   :  { %5381 = vmatprep.subr.bf16.mxu1 %v5380_v22  ;;  %v1865_v22 = vld [vmem:[#allocation11 + $0x1cc8] sm:$0xff]  ;;  %v5270_v35 = vpack.c.bf16 %v1832_v17, %v1816_v16  ;;  %v5398_v27 = vpack.c.bf16 %v1834_v20, %v1818_v18  ;;  %v5412_v16 = vpack.c.bf16 %v1963_v7, %v1947_v5  ;;  %v1962_v17 = vld [vmem:[#allocation11 + $0x1fd0] sm:$0xff]  ;;  %v959_v20 = vld [vmem:[#allocation11 + $0x78] sm:$0xff] }
 0x3d5   :  { %v5272_v23 = vpack.c.bf16 %v1865_v22, %v1849_v21  ;;  %v957_v18 = vld [vmem:[#allocation11 + $0x68] sm:$0xff]  ;;  %v975_v21 = vld [vmem:[#allocation11 + $0xf8] sm:$0xff] }
 0x3d6   :  { %5255 = vmatpush1.bf16.msra.mxu0 %v5254_v28  ;;  %v1848_v28 = vld [vmem:[#allocation11 + $0x1c40] sm:$0xff] }
 0x3d7   :  { %5383 = vmatpush1.bf16.msra.mxu1 %v5382_v29  ;;  %5257 = vmatprep.subr.bf16.mxu0 %v5256_v31  ;;  %v1864_v29 = vld [vmem:[#allocation11 + $0x1cc0] sm:$0xff]  ;;  %v1850_v31 = vld [vmem:[#allocation11 + $0x1c50] sm:$0xff] }
 0x3d8   :  { %5385 = vmatprep.subr.bf16.mxu1 %v5384_v36  ;;  %v1897_v36 = vld [vmem:[#allocation11 + $0x1dc8] sm:$0xff]  ;;  %v5274_v39 = vpack.c.bf16 %v1864_v29, %v1848_v28  ;;  %v5402_v40 = vpack.c.bf16 %v1866_v33, %v1850_v31  ;;  %v958_v28 = vld [vmem:[#allocation11 + $0x70] sm:$0xff] }
 0x3d9   :  { %v5276_v45 = vpack.c.bf16 %v1897_v36, %v1881_v34  ;;  %v974_v29 = vld [vmem:[#allocation11 + $0xf0] sm:$0xff]  ;;  %v989_v31 = vld [vmem:[#allocation11 + $0x168] sm:$0xff]  ;;  %v991_v34 = vld [vmem:[#allocation11 + $0x178] sm:$0xff] }
 0x3da   :  { %5259 = vmatpush1.bf16.msra.mxu0 %v5258_v46  ;;  %v1880_v46 = vld [vmem:[#allocation11 + $0x1d40] sm:$0xff]  ;;  %v1007_v36 = vld [vmem:[#allocation11 + $0x1f8] sm:$0xff]  ;;  %v5546_v37 = vpack.c.bf16 %v974_v29, %v958_v28 }
 0x3db   :  { %5387 = vmatpush1.bf16.msra.mxu1 %v5386_v47  ;;  %5261 = vmatprep.subr.bf16.mxu0 %v5260_v48  ;;  %v1896_v47 = vld [vmem:[#allocation11 + $0x1dc0] sm:$0xff]  ;;  %v1882_v48 = vld [vmem:[#allocation11 + $0x1d50] sm:$0xff]  ;;  %v1119_v28 = vld [vmem:[#allocation11 + $0x578] sm:$0xff] }
 0x3dc   :  { %5389 = vmatprep.subr.bf16.mxu1 %v5388_v53  ;;  %v1929_v53 = vld [vmem:[#allocation11 + $0x1ec8] sm:$0xff]  ;;  %v5278_v57 = vpack.c.bf16 %v1896_v47, %v1880_v46  ;;  %v5406_v58 = vpack.c.bf16 %v1898_v50, %v1882_v48  ;;  %v1006_v46 = vld [vmem:[#allocation11 + $0x1f0] sm:$0xff]  ;;  %v1023_v50 = vld [vmem:[#allocation11 + $0x278] sm:$0xff] }
 0x3dd   :  { %v5280_v60 = vpack.c.bf16 %v1929_v53, %v1913_v52  ;;  %v1021_v47 = vld [vmem:[#allocation11 + $0x268] sm:$0xff]  ;;  %v1039_v52 = vld [vmem:[#allocation11 + $0x2f8] sm:$0xff] }
 0x3de   :  { %5263 = vmatpush1.bf16.msra.mxu0 %v5262_v61  ;;  %v1912_v61 = vld [vmem:[#allocation11 + $0x1e40] sm:$0xff]  ;;  %v1037_v48 = vld [vmem:[#allocation11 + $0x2e8] sm:$0xff]  ;;  %v1135_v29 = vld [vmem:[#allocation11 + $0x5f8] sm:$0xff] }
 0x3df   :  { %5391 = vmatpush1.bf16.msra.mxu1 %v5390_v62  ;;  %5265 = vmatprep.subr.bf16.mxu0 %v5264_v63  ;;  %v1928_v62 = vld [vmem:[#allocation11 + $0x1ec0] sm:$0xff]  ;;  %v1914_v63 = vld [vmem:[#allocation11 + $0x1e50] sm:$0xff]  ;;  %v5424_v56 = vpack.c.bf16 %v1037_v48, %v1021_v47  ;;  %v1167_v47 = vld [vmem:[#allocation11 + $0x6f8] sm:$0xff] }
 0x3e0   :  { %5393 = vmatprep.subr.bf16.mxu1 %v5392_v3  ;;  %v1961_v3 = vld [vmem:[#allocation11 + $0x1fc8] sm:$0xff]  ;;  %v5282_v10 = vpack.c.bf16 %v1928_v62, %v1912_v61  ;;  %v5410_v11 = vpack.c.bf16 %v1930_v1, %v1914_v63  ;;  %v5552_v61 = vpack.c.bf16 %v1039_v52, %v1023_v50  ;;  %v1038_v62 = vld [vmem:[#allocation11 + $0x2f0] sm:$0xff]  ;;  %v1055_v1 = vld [vmem:[#allocation11 + $0x378] sm:$0xff] }
 0x3e1   :  { %v5284_v12 = vpack.c.bf16 %v1961_v3, %v1945_v2  ;;  %v1053_v63 = vld [vmem:[#allocation11 + $0x368] sm:$0xff]  ;;  %v1071_v2 = vld [vmem:[#allocation11 + $0x3f8] sm:$0xff]  ;;  %v1148_v52 = vld [vmem:[#allocation11 + $0x660] sm:$0xff] }
 0x3e2   :  { %5267 = vmatpush1.bf16.msra.mxu0 %v5266_v13  ;;  %v1944_v13 = vld [vmem:[#allocation11 + $0x1f40] sm:$0xff] }
 0x3e3   :  { %5395 = vmatpush1.bf16.msra.mxu1 %v5394_v15  ;;  %5269 = vmatprep.subr.bf16.mxu0 %v5268_v30  ;;  %v1960_v15 = vld [vmem:[#allocation11 + $0x1fc0] sm:$0xff]  ;;  %v1946_v30 = vld [vmem:[#allocation11 + $0x1f50] sm:$0xff] }
 0x3e4   :  { %5397 = vmatprep.subr.bf16.mxu1 %v5396_v19  ;;  %v973_v19 = vld [vmem:[#allocation11 + $0xe8] sm:$0xff]  ;;  %v5286_v22 = vpack.c.bf16 %v1960_v15, %v1944_v13  ;;  %v5414_v24 = vpack.c.bf16 %v1962_v17, %v1946_v30  ;;  %v5556_v13 = vpack.c.bf16 %v1071_v2, %v1055_v1  ;;  %v1103_v17 = vld [vmem:[#allocation11 + $0x4f8] sm:$0xff]  ;;  %v1180_v2 = vld [vmem:[#allocation11 + $0x760] sm:$0xff] }
 0x3e5   :  { %v5416_v25 = vpack.c.bf16 %v973_v19, %v957_v18  ;;  %v1085_v15 = vld [vmem:[#allocation11 + $0x468] sm:$0xff] }
 0x3e6   :  { %5271 = vmatpush1.bf16.msra.mxu0 %v5270_v35  ;;  %v956_v35 = vld [vmem:[#allocation11 + $0x60] sm:$0xff]  ;;  %v1101_v30 = vld [vmem:[#allocation11 + $0x4e8] sm:$0xff] }
 0x3e7   :  { %5399 = vmatpush1.bf16.msra.mxu1 %v5398_v27  ;;  %5273 = vmatprep.subr.bf16.mxu0 %v5272_v23  ;;  %v972_v27 = vld [vmem:[#allocation11 + $0xe0] sm:$0xff]  ;;  %v5544_v23 = vpack.c.bf16 %v975_v21, %v959_v20  ;;  %v5432_v20 = vpack.c.bf16 %v1101_v30, %v1085_v15 }
 0x3e8   :  { %5401 = vmatprep.subr.bf16.mxu1 %v5400_v32  ;;  %v1005_v32 = vld [vmem:[#allocation11 + $0x1e8] sm:$0xff]  ;;  %v5418_v33 = vpack.c.bf16 %v972_v27, %v956_v35  ;;  %v1084_v21 = vld [vmem:[#allocation11 + $0x460] sm:$0xff]  ;;  %v1102_v35 = vld [vmem:[#allocation11 + $0x4f0] sm:$0xff] }
 0x3e9   :  { %v1117_v27 = vld [vmem:[#allocation11 + $0x568] sm:$0xff] }
 0x3ea   :  { %5275 = vmatpush1.bf16.msra.mxu0 %v5274_v39  ;;  %v1004_v39 = vld [vmem:[#allocation11 + $0x1e0] sm:$0xff] }
 0x3eb   :  { %5403 = vmatpush1.bf16.msra.mxu1 %v5402_v40  ;;  %5277 = vmatprep.subr.bf16.mxu0 %v5276_v45  ;;  %v990_v40 = vld [vmem:[#allocation11 + $0x170] sm:$0xff]  ;;  %v5420_v45 = vpack.c.bf16 %v1005_v32, %v989_v31  ;;  %v5422_v53 = vpack.c.bf16 %v1004_v39, %v988_v38  ;;  %v5564_v38 = vpack.c.bf16 %v1135_v29, %v1119_v28  ;;  %v1244_v29 = vld [vmem:[#allocation11 + $0x960] sm:$0xff] }
 0x3ec   :  { %5405 = vmatprep.subr.bf16.mxu1 %v5404_v49  ;;  %v5548_v49 = vpack.c.bf16 %v1007_v36, %v991_v34  ;;  %v5550_v55 = vpack.c.bf16 %v1006_v46, %v990_v40  ;;  %v1116_v34 = vld [vmem:[#allocation11 + $0x560] sm:$0xff]  ;;  %v1134_v39 = vld [vmem:[#allocation11 + $0x5f0] sm:$0xff]  ;;  %v1149_v40 = vld [vmem:[#allocation11 + $0x668] sm:$0xff] }
 0x3ed   :  { %v1132_v36 = vld [vmem:[#allocation11 + $0x5e0] sm:$0xff]  ;;  %v1151_v46 = vld [vmem:[#allocation11 + $0x678] sm:$0xff] }
 0x3ee   :  { %5279 = vmatpush1.bf16.msra.mxu0 %v5278_v57  ;;  %v1020_v57 = vld [vmem:[#allocation11 + $0x260] sm:$0xff]  ;;  %v5438_v48 = vpack.c.bf16 %v1132_v36, %v1116_v34  ;;  %v1262_v34 = vld [vmem:[#allocation11 + $0x9f0] sm:$0xff]  ;;  %v1277_v36 = vld [vmem:[#allocation11 + $0xa68] sm:$0xff] }
 0x3ef   :  { %5407 = vmatpush1.bf16.msra.mxu1 %v5406_v58  ;;  %5281 = vmatprep.subr.bf16.mxu0 %v5280_v60  ;;  %v1036_v58 = vld [vmem:[#allocation11 + $0x2e0] sm:$0xff]  ;;  %v1022_v60 = vld [vmem:[#allocation11 + $0x270] sm:$0xff] }
 0x3f0   :  { %5409 = vmatprep.subr.bf16.mxu1 %v5408_v0  ;;  %v1069_v0 = vld [vmem:[#allocation11 + $0x3e8] sm:$0xff]  ;;  %v5426_v3 = vpack.c.bf16 %v1036_v58, %v1020_v57  ;;  %v5554_v5 = vpack.c.bf16 %v1038_v62, %v1022_v60  ;;  %v1166_v57 = vld [vmem:[#allocation11 + $0x6f0] sm:$0xff]  ;;  %v1199_v62 = vld [vmem:[#allocation11 + $0x7f8] sm:$0xff] }
 0x3f1   :  { %v5428_v7 = vpack.c.bf16 %v1069_v0, %v1053_v63  ;;  %v1181_v58 = vld [vmem:[#allocation11 + $0x768] sm:$0xff] }
 0x3f2   :  { %5283 = vmatpush1.bf16.msra.mxu0 %v5282_v10  ;;  %v1052_v10 = vld [vmem:[#allocation11 + $0x360] sm:$0xff]  ;;  %v1197_v60 = vld [vmem:[#allocation11 + $0x7e8] sm:$0xff] }
 0x3f3   :  { %5411 = vmatpush1.bf16.msra.mxu1 %v5410_v11  ;;  %5285 = vmatprep.subr.bf16.mxu0 %v5284_v12  ;;  %v1068_v11 = vld [vmem:[#allocation11 + $0x3e0] sm:$0xff]  ;;  %v1054_v12 = vld [vmem:[#allocation11 + $0x370] sm:$0xff]  ;;  %v5444_v1 = vpack.c.bf16 %v1197_v60, %v1181_v58 }
 0x3f4   :  { %5413 = vmatprep.subr.bf16.mxu1 %v5412_v16  ;;  %v1087_v16 = vld [vmem:[#allocation11 + $0x478] sm:$0xff]  ;;  %v5430_v18 = vpack.c.bf16 %v1068_v11, %v1052_v10  ;;  %v1198_v10 = vld [vmem:[#allocation11 + $0x7f0] sm:$0xff]  ;;  %v1213_v11 = vld [vmem:[#allocation11 + $0x868] sm:$0xff] }
 0x3f6   :  { %5287 = vmatpush1.bf16.msra.mxu0 %v5286_v22  ;;  %v1100_v22 = vld [vmem:[#allocation11 + $0x4e0] sm:$0xff] }
 0x3f7   :  { %5415 = vmatpush1.bf16.msra.mxu1 %v5414_v24  ;;  %5417 = vmatprep.subr.bf16.mxu0 %v5416_v25  ;;  %v1086_v24 = vld [vmem:[#allocation11 + $0x470] sm:$0xff]  ;;  %v5560_v25 = vpack.c.bf16 %v1103_v17, %v1087_v16  ;;  %v5434_v31 = vpack.c.bf16 %v1100_v22, %v1084_v21  ;;  %v1212_v17 = vld [vmem:[#allocation11 + $0x860] sm:$0xff]  ;;  %v1245_v22 = vld [vmem:[#allocation11 + $0x968] sm:$0xff] }
 0x3f8   :  { %5545 = vmatprep.subr.bf16.mxu1 %v5544_v23  ;;  %v1133_v23 = vld [vmem:[#allocation11 + $0x5e8] sm:$0xff]  ;;  %v5562_v32 = vpack.c.bf16 %v1102_v35, %v1086_v24  ;;  %v1230_v21 = vld [vmem:[#allocation11 + $0x8f0] sm:$0xff]  ;;  %v1263_v35 = vld [vmem:[#allocation11 + $0x9f8] sm:$0xff] }
 0x3f9   :  { %2756 = vmatmul.mubr.f32.vlgmr.msra.gmra.mrb[8].mxu0 %v6446_v26  ;;  %v1261_v24 = vld [vmem:[#allocation11 + $0x9e8] sm:$0xff] }
 0x3fa   :  { %2898 = vmatmul.mubr.f32.vlgmr.msra.gmra.mrb[8].mxu1 %v6446_v26  ;;  %5419 = vmatpush1.bf16.msra.mxu0 %v5418_v33  ;;  %v5436_v33 = vpack.c.bf16 %v1133_v23, %v1117_v27  ;;  %v5452_v28 = vpack.c.bf16 %v1261_v24, %v1245_v22 }
 0x3fb   :  { %2968 = vmatprep.mubr.f32.mxu0 %v6431_v54  ;;  %5547 = vmatpush1.bf16.msra.mxu1 %v5546_v37  ;;  %v1118_v37 = vld [vmem:[#allocation11 + $0x570] sm:$0xff] }
 0x3fc   :  { %3110 = vmatprep.mubr.f32.mxu1 %v6431_v54  ;;  %5421 = vmatprep.subr.bf16.mxu0 %v5420_v45  ;;  %v1070_v54 = vld [vmem:[#allocation11 + $0x3f0] sm:$0xff]  ;;  %v1165_v45 = vld [vmem:[#allocation11 + $0x6e8] sm:$0xff] }
 0x3fd   :  { %5549 = vmatprep.subr.bf16.mxu1 %v5548_v49  ;;  %v5558_v19 = vpack.c.bf16 %v1070_v54, %v1054_v12  ;;  %v5566_v49 = vpack.c.bf16 %v1134_v39, %v1118_v37  ;;  %v5440_v50 = vpack.c.bf16 %v1165_v45, %v1149_v40  ;;  %v1229_v12 = vld [vmem:[#allocation11 + $0x8e8] sm:$0xff]  ;;  %v1231_v54 = vld [vmem:[#allocation11 + $0x8f8] sm:$0xff] }
 0x3fe   :  { %5423 = vmatpush1.bf16.msra.mxu0 %v5422_v53  ;;  %v1164_v53 = vld [vmem:[#allocation11 + $0x6e0] sm:$0xff]  ;;  %v5448_v16 = vpack.c.bf16 %v1229_v12, %v1213_v11  ;;  %v1293_v37 = vld [vmem:[#allocation11 + $0xae8] sm:$0xff]  ;;  %v1295_v39 = vld [vmem:[#allocation11 + $0xaf8] sm:$0xff] }
 0x3ff   :  { %5551 = vmatpush1.bf16.msra.mxu1 %v5550_v55  ;;  %5425 = vmatprep.subr.bf16.mxu0 %v5424_v56  ;;  %v1150_v55 = vld [vmem:[#allocation11 + $0x670] sm:$0xff]  ;;  %v5568_v56 = vpack.c.bf16 %v1167_v47, %v1151_v46  ;;  %v5442_v63 = vpack.c.bf16 %v1164_v53, %v1148_v52  ;;  %v5456_v46 = vpack.c.bf16 %v1293_v37, %v1277_v36  ;;  %v1276_v47 = vld [vmem:[#allocation11 + $0xa60] sm:$0xff]  ;;  %v1309_v53 = vld [vmem:[#allocation11 + $0xb68] sm:$0xff] }
 0x400   :  { %5553 = vmatprep.subr.bf16.mxu1 %v5552_v61  ;;  %v1183_v61 = vld [vmem:[#allocation11 + $0x778] sm:$0xff]  ;;  %v5570_v0 = vpack.c.bf16 %v1166_v57, %v1150_v55  ;;  %v1294_v52 = vld [vmem:[#allocation11 + $0xaf0] sm:$0xff]  ;;  %v1325_v55 = vld [vmem:[#allocation11 + $0xbe8] sm:$0xff] }
 0x401   :  { %v1327_v57 = vld [vmem:[#allocation11 + $0xbf8] sm:$0xff] }
 0x402   :  { %5427 = vmatpush1.bf16.msra.mxu0 %v5426_v3  ;;  %v1196_v3 = vld [vmem:[#allocation11 + $0x7e0] sm:$0xff] }
 0x403   :  { %5555 = vmatpush1.bf16.msra.mxu1 %v5554_v5  ;;  %5429 = vmatprep.subr.bf16.mxu0 %v5428_v7  ;;  %v1182_v5 = vld [vmem:[#allocation11 + $0x770] sm:$0xff]  ;;  %v5572_v7 = vpack.c.bf16 %v1199_v62, %v1183_v61  ;;  %v5446_v15 = vpack.c.bf16 %v1196_v3, %v1180_v2  ;;  %v5460_v61 = vpack.c.bf16 %v1325_v55, %v1309_v53  ;;  %v1308_v62 = vld [vmem:[#allocation11 + $0xb60] sm:$0xff]  ;;  %v1341_v3 = vld [vmem:[#allocation11 + $0xc68] sm:$0xff] }
 0x404   :  { %5557 = vmatprep.subr.bf16.mxu1 %v5556_v13  ;;  %v1215_v13 = vld [vmem:[#allocation11 + $0x878] sm:$0xff]  ;;  %v5574_v30 = vpack.c.bf16 %v1198_v10, %v1182_v5  ;;  %v1326_v2 = vld [vmem:[#allocation11 + $0xbf0] sm:$0xff]  ;;  %v1357_v5 = vld [vmem:[#allocation11 + $0xce8] sm:$0xff] }
 0x405   :  { %v1359_v10 = vld [vmem:[#allocation11 + $0xcf8] sm:$0xff] }
 0x406   :  { %5431 = vmatpush1.bf16.msra.mxu0 %v5430_v18  ;;  %v1228_v18 = vld [vmem:[#allocation11 + $0x8e0] sm:$0xff] }
 0x407   :  { %5559 = vmatpush1.bf16.msra.mxu1 %v5558_v19  ;;  %5433 = vmatprep.subr.bf16.mxu0 %v5432_v20  ;;  %v1214_v19 = vld [vmem:[#allocation11 + $0x870] sm:$0xff]  ;;  %v5576_v20 = vpack.c.bf16 %v1231_v54, %v1215_v13  ;;  %v5450_v27 = vpack.c.bf16 %v1228_v18, %v1212_v17  ;;  %v5464_v13 = vpack.c.bf16 %v1357_v5, %v1341_v3  ;;  %v1340_v54 = vld [vmem:[#allocation11 + $0xc60] sm:$0xff]  ;;  %v1373_v18 = vld [vmem:[#allocation11 + $0xd68] sm:$0xff] }
 0x408   :  { %5561 = vmatprep.subr.bf16.mxu1 %v5560_v25  ;;  %v1247_v25 = vld [vmem:[#allocation11 + $0x978] sm:$0xff]  ;;  %v5578_v23 = vpack.c.bf16 %v1230_v21, %v1214_v19  ;;  %v1358_v17 = vld [vmem:[#allocation11 + $0xcf0] sm:$0xff]  ;;  %v1389_v19 = vld [vmem:[#allocation11 + $0xde8] sm:$0xff] }
 0x409   :  { %v1391_v21 = vld [vmem:[#allocation11 + $0xdf8] sm:$0xff] }
 0x40a   :  { %5435 = vmatpush1.bf16.msra.mxu0 %v5434_v31  ;;  %v1260_v31 = vld [vmem:[#allocation11 + $0x9e0] sm:$0xff] }
 0x40b   :  { %5563 = vmatpush1.bf16.msra.mxu1 %v5562_v32  ;;  %5437 = vmatprep.subr.bf16.mxu0 %v5436_v33  ;;  %v1246_v32 = vld [vmem:[#allocation11 + $0x970] sm:$0xff]  ;;  %v5580_v33 = vpack.c.bf16 %v1263_v35, %v1247_v25  ;;  %v5454_v40 = vpack.c.bf16 %v1260_v31, %v1244_v29  ;;  %v5468_v25 = vpack.c.bf16 %v1389_v19, %v1373_v18  ;;  %v1372_v35 = vld [vmem:[#allocation11 + $0xd60] sm:$0xff]  ;;  %v1405_v31 = vld [vmem:[#allocation11 + $0xe68] sm:$0xff] }
 0x40c   :  { %5565 = vmatprep.subr.bf16.mxu1 %v5564_v38  ;;  %v1279_v38 = vld [vmem:[#allocation11 + $0xa78] sm:$0xff]  ;;  %v5582_v45 = vpack.c.bf16 %v1262_v34, %v1246_v32  ;;  %v1390_v29 = vld [vmem:[#allocation11 + $0xdf0] sm:$0xff]  ;;  %v1421_v32 = vld [vmem:[#allocation11 + $0xee8] sm:$0xff] }
 0x40d   :  { %v1423_v34 = vld [vmem:[#allocation11 + $0xef8] sm:$0xff] }
 0x40e   :  { %5439 = vmatpush1.bf16.msra.mxu0 %v5438_v48  ;;  %v1292_v48 = vld [vmem:[#allocation11 + $0xae0] sm:$0xff]  ;;  %v1519_v18 = vld [vmem:[#allocation11 + $0x11f8] sm:$0xff] }
 0x40f   :  { %5567 = vmatpush1.bf16.msra.mxu1 %v5566_v49  ;;  %5441 = vmatprep.subr.bf16.mxu0 %v5440_v50  ;;  %v1278_v49 = vld [vmem:[#allocation11 + $0xa70] sm:$0xff]  ;;  %v5584_v50 = vpack.c.bf16 %v1295_v39, %v1279_v38  ;;  %v5458_v58 = vpack.c.bf16 %v1292_v48, %v1276_v47  ;;  %v5472_v38 = vpack.c.bf16 %v1421_v32, %v1405_v31  ;;  %v1404_v39 = vld [vmem:[#allocation11 + $0xe60] sm:$0xff]  ;;  %v1437_v48 = vld [vmem:[#allocation11 + $0xf68] sm:$0xff] }
 0x410   :  { %5569 = vmatprep.subr.bf16.mxu1 %v5568_v56  ;;  %v1311_v56 = vld [vmem:[#allocation11 + $0xb78] sm:$0xff]  ;;  %v5586_v60 = vpack.c.bf16 %v1294_v52, %v1278_v49  ;;  %v1422_v47 = vld [vmem:[#allocation11 + $0xef0] sm:$0xff]  ;;  %v1453_v49 = vld [vmem:[#allocation11 + $0xfe8] sm:$0xff] }
 0x411   :  { %v1455_v52 = vld [vmem:[#allocation11 + $0xff8] sm:$0xff] }
 0x412   :  { %5443 = vmatpush1.bf16.msra.mxu0 %v5442_v63  ;;  %v1324_v63 = vld [vmem:[#allocation11 + $0xbe0] sm:$0xff] }
 0x413   :  { %5571 = vmatpush1.bf16.msra.mxu1 %v5570_v0  ;;  %5445 = vmatprep.subr.bf16.mxu0 %v5444_v1  ;;  %v1310_v0 = vld [vmem:[#allocation11 + $0xb70] sm:$0xff]  ;;  %v5588_v1 = vpack.c.bf16 %v1327_v57, %v1311_v56  ;;  %v5462_v11 = vpack.c.bf16 %v1324_v63, %v1308_v62  ;;  %v5476_v56 = vpack.c.bf16 %v1453_v49, %v1437_v48  ;;  %v1436_v57 = vld [vmem:[#allocation11 + $0xf60] sm:$0xff]  ;;  %v1469_v63 = vld [vmem:[#allocation11 + $0x1068] sm:$0xff] }
 0x414   :  { %5573 = vmatprep.subr.bf16.mxu1 %v5572_v7  ;;  %v1343_v7 = vld [vmem:[#allocation11 + $0xc78] sm:$0xff]  ;;  %v5590_v12 = vpack.c.bf16 %v1326_v2, %v1310_v0  ;;  %v1454_v62 = vld [vmem:[#allocation11 + $0xff0] sm:$0xff]  ;;  %v1485_v0 = vld [vmem:[#allocation11 + $0x10e8] sm:$0xff] }
 0x415   :  { %v1487_v2 = vld [vmem:[#allocation11 + $0x10f8] sm:$0xff] }
 0x416   :  { %5447 = vmatpush1.bf16.msra.mxu0 %v5446_v15  ;;  %v1356_v15 = vld [vmem:[#allocation11 + $0xce0] sm:$0xff] }
 0x417   :  { %5575 = vmatpush1.bf16.msra.mxu1 %v5574_v30  ;;  %5449 = vmatprep.subr.bf16.mxu0 %v5448_v16  ;;  %v1342_v30 = vld [vmem:[#allocation11 + $0xc70] sm:$0xff]  ;;  %v5592_v16 = vpack.c.bf16 %v1359_v10, %v1343_v7  ;;  %v5466_v22 = vpack.c.bf16 %v1356_v15, %v1340_v54  ;;  %v5480_v7 = vpack.c.bf16 %v1485_v0, %v1469_v63  ;;  %v1468_v10 = vld [vmem:[#allocation11 + $0x1060] sm:$0xff]  ;;  %v1501_v15 = vld [vmem:[#allocation11 + $0x1168] sm:$0xff] }
 0x418   :  { %5577 = vmatprep.subr.bf16.mxu1 %v5576_v20  ;;  %v1375_v20 = vld [vmem:[#allocation11 + $0xd78] sm:$0xff]  ;;  %v5594_v24 = vpack.c.bf16 %v1358_v17, %v1342_v30  ;;  %v1486_v54 = vld [vmem:[#allocation11 + $0x10f0] sm:$0xff]  ;;  %v1517_v30 = vld [vmem:[#allocation11 + $0x11e8] sm:$0xff] }
 0x419   :  { %v1503_v17 = vld [vmem:[#allocation11 + $0x1178] sm:$0xff]  ;;  %v1596_v0 = vld [vmem:[#allocation11 + $0x1460] sm:$0xff] }
 0x41a   :  { %5451 = vmatpush1.bf16.msra.mxu0 %v5450_v27  ;;  %v1388_v27 = vld [vmem:[#allocation11 + $0xde0] sm:$0xff] }
 0x41b   :  { %5579 = vmatpush1.bf16.msra.mxu1 %v5578_v23  ;;  %5453 = vmatprep.subr.bf16.mxu0 %v5452_v28  ;;  %v1374_v23 = vld [vmem:[#allocation11 + $0xd70] sm:$0xff]  ;;  %v5596_v28 = vpack.c.bf16 %v1391_v21, %v1375_v20  ;;  %v5470_v36 = vpack.c.bf16 %v1388_v27, %v1372_v35  ;;  %v1500_v20 = vld [vmem:[#allocation11 + $0x1160] sm:$0xff]  ;;  %v1533_v35 = vld [vmem:[#allocation11 + $0x1268] sm:$0xff] }
 0x41c   :  { %5581 = vmatprep.subr.bf16.mxu1 %v5580_v33  ;;  %v1407_v33 = vld [vmem:[#allocation11 + $0xe78] sm:$0xff]  ;;  %v5598_v37 = vpack.c.bf16 %v1390_v29, %v1374_v23  ;;  %v1516_v21 = vld [vmem:[#allocation11 + $0x11e0] sm:$0xff]  ;;  %v1549_v27 = vld [vmem:[#allocation11 + $0x12e8] sm:$0xff]  ;;  %v5612_v23 = vpack.c.bf16 %v1519_v18, %v1503_v17 }
 0x41d   :  { %v1551_v29 = vld [vmem:[#allocation11 + $0x12f8] sm:$0xff]  ;;  %v5486_v31 = vpack.c.bf16 %v1516_v21, %v1500_v20  ;;  %v1630_v17 = vld [vmem:[#allocation11 + $0x1570] sm:$0xff]  ;;  %v1661_v20 = vld [vmem:[#allocation11 + $0x1668] sm:$0xff] }
 0x41e   :  { %5455 = vmatpush1.bf16.msra.mxu0 %v5454_v40  ;;  %v1420_v40 = vld [vmem:[#allocation11 + $0xee0] sm:$0xff]  ;;  %v1677_v21 = vld [vmem:[#allocation11 + $0x16e8] sm:$0xff] }
 0x41f   :  { %5583 = vmatpush1.bf16.msra.mxu1 %v5582_v45  ;;  %5457 = vmatprep.subr.bf16.mxu0 %v5456_v46  ;;  %v1406_v45 = vld [vmem:[#allocation11 + $0xe70] sm:$0xff]  ;;  %v5600_v46 = vpack.c.bf16 %v1423_v34, %v1407_v33  ;;  %v5474_v53 = vpack.c.bf16 %v1420_v40, %v1404_v39  ;;  %v5488_v33 = vpack.c.bf16 %v1549_v27, %v1533_v35  ;;  %v1532_v34 = vld [vmem:[#allocation11 + $0x1260] sm:$0xff]  ;;  %v1565_v40 = vld [vmem:[#allocation11 + $0x1368] sm:$0xff] }
 0x420   :  { %5585 = vmatprep.subr.bf16.mxu1 %v5584_v50  ;;  %v1439_v50 = vld [vmem:[#allocation11 + $0xf78] sm:$0xff]  ;;  %v5602_v55 = vpack.c.bf16 %v1422_v47, %v1406_v45  ;;  %v1550_v39 = vld [vmem:[#allocation11 + $0x12f0] sm:$0xff]  ;;  %v1581_v45 = vld [vmem:[#allocation11 + $0x13e8] sm:$0xff]  ;;  %v5504_v27 = vpack.c.bf16 %v1677_v21, %v1661_v20 }
 0x421   :  { %v5492_v49 = vpack.c.bf16 %v1581_v45, %v1565_v40  ;;  %v1711_v40 = vld [vmem:[#allocation11 + $0x17f8] sm:$0xff] }
 0x422   :  { %5459 = vmatpush1.bf16.msra.mxu0 %v5458_v58  ;;  %v1452_v58 = vld [vmem:[#allocation11 + $0xfe0] sm:$0xff]  ;;  %v1791_v20 = vld [vmem:[#allocation11 + $0x1a78] sm:$0xff] }
 0x423   :  { %5587 = vmatpush1.bf16.msra.mxu1 %v5586_v60  ;;  %5461 = vmatprep.subr.bf16.mxu0 %v5460_v61  ;;  %v1438_v60 = vld [vmem:[#allocation11 + $0xf70] sm:$0xff]  ;;  %v5604_v61 = vpack.c.bf16 %v1455_v52, %v1439_v50  ;;  %v5478_v3 = vpack.c.bf16 %v1452_v58, %v1436_v57  ;;  %v1564_v50 = vld [vmem:[#allocation11 + $0x1360] sm:$0xff]  ;;  %v1613_v57 = vld [vmem:[#allocation11 + $0x14e8] sm:$0xff] }
 0x424   :  { %5589 = vmatprep.subr.bf16.mxu1 %v5588_v1  ;;  %v1471_v1 = vld [vmem:[#allocation11 + $0x1078] sm:$0xff]  ;;  %v5606_v5 = vpack.c.bf16 %v1454_v62, %v1438_v60  ;;  %v1580_v52 = vld [vmem:[#allocation11 + $0x13e0] sm:$0xff] }
 0x425   :  { %v1599_v58 = vld [vmem:[#allocation11 + $0x1478] sm:$0xff] }
 0x426   :  { %5463 = vmatpush1.bf16.msra.mxu0 %v5462_v11  ;;  %v1484_v11 = vld [vmem:[#allocation11 + $0x10e0] sm:$0xff]  ;;  %v1615_v60 = vld [vmem:[#allocation11 + $0x14f8] sm:$0xff] }
 0x427   :  { %5591 = vmatpush1.bf16.msra.mxu1 %v5590_v12  ;;  %5465 = vmatprep.subr.bf16.mxu0 %v5464_v13  ;;  %v5608_v12 = vpack.c.bf16 %v1487_v2, %v1471_v1  ;;  %v1470_v13 = vld [vmem:[#allocation11 + $0x1070] sm:$0xff]  ;;  %v1612_v1 = vld [vmem:[#allocation11 + $0x14e0] sm:$0xff]  ;;  %v1807_v21 = vld [vmem:[#allocation11 + $0x1af8] sm:$0xff] }
 0x428   :  { %5593 = vmatprep.subr.bf16.mxu1 %v5592_v16  ;;  %v5482_v16 = vpack.c.bf16 %v1484_v11, %v1468_v10  ;;  %v5610_v19 = vpack.c.bf16 %v1486_v54, %v1470_v13  ;;  %v1598_v2 = vld [vmem:[#allocation11 + $0x1470] sm:$0xff]  ;;  %v1645_v10 = vld [vmem:[#allocation11 + $0x15e8] sm:$0xff]  ;;  %v1631_v11 = vld [vmem:[#allocation11 + $0x1578] sm:$0xff]  ;;  %v5498_v13 = vpack.c.bf16 %v1612_v1, %v1596_v0 }
 0x429   :  { %v1726_v0 = vld [vmem:[#allocation11 + $0x1870] sm:$0xff] }
 0x42a   :  { %5467 = vmatpush1.bf16.msra.mxu0 %v5466_v22  ;;  %v1502_v22 = vld [vmem:[#allocation11 + $0x1170] sm:$0xff] }
 0x42b   :  { %5595 = vmatpush1.bf16.msra.mxu1 %v5594_v24  ;;  %5469 = vmatprep.subr.bf16.mxu0 %v5468_v25  ;;  %v5484_v24 = vpack.c.bf16 %v1517_v30, %v1501_v15  ;;  %v1518_v25 = vld [vmem:[#allocation11 + $0x11f0] sm:$0xff]  ;;  %v1628_v30 = vld [vmem:[#allocation11 + $0x1560] sm:$0xff] }
 0x42c   :  { %5597 = vmatprep.subr.bf16.mxu1 %v5596_v28  ;;  %v1535_v28 = vld [vmem:[#allocation11 + $0x1278] sm:$0xff]  ;;  %v5614_v32 = vpack.c.bf16 %v1518_v25, %v1502_v22 }
 0x42d   :  { %v1663_v22 = vld [vmem:[#allocation11 + $0x1678] sm:$0xff] }
 0x42e   :  { %5471 = vmatpush1.bf16.msra.mxu0 %v5470_v36  ;;  %v1548_v36 = vld [vmem:[#allocation11 + $0x12e0] sm:$0xff] }
 0x42f   :  { %5599 = vmatpush1.bf16.msra.mxu1 %v5598_v37  ;;  %5473 = vmatprep.subr.bf16.mxu0 %v5472_v38  ;;  %v1534_v37 = vld [vmem:[#allocation11 + $0x1270] sm:$0xff]  ;;  %v5616_v38 = vpack.c.bf16 %v1551_v29, %v1535_v28  ;;  %v5490_v47 = vpack.c.bf16 %v1548_v36, %v1532_v34  ;;  %v1676_v28 = vld [vmem:[#allocation11 + $0x16e0] sm:$0xff]  ;;  %v1693_v34 = vld [vmem:[#allocation11 + $0x1768] sm:$0xff] }
 0x430   :  { %5601 = vmatprep.subr.bf16.mxu1 %v5600_v46  ;;  %v1567_v46 = vld [vmem:[#allocation11 + $0x1378] sm:$0xff]  ;;  %v5618_v48 = vpack.c.bf16 %v1550_v39, %v1534_v37  ;;  %v1662_v29 = vld [vmem:[#allocation11 + $0x1670] sm:$0xff]  ;;  %v1709_v36 = vld [vmem:[#allocation11 + $0x17e8] sm:$0xff] }
 0x431   :  { %v1695_v39 = vld [vmem:[#allocation11 + $0x1778] sm:$0xff] }
 0x432   :  { %5475 = vmatpush1.bf16.msra.mxu0 %v5474_v53  ;;  %v1566_v53 = vld [vmem:[#allocation11 + $0x1370] sm:$0xff] }
 0x433   :  { %5603 = vmatpush1.bf16.msra.mxu1 %v5602_v55  ;;  %5477 = vmatprep.subr.bf16.mxu0 %v5476_v56  ;;  %v1597_v56 = vld [vmem:[#allocation11 + $0x1468] sm:$0xff] }
 0x434   :  { %5605 = vmatprep.subr.bf16.mxu1 %v5604_v61  ;;  %v5494_v61 = vpack.c.bf16 %v1580_v52, %v1564_v50  ;;  %v5496_v63 = vpack.c.bf16 %v1613_v57, %v1597_v56  ;;  %v1694_v50 = vld [vmem:[#allocation11 + $0x1770] sm:$0xff]  ;;  %v5636_v52 = vpack.c.bf16 %v1711_v40, %v1695_v39  ;;  %v1727_v56 = vld [vmem:[#allocation11 + $0x1878] sm:$0xff] }
 0x435   :  { %v1743_v57 = vld [vmem:[#allocation11 + $0x18f8] sm:$0xff] }
 0x436   :  { %5479 = vmatpush1.bf16.msra.mxu0 %v5478_v3  ;;  %v5624_v3 = vpack.c.bf16 %v1615_v60, %v1599_v58  ;;  %v5640_v1 = vpack.c.bf16 %v1743_v57, %v1727_v56 }
 0x437   :  { %5607 = vmatpush1.bf16.msra.mxu1 %v5606_v5  ;;  %5481 = vmatprep.subr.bf16.mxu0 %v5480_v7  ;;  %v1614_v5 = vld [vmem:[#allocation11 + $0x14f0] sm:$0xff]  ;;  %v1629_v7 = vld [vmem:[#allocation11 + $0x1568] sm:$0xff] }
 0x438   :  { %5609 = vmatprep.subr.bf16.mxu1 %v5608_v12  ;;  %v1647_v12 = vld [vmem:[#allocation11 + $0x15f8] sm:$0xff]  ;;  %v5626_v54 = vpack.c.bf16 %v1614_v5, %v1598_v2  ;;  %v5500_v15 = vpack.c.bf16 %v1645_v10, %v1629_v7  ;;  %v1742_v2 = vld [vmem:[#allocation11 + $0x18f0] sm:$0xff]  ;;  %v1773_v5 = vld [vmem:[#allocation11 + $0x19e8] sm:$0xff] }
 0x439   :  { %2969 = vmatmul.mubr.f32.vlgmr.msra.gmra.mrb[10].mxu0 %v6433_v59  ;;  %v5628_v18 = vpack.c.bf16 %v1647_v12, %v1631_v11  ;;  %v1759_v7 = vld [vmem:[#allocation11 + $0x1978] sm:$0xff]  ;;  %v5642_v12 = vpack.c.bf16 %v1742_v2, %v1726_v0  ;;  %v1870_v0 = vld [vmem:[#allocation11 + $0x1cf0] sm:$0xff]  ;;  %v1901_v2 = vld [vmem:[#allocation11 + $0x1de8] sm:$0xff] }
 0x43a   :  { %3111 = vmatmul.mubr.f32.vlgmr.msra.gmra.mrb[10].mxu1 %v6433_v59  ;;  %5483 = vmatpush1.bf16.msra.mxu0 %v5482_v16  ;;  %v1583_v59 = vld [vmem:[#allocation11 + $0x13f8] sm:$0xff]  ;;  %v1644_v16 = vld [vmem:[#allocation11 + $0x15e0] sm:$0xff] }
 0x43b   :  { %3039 = vmatprep.mubr.f32.mxu0 %v6437_v4  ;;  %5611 = vmatpush1.bf16.msra.mxu1 %v5610_v19  ;;  %v5620_v55 = vpack.c.bf16 %v1583_v59, %v1567_v46  ;;  %v1646_v19 = vld [vmem:[#allocation11 + $0x15f0] sm:$0xff]  ;;  %v5502_v25 = vpack.c.bf16 %v1644_v16, %v1628_v30  ;;  %v1775_v10 = vld [vmem:[#allocation11 + $0x19f8] sm:$0xff] }
 0x43c   :  { %3181 = vmatprep.mubr.f32.mxu1 %v6437_v4  ;;  %5485 = vmatprep.subr.bf16.mxu0 %v5484_v24  ;;  %v1582_v4 = vld [vmem:[#allocation11 + $0x13f0] sm:$0xff]  ;;  %v1679_v24 = vld [vmem:[#allocation11 + $0x16f8] sm:$0xff]  ;;  %v5630_v35 = vpack.c.bf16 %v1646_v19, %v1630_v17  ;;  %v5644_v16 = vpack.c.bf16 %v1775_v10, %v1759_v7  ;;  %v1805_v19 = vld [vmem:[#allocation11 + $0x1ae8] sm:$0xff] }
 0x43d   :  { %5613 = vmatprep.subr.bf16.mxu1 %v5612_v23  ;;  %v5622_v62 = vpack.c.bf16 %v1582_v4, %v1566_v53  ;;  %v1660_v23 = vld [vmem:[#allocation11 + $0x1660] sm:$0xff]  ;;  %v1710_v53 = vld [vmem:[#allocation11 + $0x17f0] sm:$0xff]  ;;  %v1741_v4 = vld [vmem:[#allocation11 + $0x18e8] sm:$0xff] }
 0x43e   :  { %5487 = vmatpush1.bf16.msra.mxu0 %v5486_v31  ;;  %v5506_v46 = vpack.c.bf16 %v1676_v28, %v1660_v23  ;;  %v5638_v60 = vpack.c.bf16 %v1710_v53, %v1694_v50  ;;  %v1758_v30 = vld [vmem:[#allocation11 + $0x1970] sm:$0xff]  ;;  %v5648_v28 = vpack.c.bf16 %v1807_v21, %v1791_v20  ;;  %v1869_v53 = vld [vmem:[#allocation11 + $0x1ce8] sm:$0xff] }
 0x43f   :  { %5615 = vmatpush1.bf16.msra.mxu1 %v5614_v32  ;;  %5489 = vmatprep.subr.bf16.mxu0 %v5488_v33  ;;  %v5632_v32 = vpack.c.bf16 %v1679_v24, %v1663_v22  ;;  %v1678_v33 = vld [vmem:[#allocation11 + $0x16f0] sm:$0xff] }
 0x440   :  { %5617 = vmatprep.subr.bf16.mxu1 %v5616_v38  ;;  %v5634_v59 = vpack.c.bf16 %v1678_v33, %v1662_v29  ;;  %v1774_v17 = vld [vmem:[#allocation11 + $0x19f0] sm:$0xff]  ;;  %v1837_v33 = vld [vmem:[#allocation11 + $0x1be8] sm:$0xff] }
 0x441   :  { %v5646_v24 = vpack.c.bf16 %v1774_v17, %v1758_v30  ;;  %v1790_v23 = vld [vmem:[#allocation11 + $0x1a70] sm:$0xff]  ;;  %v1933_v17 = vld [vmem:[#allocation11 + $0x1ee8] sm:$0xff] }
 0x442   :  { %5491 = vmatpush1.bf16.msra.mxu0 %v5490_v47  ;;  %v5508_v47 = vpack.c.bf16 %v1709_v36, %v1693_v34  ;;  %v1806_v29 = vld [vmem:[#allocation11 + $0x1af0] sm:$0xff]  ;;  %v1823_v34 = vld [vmem:[#allocation11 + $0x1b78] sm:$0xff] }
 0x443   :  { %5619 = vmatpush1.bf16.msra.mxu1 %v5618_v48  ;;  %5493 = vmatprep.subr.bf16.mxu0 %v5492_v49  ;;  %v1692_v48 = vld [vmem:[#allocation11 + $0x1760] sm:$0xff]  ;;  %v1839_v36 = vld [vmem:[#allocation11 + $0x1bf8] sm:$0xff]  ;;  %v5650_v40 = vpack.c.bf16 %v1806_v29, %v1790_v23  ;;  %v1838_v50 = vld [vmem:[#allocation11 + $0x1bf0] sm:$0xff] }
 0x444   :  { %5621 = vmatprep.subr.bf16.mxu1 %v5620_v55  ;;  %v1708_v49 = vld [vmem:[#allocation11 + $0x17e0] sm:$0xff]  ;;  %v1725_v55 = vld [vmem:[#allocation11 + $0x1868] sm:$0xff]  ;;  %v1902_v30 = vld [vmem:[#allocation11 + $0x1df0] sm:$0xff] }
 0x445   :  { %v5510_v58 = vpack.c.bf16 %v1708_v49, %v1692_v48  ;;  %v1822_v48 = vld [vmem:[#allocation11 + $0x1b70] sm:$0xff]  ;;  %v5652_v49 = vpack.c.bf16 %v1839_v36, %v1823_v34  ;;  %v1965_v29 = vld [vmem:[#allocation11 + $0x1fe8] sm:$0xff]  ;;  %v6488_v34 = vld [vmem:[#allocation13] sm:$0xff] }
 0x446   :  { %5495 = vmatpush1.bf16.msra.mxu0 %v5494_v61  ;;  %v5512_v61 = vpack.c.bf16 %v1741_v4, %v1725_v55  ;;  %v1855_v55 = vld [vmem:[#allocation11 + $0x1c78] sm:$0xff]  ;;  %v5654_v57 = vpack.c.bf16 %v1838_v50, %v1822_v48  ;;  %v1934_v23 = vld [vmem:[#allocation11 + $0x1ef0] sm:$0xff] }
 0x447   :  { %5623 = vmatpush1.bf16.msra.mxu1 %v5622_v62  ;;  %5497 = vmatprep.subr.bf16.mxu0 %v5496_v63  ;;  %v1724_v62 = vld [vmem:[#allocation11 + $0x1860] sm:$0xff]  ;;  %v1871_v4 = vld [vmem:[#allocation11 + $0x1cf8] sm:$0xff]  ;;  %v3220_v50 = vld [vmem:[#allocation14 + $0x80] sm:$0xff] }
 0x448   :  { %5625 = vmatprep.subr.bf16.mxu1 %v5624_v3  ;;  %v1740_v63 = vld [vmem:[#allocation11 + $0x18e0] sm:$0xff]  ;;  %v1757_v3 = vld [vmem:[#allocation11 + $0x1968] sm:$0xff] }
 0x449   :  { %v5514_v11 = vpack.c.bf16 %v1740_v63, %v1724_v62  ;;  %v1854_v62 = vld [vmem:[#allocation11 + $0x1c70] sm:$0xff]  ;;  %v5656_v63 = vpack.c.bf16 %v1871_v4, %v1855_v55  ;;  %v3253_v4 = vld [vmem:[#allocation14 + $0x188] sm:$0xff] }
 0x44a   :  { %5499 = vmatpush1.bf16.msra.mxu0 %v5498_v13  ;;  %v5516_v13 = vpack.c.bf16 %v1773_v5, %v1757_v3  ;;  %v1887_v3 = vld [vmem:[#allocation11 + $0x1d78] sm:$0xff]  ;;  %v5658_v10 = vpack.c.bf16 %v1870_v0, %v1854_v62  ;;  %v3252_v55 = vld [vmem:[#allocation14 + $0x180] sm:$0xff] }
 0x44b   :  { %5627 = vmatpush1.bf16.msra.mxu1 %v5626_v54  ;;  %5501 = vmatprep.subr.bf16.mxu0 %v5500_v15  ;;  %v1756_v54 = vld [vmem:[#allocation11 + $0x1960] sm:$0xff]  ;;  %v1903_v5 = vld [vmem:[#allocation11 + $0x1df8] sm:$0xff]  ;;  %v3236_v0 = vld [vmem:[#allocation14 + $0x100] sm:$0xff] }
 0x44c   :  { %v6480_v31 = vpop.f32.mrb[6].mxu0  ;;  %5629 = vmatprep.subr.bf16.mxu1 %v5628_v18  ;;  %v1772_v15 = vld [vmem:[#allocation11 + $0x19e0] sm:$0xff]  ;;  %v1789_v18 = vld [vmem:[#allocation11 + $0x1a68] sm:$0xff]  ;;  %v3205_v62 = vld [vmem:[#allocation14 + $0x8] sm:$0xff] }
 0x44d   :  { %v6482_v37 = vpop.f32.mrb[6].mxu1  ;;  %v6484_v38 = vpop.f32.mrb[7].mxu0  ;;  %v5518_v22 = vpack.c.bf16 %v1772_v15, %v1756_v54  ;;  %v1886_v54 = vld [vmem:[#allocation11 + $0x1d70] sm:$0xff]  ;;  %v5660_v15 = vpack.c.bf16 %v1903_v5, %v1887_v3  ;;  %v3222_v3 = vld [vmem:[#allocation14 + $0x90] sm:$0xff]  ;;  %v3223_v5 = vld [vmem:[#allocation14 + $0x98] sm:$0xff] }
 0x44e   :  { %v6486_v45 = vpop.f32.mrb[7].mxu1  ;;  %5503 = vmatpush1.bf16.msra.mxu0 %v5502_v25  ;;  %v5520_v25 = vpack.c.bf16 %v1805_v19, %v1789_v18  ;;  %v1919_v18 = vld [vmem:[#allocation11 + $0x1e78] sm:$0xff]  ;;  %v5662_v21 = vpack.c.bf16 %v1902_v30, %v1886_v54  ;;  %v3206_v54 = vld [vmem:[#allocation14 + $0x10] sm:$0xff] }
 0x44f   :  { %5631 = vmatpush1.bf16.msra.mxu1 %v5630_v35  ;;  %5505 = vmatprep.subr.bf16.mxu0 %v5504_v27  ;;  %v1788_v35 = vld [vmem:[#allocation11 + $0x1a60] sm:$0xff]  ;;  %v1935_v19 = vld [vmem:[#allocation11 + $0x1ef8] sm:$0xff] }
 0x450   :  { %5633 = vmatprep.subr.bf16.mxu1 %v5632_v32  ;;  %v1804_v27 = vld [vmem:[#allocation11 + $0x1ae0] sm:$0xff]  ;;  %v1821_v32 = vld [vmem:[#allocation11 + $0x1b68] sm:$0xff] }
 0x451   :  { %v5522_v39 = vpack.c.bf16 %v1804_v27, %v1788_v35  ;;  %v1918_v35 = vld [vmem:[#allocation11 + $0x1e70] sm:$0xff]  ;;  %v5664_v27 = vpack.c.bf16 %v1935_v19, %v1919_v18  ;;  %v3238_v30 = vld [vmem:[#allocation14 + $0x110] sm:$0xff]  ;;  %v3225_v19 = vld [vmem:[#allocation14 + $0xa8] sm:$0xff] }
 0x452   :  { %5507 = vmatpush1.bf16.msra.mxu0 %v5506_v46  ;;  %v5524_v46 = vpack.c.bf16 %v1837_v33, %v1821_v32  ;;  %v1951_v32 = vld [vmem:[#allocation11 + $0x1f78] sm:$0xff]  ;;  %v3224_v18 = vld [vmem:[#allocation14 + $0xa0] sm:$0xff] }
 0x453   :  { %5635 = vmatpush1.bf16.msra.mxu1 %v5634_v59  ;;  %5509 = vmatprep.subr.bf16.mxu0 %v5508_v47  ;;  %v1820_v59 = vld [vmem:[#allocation11 + $0x1b60] sm:$0xff]  ;;  %v1967_v33 = vld [vmem:[#allocation11 + $0x1ff8] sm:$0xff] }
 0x454   :  { %5637 = vmatprep.subr.bf16.mxu1 %v5636_v52  ;;  %v1836_v47 = vld [vmem:[#allocation11 + $0x1be0] sm:$0xff]  ;;  %v1853_v52 = vld [vmem:[#allocation11 + $0x1c68] sm:$0xff]  ;;  %v5668_v48 = vpack.c.bf16 %v1967_v33, %v1951_v32  ;;  %v3241_v32 = vld [vmem:[#allocation14 + $0x128] sm:$0xff] }
 0x455   :  { %v5526_v56 = vpack.c.bf16 %v1836_v47, %v1820_v59  ;;  %v1964_v59 = vld [vmem:[#allocation11 + $0x1fe0] sm:$0xff]  ;;  %v1950_v47 = vld [vmem:[#allocation11 + $0x1f70] sm:$0xff] }
 0x456   :  { %5511 = vmatpush1.bf16.msra.mxu0 %v5510_v58  ;;  %v5528_v58 = vpack.c.bf16 %v1869_v53, %v1853_v52  ;;  %v3221_v52 = vld [vmem:[#allocation14 + $0x88] sm:$0xff]  ;;  %v1979_v53 = vrot.slane %v6488_v34, %v6402_v44  ;;  %v3226_v33 = vld [vmem:[#allocation14 + $0xb0] sm:$0xff] }
 0x457   :  { %5639 = vmatpush1.bf16.msra.mxu1 %v5638_v60  ;;  %5513 = vmatprep.subr.bf16.mxu0 %v5512_v61  ;;  %v1852_v60 = vld [vmem:[#allocation11 + $0x1c60] sm:$0xff] }
 0x458   :  { %5641 = vmatprep.subr.bf16.mxu1 %v5640_v1  ;;  %v1868_v61 = vld [vmem:[#allocation11 + $0x1ce0] sm:$0xff]  ;;  %v1885_v1 = vld [vmem:[#allocation11 + $0x1d68] sm:$0xff] }
 0x459   :  { %v5530_v7 = vpack.c.bf16 %v1868_v61, %v1852_v60  ;;  %v5672_v60 = vpack.c.bf16 %v3221_v52, %v3220_v50  ;;  %v3204_v61 = vld [vmem:[#allocation14] sm:$0xff]  ;;  %v3243_v52 = vld [vmem:[#allocation14 + $0x138] sm:$0xff] }
 0x45a   :  { %5515 = vmatpush1.bf16.msra.mxu0 %v5514_v11  ;;  %v5532_v11 = vpack.c.bf16 %v1901_v2, %v1885_v1  ;;  %v3237_v1 = vld [vmem:[#allocation14 + $0x108] sm:$0xff]  ;;  %v5933_v2 = vadd.f32 %v6468_v14, %v1979_v53  ;;  %v3228_v53 = vld [vmem:[#allocation14 + $0xc0] sm:$0xff] }
 0x45b   :  { %5643 = vmatpush1.bf16.msra.mxu1 %v5642_v12  ;;  %5517 = vmatprep.subr.bf16.mxu0 %v5516_v13  ;;  %v1884_v12 = vld [vmem:[#allocation11 + $0x1d60] sm:$0xff] }
 0x45c   :  { %5645 = vmatprep.subr.bf16.mxu1 %v5644_v16  ;;  %v1900_v13 = vld [vmem:[#allocation11 + $0x1de0] sm:$0xff]  ;;  %v1917_v16 = vld [vmem:[#allocation11 + $0x1e68] sm:$0xff]  ;;  %v3189_v14 = vmax.f32 %v5933_v2, 0.0 }
 0x45d   :  { %v5534_v20 = vpack.c.bf16 %v1900_v13, %v1884_v12  ;;  %v3255_v12 = vld [vmem:[#allocation14 + $0x198] sm:$0xff]  ;;  %v5706_v13 = vpack.c.bf16 %v3237_v1, %v3236_v0  ;;  %v3245_v1 = vld [vmem:[#allocation14 + $0x148] sm:$0xff]  ;;  %v3230_v2 = vld [vmem:[#allocation14 + $0xd0] sm:$0xff] }
 0x45e   :  { %5519 = vmatpush1.bf16.msra.mxu0 %v5518_v22  ;;  %v5536_v22 = vpack.c.bf16 %v1933_v17, %v1917_v16  ;;  %v5676_v16 = vpack.c.bf16 %v3223_v5, %v3222_v3  ;;  %v3239_v17 = vld [vmem:[#allocation14 + $0x118] sm:$0xff]  ;;  %v3262_v5 = vld [vmem:[#allocation14 + $0x1d0] sm:$0xff] }
 0x45f   :  { %5647 = vmatpush1.bf16.msra.mxu1 %v5646_v24  ;;  %5521 = vmatprep.subr.bf16.mxu0 %v5520_v25  ;;  %v1916_v24 = vld [vmem:[#allocation11 + $0x1e60] sm:$0xff]  ;;  %v3231_v3 = vld [vmem:[#allocation14 + $0xd8] sm:$0xff] }
 0x460   :  { %5649 = vmatprep.subr.bf16.mxu1 %v5648_v28  ;;  %v1932_v25 = vld [vmem:[#allocation11 + $0x1ee0] sm:$0xff]  ;;  %v1949_v28 = vld [vmem:[#allocation11 + $0x1f68] sm:$0xff] }
 0x461   :  { %v5538_v36 = vpack.c.bf16 %v1932_v25, %v1916_v24  ;;  %v5710_v25 = vpack.c.bf16 %v3239_v17, %v3238_v30  ;;  %v3232_v17 = vld [vmem:[#allocation14 + $0xe0] sm:$0xff] }
 0x462   :  { %5523 = vmatpush1.bf16.msra.mxu0 %v5522_v39  ;;  %v5666_v39 = vpack.c.bf16 %v1934_v23, %v1918_v35  ;;  %v5680_v35 = vpack.c.bf16 %v3225_v19, %v3224_v18  ;;  %v3209_v23 = vld [vmem:[#allocation14 + $0x28] sm:$0xff]  ;;  %v3264_v19 = vld [vmem:[#allocation14 + $0x1e0] sm:$0xff] }
 0x463   :  { %5651 = vmatpush1.bf16.msra.mxu1 %v5650_v40  ;;  %5525 = vmatprep.subr.bf16.mxu0 %v5524_v46  ;;  %v5540_v40 = vpack.c.bf16 %v1965_v29, %v1949_v28  ;;  %v1948_v46 = vld [vmem:[#allocation11 + $0x1f60] sm:$0xff]  ;;  %v3240_v28 = vld [vmem:[#allocation14 + $0x120] sm:$0xff]  ;;  %v3233_v18 = vld [vmem:[#allocation14 + $0xe8] sm:$0xff] }
 0x464   :  { %5653 = vmatprep.subr.bf16.mxu1 %v5652_v49  ;;  %v1966_v49 = vld [vmem:[#allocation11 + $0x1ff0] sm:$0xff] }
 0x466   :  { %5527 = vmatpush1.bf16.msra.mxu0 %v5526_v56  ;;  %v1987_v56 = vrot.slane %v6488_v34, %v6409_v6 }
 0x467   :  { %5655 = vmatpush1.bf16.msra.mxu1 %v5654_v57  ;;  %5529 = vmatprep.subr.bf16.mxu0 %v5528_v58  ;;  %v5542_v57 = vpack.c.bf16 %v1964_v59, %v1948_v46  ;;  %v5670_v58 = vpack.c.bf16 %v1966_v49, %v1950_v47  ;;  %v5714_v46 = vpack.c.bf16 %v3241_v32, %v3240_v28  ;;  %v3210_v47 = vld [vmem:[#allocation14 + $0x30] sm:$0xff]  ;;  %v3235_v28 = vld [vmem:[#allocation14 + $0xf8] sm:$0xff] }
 0x468   :  { %5657 = vmatprep.subr.bf16.mxu1 %v5656_v63  ;;  %v5704_v63 = vpack.c.bf16 %v3253_v4, %v3252_v55  ;;  %v3242_v49 = vld [vmem:[#allocation14 + $0x130] sm:$0xff]  ;;  %v3229_v55 = vld [vmem:[#allocation14 + $0xc8] sm:$0xff]  ;;  %v3260_v4 = vld [vmem:[#allocation14 + $0x1c0] sm:$0xff] }
 0x469   :  { %v3266_v32 = vld [vmem:[#allocation14 + $0x1f0] sm:$0xff] }
 0x46a   :  { %5531 = vmatpush1.bf16.msra.mxu0 %v5530_v7  ;;  %v5935_v7 = vadd.f32 %v6470_v43, %v1987_v56  ;;  %v3256_v43 = vld [vmem:[#allocation14 + $0x1a0] sm:$0xff]  ;;  %v3261_v56 = vld [vmem:[#allocation14 + $0x1c8] sm:$0xff] }
 0x46b   :  { %5659 = vmatpush1.bf16.msra.mxu1 %v5658_v10  ;;  %5533 = vmatprep.subr.bf16.mxu0 %v5532_v11  ;;  %v5674_v10 = vpack.c.bf16 %v3205_v62, %v3204_v61  ;;  %v3254_v11 = vld [vmem:[#allocation14 + $0x190] sm:$0xff]  ;;  %v3212_v61 = vld [vmem:[#allocation14 + $0x40] sm:$0xff]  ;;  %v3213_v62 = vld [vmem:[#allocation14 + $0x48] sm:$0xff]  ;;  %v5720_v0 = vpack.c.bf16 %v3261_v56, %v3260_v4 }
 0x46c   :  { %5661 = vmatprep.subr.bf16.mxu1 %v5660_v15  ;;  %v3207_v15 = vld [vmem:[#allocation14 + $0x18] sm:$0xff]  ;;  %v3316_v56 = vld [vmem:[#allocation14 + $0x380] sm:$0xff] }
 0x46d   :  { %v5678_v24 = vpack.c.bf16 %v3207_v15, %v3206_v54  ;;  %v3215_v54 = vld [vmem:[#allocation14 + $0x58] sm:$0xff]  ;;  %v3246_v15 = vld [vmem:[#allocation14 + $0x150] sm:$0xff] }
 0x46e   :  { %5535 = vmatpush1.bf16.msra.mxu0 %v5534_v20  ;;  %v5708_v20 = vpack.c.bf16 %v3255_v12, %v3254_v11  ;;  %v5692_v12 = vpack.c.bf16 %v3231_v3, %v3230_v2 }
 0x46f   :  { %5663 = vmatpush1.bf16.msra.mxu1 %v5662_v21  ;;  %5537 = vmatprep.subr.bf16.mxu0 %v5536_v22  ;;  %v3257_v21 = vld [vmem:[#allocation14 + $0x1a8] sm:$0xff]  ;;  %v3191_v22 = vmax.f32 %v5935_v7, 0.0  ;;  %v3263_v7 = vld [vmem:[#allocation14 + $0x1d8] sm:$0xff] }
 0x470   :  { %5665 = vmatprep.subr.bf16.mxu1 %v5664_v27  ;;  %v3208_v27 = vld [vmem:[#allocation14 + $0x20] sm:$0xff]  ;;  %v5712_v29 = vpack.c.bf16 %v3257_v21, %v3256_v43  ;;  %v5724_v30 = vpack.c.bf16 %v3263_v7, %v3262_v5  ;;  %v5696_v21 = vpack.c.bf16 %v3233_v18, %v3232_v17  ;;  %v3301_v7 = vld [vmem:[#allocation14 + $0x308] sm:$0xff]  ;;  %v3270_v17 = vld [vmem:[#allocation14 + $0x210] sm:$0xff] }
 0x471   :  { %v3300_v5 = vld [vmem:[#allocation14 + $0x300] sm:$0xff]  ;;  %v3302_v18 = vld [vmem:[#allocation14 + $0x310] sm:$0xff] }
 0x472   :  { %5539 = vmatpush1.bf16.msra.mxu0 %v5538_v36  ;;  %v3227_v36 = vld [vmem:[#allocation14 + $0xb8] sm:$0xff] }
 0x473   :  { %5667 = vmatpush1.bf16.msra.mxu1 %v5666_v39  ;;  %5541 = vmatprep.subr.bf16.mxu0 %v5540_v40  ;;  %v3258_v39 = vld [vmem:[#allocation14 + $0x1b0] sm:$0xff]  ;;  %v3259_v40 = vld [vmem:[#allocation14 + $0x1b8] sm:$0xff]  ;;  %v5684_v59 = vpack.c.bf16 %v3227_v36, %v3226_v33  ;;  %v2002_v36 = vsub.s32 7, %v6394_v41 }
 0x474   :  { %5669 = vmatprep.subr.bf16.mxu1 %v5668_v48  ;;  %v3211_v48 = vld [vmem:[#allocation14 + $0x38] sm:$0xff]  ;;  %v5716_v50 = vpack.c.bf16 %v3259_v40, %v3258_v39  ;;  %v1975_v40 = vrot.slane %v6488_v34, %v6397_v42 }
 0x475   :  { %v3267_v33 = vld [vmem:[#allocation14 + $0x1f8] sm:$0xff] }
 0x476   :  { %5543 = vmatpush1.bf16.msra.mxu0 %v5542_v57  ;;  %v5686_v57 = vpack.c.bf16 %v3211_v48, %v3210_v47  ;;  %v3219_v47 = vld [vmem:[#allocation14 + $0x78] sm:$0xff]  ;;  %v3250_v48 = vld [vmem:[#allocation14 + $0x170] sm:$0xff] }
 0x477   :  { %5671 = vmatpush1.bf16.msra.mxu1 %v5670_v58  ;;  %5673 = vmatprep.subr.bf16.mxu0 %v5672_v60  ;;  %v5718_v58 = vpack.c.bf16 %v3243_v52, %v3242_v49  ;;  %v5688_v60 = vpack.c.bf16 %v3229_v55, %v3228_v53  ;;  %v1983_v49 = vrot.slane %v6488_v34, %v6416_v51  ;;  %v3251_v52 = vld [vmem:[#allocation14 + $0x178] sm:$0xff]  ;;  %v3284_v53 = vld [vmem:[#allocation14 + $0x280] sm:$0xff]  ;;  %v3285_v55 = vld [vmem:[#allocation14 + $0x288] sm:$0xff] }
 0x478   :  { %5705 = vmatprep.subr.bf16.mxu1 %v5704_v63  ;;  %v3244_v63 = vld [vmem:[#allocation14 + $0x140] sm:$0xff] }
 0x479   :  { %3040 = vmatmul.mubr.f32.vlgmr.msra.gmra.mrb[10].mxu0 %v6446_v26  ;;  %v5722_v11 = vpack.c.bf16 %v3245_v1, %v3244_v63  ;;  %v5736_v63 = vpack.c.bf16 %v3285_v55, %v3284_v53  ;;  %v3269_v1 = vld [vmem:[#allocation14 + $0x208] sm:$0xff]  ;;  %v5934_v2 = vadd.f32 %v6466_v9, %v1983_v49  ;;  %v3271_v9 = vld [vmem:[#allocation14 + $0x218] sm:$0xff]  ;;  %v3306_v55 = vld [vmem:[#allocation14 + $0x330] sm:$0xff] }
 0x47a   :  { %3182 = vmatmul.mubr.f32.vlgmr.msra.gmra.mrb[10].mxu1 %v6446_v26  ;;  %5675 = vmatpush3.bf16.msra.mxu0 %v5674_v10  ;;  %v5682_v26 = vpack.c.bf16 %v3209_v23, %v3208_v27  ;;  %v5690_v10 = vpack.c.bf16 %v3213_v62, %v3212_v61  ;;  %v3249_v27 = vld [vmem:[#allocation14 + $0x168] sm:$0xff]  ;;  %v3234_v23 = vld [vmem:[#allocation14 + $0xf0] sm:$0xff]  ;;  %v5932_v61 = vadd.f32 %v6464_v8, %v1975_v40  ;;  %v3275_v53 = vld [vmem:[#allocation14 + $0x238] sm:$0xff] }
 0x47b   :  { %3531 = vmatprep.mubr.f32.mxu0 %v3189_v14  ;;  %5707 = vmatpush3.bf16.msra.mxu1 %v5706_v13  ;;  %v3214_v13 = vld [vmem:[#allocation14 + $0x50] sm:$0xff]  ;;  %v3265_v14 = vld [vmem:[#allocation14 + $0x1e8] sm:$0xff]  ;;  %v5734_v62 = vpack.c.bf16 %v3251_v52, %v3250_v48 }
 0x47c   :  { %3601 = vmatprep.mubr.f32.mxu1 %v3191_v22  ;;  %5677 = vmatprep.subr.bf16.mxu0 %v5676_v16  ;;  %v3247_v16 = vld [vmem:[#allocation14 + $0x158] sm:$0xff]  ;;  %v3216_v22 = vld [vmem:[#allocation14 + $0x60] sm:$0xff]  ;;  %v3305_v40 = vld [vmem:[#allocation14 + $0x328] sm:$0xff] }
 0x47d   :  { %5709 = vmatprep.subr.bf16.mxu1 %v5708_v20  ;;  %v5694_v20 = vpack.c.bf16 %v3215_v54, %v3214_v13  ;;  %v5726_v43 = vpack.c.bf16 %v3247_v16, %v3246_v15  ;;  %v3318_v54 = vld [vmem:[#allocation14 + $0x390] sm:$0xff]  ;;  %v3319_v15 = vld [vmem:[#allocation14 + $0x398] sm:$0xff]  ;;  %v5770_v16 = vpack.c.bf16 %v3301_v7, %v3300_v5  ;;  %v3309_v7 = vld [vmem:[#allocation14 + $0x348] sm:$0xff] }
 0x47e   :  { %5679 = vmatpush3.bf16.msra.mxu0 %v5678_v24  ;;  %v3217_v24 = vld [vmem:[#allocation14 + $0x68] sm:$0xff]  ;;  %v3274_v52 = vld [vmem:[#allocation14 + $0x230] sm:$0xff] }
 0x47f   :  { %5711 = vmatpush3.bf16.msra.mxu1 %v5710_v25  ;;  %5681 = vmatprep.subr.bf16.mxu0 %v5680_v35  ;;  %v3248_v25 = vld [vmem:[#allocation14 + $0x160] sm:$0xff]  ;;  %v5728_v35 = vpack.c.bf16 %v3265_v14, %v3264_v19  ;;  %v5698_v39 = vpack.c.bf16 %v3217_v24, %v3216_v22  ;;  %v3190_v19 = vmax.f32 %v5934_v2, 0.0  ;;  %v3321_v24 = vld [vmem:[#allocation14 + $0x3a8] sm:$0xff] }
 0x480   :  { %5713 = vmatprep.subr.bf16.mxu1 %v5712_v29  ;;  %v1994_v29 = vsub.s32 5, %v6394_v41  ;;  %v3320_v22 = vld [vmem:[#allocation14 + $0x3a0] sm:$0xff]  ;;  %v3277_v2 = vld [vmem:[#allocation14 + $0x248] sm:$0xff] }
 0x482   :  { %5683 = vmatpush3.bf16.msra.mxu0 %v5682_v26  ;;  %v5730_v26 = vpack.c.bf16 %v3249_v27, %v3248_v25  ;;  %v1995_v4 = vrot.slane %v6488_v34, %v1994_v29 }
 0x483   :  { %5715 = vmatpush3.bf16.msra.mxu1 %v5714_v46  ;;  %5685 = vmatprep.subr.bf16.mxu0 %v5684_v59  ;;  %v5700_v46 = vpack.c.bf16 %v3235_v28, %v3234_v23  ;;  %v3218_v59 = vld [vmem:[#allocation14 + $0x70] sm:$0xff]  ;;  %v3272_v28 = vld [vmem:[#allocation14 + $0x220] sm:$0xff] }
 0x484   :  { %5717 = vmatprep.subr.bf16.mxu1 %v5716_v50  ;;  %v5732_v50 = vpack.c.bf16 %v3267_v33, %v3266_v32  ;;  %v3273_v32 = vld [vmem:[#allocation14 + $0x228] sm:$0xff]  ;;  %v3304_v33 = vld [vmem:[#allocation14 + $0x320] sm:$0xff] }
 0x485   :  { %v5746_v48 = vpack.c.bf16 %v3273_v32, %v3272_v28  ;;  %v5778_v49 = vpack.c.bf16 %v3305_v40, %v3304_v33  ;;  %v3313_v28 = vld [vmem:[#allocation14 + $0x368] sm:$0xff]  ;;  %v3298_v32 = vld [vmem:[#allocation14 + $0x2f0] sm:$0xff]  ;;  %v3299_v33 = vld [vmem:[#allocation14 + $0x2f8] sm:$0xff] }
 0x486   :  { %5687 = vmatpush3.bf16.msra.mxu0 %v5686_v57  ;;  %v3317_v57 = vld [vmem:[#allocation14 + $0x388] sm:$0xff]  ;;  %v3331_v40 = vld [vmem:[#allocation14 + $0x3f8] sm:$0xff] }
 0x487   :  { %5719 = vmatpush3.bf16.msra.mxu1 %v5718_v58  ;;  %5689 = vmatprep.subr.bf16.mxu0 %v5688_v60  ;;  %v2003_v58 = vrot.slane %v6488_v34, %v2002_v36  ;;  %v5702_v60 = vpack.c.bf16 %v3219_v47, %v3218_v59  ;;  %v5768_v3 = vpack.c.bf16 %v3317_v57, %v3316_v56  ;;  %v3322_v59 = vld [vmem:[#allocation14 + $0x3b0] sm:$0xff]  ;;  %v3323_v47 = vld [vmem:[#allocation14 + $0x3b8] sm:$0xff]  ;;  %v3292_v57 = vld [vmem:[#allocation14 + $0x2c0] sm:$0xff] }
 0x488   :  { %5721 = vmatprep.subr.bf16.mxu1 %v5720_v0  ;;  %v3268_v0 = vld [vmem:[#allocation14 + $0x200] sm:$0xff]  ;;  %v3307_v56 = vld [vmem:[#allocation14 + $0x338] sm:$0xff] }
 0x489   :  { %v5939_v13 = vadd.f32 %v6486_v45, %v2003_v58  ;;  %v5738_v8 = vpack.c.bf16 %v3269_v1, %v3268_v0  ;;  %v5772_v45 = vpack.c.bf16 %v3319_v15, %v3318_v54  ;;  %v3293_v58 = vld [vmem:[#allocation14 + $0x2c8] sm:$0xff]  ;;  %v3276_v1 = vld [vmem:[#allocation14 + $0x240] sm:$0xff] }
 0x48a   :  { %5691 = vmatpush3.bf16.msra.mxu0 %v5690_v10  ;;  %v5937_v10 = vadd.f32 %v6484_v38, %v1995_v4  ;;  %v3288_v38 = vld [vmem:[#allocation14 + $0x2a0] sm:$0xff]  ;;  %v5780_v4 = vpack.c.bf16 %v3323_v47, %v3322_v59  ;;  %v5752_v0 = vpack.c.bf16 %v3293_v58, %v3292_v57  ;;  %v5764_v47 = vpack.c.bf16 %v3299_v33, %v3298_v32  ;;  %v3381_v58 = vld [vmem:[#allocation14 + $0x588] sm:$0xff]  ;;  %v3355_v32 = vld [vmem:[#allocation14 + $0x4b8] sm:$0xff] }
 0x48b   :  { %5723 = vmatpush3.bf16.msra.mxu1 %v5722_v11  ;;  %5693 = vmatprep.subr.bf16.mxu0 %v5692_v12  ;;  %v3286_v11 = vld [vmem:[#allocation14 + $0x290] sm:$0xff]  ;;  %v3287_v12 = vld [vmem:[#allocation14 + $0x298] sm:$0xff]  ;;  %v3195_v25 = vmax.f32 %v5939_v13, 0.0  ;;  %v3380_v57 = vld [vmem:[#allocation14 + $0x580] sm:$0xff] }
 0x48c   :  { %5725 = vmatprep.subr.bf16.mxu1 %v5724_v30  ;;  %v3188_v30 = vmax.f32 %v5932_v61, 0.0  ;;  %v5740_v14 = vpack.c.bf16 %v3287_v12, %v3286_v11  ;;  %v3325_v61 = vld [vmem:[#allocation14 + $0x3c8] sm:$0xff]  ;;  %v3295_v11 = vld [vmem:[#allocation14 + $0x2d8] sm:$0xff]  ;;  %v3326_v12 = vld [vmem:[#allocation14 + $0x3d0] sm:$0xff] }
 0x48d   :  { %v3327_v13 = vld [vmem:[#allocation14 + $0x3d8] sm:$0xff]  ;;  %v3386_v33 = vld [vmem:[#allocation14 + $0x5b0] sm:$0xff] }
 0x48e   :  { %5695 = vmatpush3.bf16.msra.mxu0 %v5694_v20  ;;  %v3303_v20 = vld [vmem:[#allocation14 + $0x318] sm:$0xff] }
 0x48f   :  { %5727 = vmatpush3.bf16.msra.mxu1 %v5726_v43  ;;  %5697 = vmatprep.subr.bf16.mxu0 %v5696_v21  ;;  %v3289_v43 = vld [vmem:[#allocation14 + $0x2a8] sm:$0xff]  ;;  %v3193_v21 = vmax.f32 %v5937_v10, 0.0  ;;  %v5774_v27 = vpack.c.bf16 %v3303_v20, %v3302_v18  ;;  %v3294_v10 = vld [vmem:[#allocation14 + $0x2d0] sm:$0xff]  ;;  %v3311_v18 = vld [vmem:[#allocation14 + $0x358] sm:$0xff] }
 0x490   :  { %5729 = vmatprep.subr.bf16.mxu1 %v5728_v35  ;;  %v5742_v35 = vpack.c.bf16 %v3271_v9, %v3270_v17  ;;  %v5744_v23 = vpack.c.bf16 %v3289_v43, %v3288_v38  ;;  %v5756_v15 = vpack.c.bf16 %v3295_v11, %v3294_v10  ;;  %v3310_v17 = vld [vmem:[#allocation14 + $0x350] sm:$0xff]  ;;  %v5788_v9 = vpack.c.bf16 %v3327_v13, %v3326_v12  ;;  %v3328_v20 = vld [vmem:[#allocation14 + $0x3e0] sm:$0xff]  ;;  %v3329_v38 = vld [vmem:[#allocation14 + $0x3e8] sm:$0xff] }
 0x491   :  { %v3351_v10 = vld [vmem:[#allocation14 + $0x498] sm:$0xff]  ;;  %v3382_v11 = vld [vmem:[#allocation14 + $0x590] sm:$0xff] }
 0x492   :  { %5699 = vmatpush3.bf16.msra.mxu0 %v5698_v39  ;;  %v5776_v39 = vpack.c.bf16 %v3321_v24, %v3320_v22  ;;  %v3280_v24 = vld [vmem:[#allocation14 + $0x260] sm:$0xff]  ;;  %v3383_v12 = vld [vmem:[#allocation14 + $0x598] sm:$0xff] }
 0x493   :  { %5731 = vmatpush3.bf16.msra.mxu1 %v5730_v26  ;;  %5701 = vmatprep.subr.bf16.mxu0 %v5700_v46  ;;  %v3290_v26 = vld [vmem:[#allocation14 + $0x2b0] sm:$0xff]  ;;  %v3291_v46 = vld [vmem:[#allocation14 + $0x2b8] sm:$0xff] }
 0x494   :  { %5733 = vmatprep.subr.bf16.mxu1 %v5732_v50  ;;  %v5748_v50 = vpack.c.bf16 %v3291_v46, %v3290_v26 }
 0x496   :  { %5703 = vmatpush3.bf16.msra.mxu0 %v5702_v60  ;;  %v3324_v60 = vld [vmem:[#allocation14 + $0x3c0] sm:$0xff] }
 0x497   :  { %5735 = vmatpush3.bf16.msra.mxu1 %v5734_v62  ;;  %5737 = vmatprep.subr.bf16.mxu0 %v5736_v63  ;;  %v5750_v62 = vpack.c.bf16 %v3275_v53, %v3274_v52  ;;  %v5782_v63 = vpack.c.bf16 %v3307_v56, %v3306_v55  ;;  %v5784_v5 = vpack.c.bf16 %v3325_v61, %v3324_v60  ;;  %v3315_v55 = vld [vmem:[#allocation14 + $0x378] sm:$0xff]  ;;  %v3349_v56 = vld [vmem:[#allocation14 + $0x488] sm:$0xff] }
 0x498   :  { %5769 = vmatprep.subr.bf16.mxu1 %v5768_v3  ;;  %v3308_v3 = vld [vmem:[#allocation14 + $0x340] sm:$0xff] }
 0x499   :  { %3532 = vmatmul.mubr.f32.vlgmr.msra.gmra.mrb[12].mxu0 %v3188_v30  ;;  %v5786_v54 = vpack.c.bf16 %v3309_v7, %v3308_v3  ;;  %v3278_v30 = vld [vmem:[#allocation14 + $0x250] sm:$0xff]  ;;  %v5832_v3 = vpack.c.bf16 %v3381_v58, %v3380_v57 }
 0x49a   :  { %3602 = vmatmul.mubr.f32.vlgmr.msra.gmra.mrb[12].mxu1 %v3190_v19  ;;  %5739 = vmatpush3.bf16.msra.mxu0 %v5738_v8  ;;  %v5754_v8 = vpack.c.bf16 %v3277_v2, %v3276_v1  ;;  %v3296_v19 = vld [vmem:[#allocation14 + $0x2e0] sm:$0xff]  ;;  %v3333_v1 = vld [vmem:[#allocation14 + $0x408] sm:$0xff]  ;;  %v3350_v7 = vld [vmem:[#allocation14 + $0x490] sm:$0xff] }
 0x49b   :  { %3671 = vmatprep.mubr.f32.mxu0 %v3193_v21  ;;  %5771 = vmatpush3.bf16.msra.mxu1 %v5770_v16  ;;  %v3279_v16 = vld [vmem:[#allocation14 + $0x258] sm:$0xff]  ;;  %v1990_v21 = vsub.s32 4, %v6394_v41  ;;  %v3364_v2 = vld [vmem:[#allocation14 + $0x500] sm:$0xff] }
 0x49c   :  { %3741 = vmatprep.mubr.f32.mxu1 %v3195_v25  ;;  %5741 = vmatprep.subr.bf16.mxu0 %v5740_v14  ;;  %v3297_v14 = vld [vmem:[#allocation14 + $0x2e8] sm:$0xff]  ;;  %v5758_v43 = vpack.c.bf16 %v3279_v16, %v3278_v30  ;;  %v3335_v30 = vld [vmem:[#allocation14 + $0x418] sm:$0xff]  ;;  %v3366_v16 = vld [vmem:[#allocation14 + $0x510] sm:$0xff] }
 0x49d   :  { %5773 = vmatprep.subr.bf16.mxu1 %v5772_v45  ;;  %v5790_v45 = vpack.c.bf16 %v3311_v18, %v3310_v17  ;;  %v5760_v22 = vpack.c.bf16 %v3297_v14, %v3296_v19  ;;  %v3281_v25 = vld [vmem:[#allocation14 + $0x268] sm:$0xff]  ;;  %v1991_v46 = vrot.slane %v6488_v34, %v1990_v21  ;;  %v3352_v18 = vld [vmem:[#allocation14 + $0x4a0] sm:$0xff] }
 0x49e   :  { %5743 = vmatpush3.bf16.msra.mxu0 %v5742_v35  ;;  %v3312_v35 = vld [vmem:[#allocation14 + $0x360] sm:$0xff]  ;;  %v5762_v26 = vpack.c.bf16 %v3281_v25, %v3280_v24  ;;  %v3353_v19 = vld [vmem:[#allocation14 + $0x4a8] sm:$0xff] }
 0x49f   :  { %5775 = vmatpush3.bf16.msra.mxu1 %v5774_v27  ;;  %5745 = vmatprep.subr.bf16.mxu0 %v5744_v23  ;;  %v1998_v27 = vsub.s32 6, %v6394_v41  ;;  %v5792_v23 = vpack.c.bf16 %v3329_v38, %v3328_v20  ;;  %v5794_v59 = vpack.c.bf16 %v3313_v28, %v3312_v35  ;;  %v5936_v61 = vadd.f32 %v6480_v31, %v1991_v46  ;;  %v3384_v14 = vld [vmem:[#allocation14 + $0x5a0] sm:$0xff]  ;;  %v3385_v20 = vld [vmem:[#allocation14 + $0x5a8] sm:$0xff]  ;;  %v3354_v28 = vld [vmem:[#allocation14 + $0x4b0] sm:$0xff] }
 0x4a0   :  { %5777 = vmatprep.subr.bf16.mxu1 %v5776_v39  ;;  %v3330_v39 = vld [vmem:[#allocation14 + $0x3f0] sm:$0xff]  ;;  %v3337_v24 = vld [vmem:[#allocation14 + $0x428] sm:$0xff]  ;;  %v3368_v25 = vld [vmem:[#allocation14 + $0x520] sm:$0xff]  ;;  %v5840_v35 = vpack.c.bf16 %v3385_v20, %v3384_v14  ;;  %v5812_v46 = vpack.c.bf16 %v3355_v32, %v3354_v28 }
 0x4a1   :  { %v1999_v52 = vrot.slane %v6488_v34, %v1998_v27  ;;  %v5796_v53 = vpack.c.bf16 %v3331_v40, %v3330_v39  ;;  %v3387_v39 = vld [vmem:[#allocation14 + $0x5b8] sm:$0xff]  ;;  %v3344_v20 = vld [vmem:[#allocation14 + $0x460] sm:$0xff] }
 0x4a2   :  { %5747 = vmatpush3.bf16.msra.mxu0 %v5746_v48  ;;  %v3282_v48 = vld [vmem:[#allocation14 + $0x270] sm:$0xff]  ;;  %v3363_v28 = vld [vmem:[#allocation14 + $0x4f8] sm:$0xff] }
 0x4a3   :  { %5779 = vmatpush3.bf16.msra.mxu1 %v5778_v49  ;;  %5749 = vmatprep.subr.bf16.mxu0 %v5748_v50  ;;  %v3283_v49 = vld [vmem:[#allocation14 + $0x278] sm:$0xff]  ;;  %v3314_v50 = vld [vmem:[#allocation14 + $0x370] sm:$0xff]  ;;  %v5938_v34 = vadd.f32 %v6482_v37, %v1999_v52  ;;  %v5836_v37 = vpack.c.bf16 %v3383_v12, %v3382_v11  ;;  %v3356_v52 = vld [vmem:[#allocation14 + $0x4c0] sm:$0xff] }
 0x4a4   :  { %5781 = vmatprep.subr.bf16.mxu1 %v5780_v4  ;;  %v3348_v4 = vld [vmem:[#allocation14 + $0x480] sm:$0xff]  ;;  %v5766_v60 = vpack.c.bf16 %v3283_v49, %v3282_v48  ;;  %v3370_v48 = vld [vmem:[#allocation14 + $0x530] sm:$0xff]  ;;  %v5844_v49 = vpack.c.bf16 %v3387_v39, %v3386_v33  ;;  %v3395_v32 = vld [vmem:[#allocation14 + $0x5f8] sm:$0xff] }
 0x4a5   :  { %v3194_v17 = vmax.f32 %v5938_v34, 0.0  ;;  %v3390_v34 = vld [vmem:[#allocation14 + $0x5d0] sm:$0xff] }
 0x4a6   :  { %5751 = vmatpush3.bf16.msra.mxu0 %v5750_v62  ;;  %v5798_v62 = vpack.c.bf16 %v3315_v55, %v3314_v50  ;;  %v3371_v50 = vld [vmem:[#allocation14 + $0x538] sm:$0xff]  ;;  %v3388_v55 = vld [vmem:[#allocation14 + $0x5c0] sm:$0xff]  ;;  %v3342_v12 = vld [vmem:[#allocation14 + $0x450] sm:$0xff] }
 0x4a7   :  { %5783 = vmatpush3.bf16.msra.mxu1 %v5782_v63  ;;  %5753 = vmatprep.subr.bf16.mxu0 %v5752_v0  ;;  %v5800_v63 = vpack.c.bf16 %v3349_v56, %v3348_v4  ;;  %v3332_v0 = vld [vmem:[#allocation14 + $0x400] sm:$0xff]  ;;  %v3389_v4 = vld [vmem:[#allocation14 + $0x5c8] sm:$0xff]  ;;  %v5846_v57 = vpack.c.bf16 %v3371_v50, %v3370_v48  ;;  %v3378_v48 = vld [vmem:[#allocation14 + $0x570] sm:$0xff] }
 0x4a8   :  { %5785 = vmatprep.subr.bf16.mxu1 %v5784_v5  ;;  %v3365_v5 = vld [vmem:[#allocation14 + $0x508] sm:$0xff]  ;;  %v5802_v13 = vpack.c.bf16 %v3333_v1, %v3332_v0  ;;  %v3358_v1 = vld [vmem:[#allocation14 + $0x4d0] sm:$0xff] }
 0x4a9   :  { %v5834_v31 = vpack.c.bf16 %v3365_v5, %v3364_v2  ;;  %v3373_v0 = vld [vmem:[#allocation14 + $0x548] sm:$0xff]  ;;  %v3359_v2 = vld [vmem:[#allocation14 + $0x4d8] sm:$0xff] }
 0x4aa   :  { %5755 = vmatpush3.bf16.msra.mxu0 %v5754_v8  ;;  %v3192_v8 = vmax.f32 %v5936_v61, 0.0  ;;  %v3341_v61 = vld [vmem:[#allocation14 + $0x448] sm:$0xff]  ;;  %v5820_v11 = vpack.c.bf16 %v3359_v2, %v3358_v1  ;;  %v3428_v1 = vld [vmem:[#allocation14 + $0x700] sm:$0xff] }
 0x4ab   :  { %5787 = vmatpush3.bf16.msra.mxu1 %v5786_v54  ;;  %5757 = vmatprep.subr.bf16.mxu0 %v5756_v15  ;;  %v5804_v54 = vpack.c.bf16 %v3351_v10, %v3350_v7  ;;  %v3334_v15 = vld [vmem:[#allocation14 + $0x410] sm:$0xff]  ;;  %v6524_v7 = vld [vmem:[#allocation13 + $0x8] sm:$0xff] }
 0x4ac   :  { %5789 = vmatprep.subr.bf16.mxu1 %v5788_v9  ;;  %v3367_v9 = vld [vmem:[#allocation14 + $0x518] sm:$0xff]  ;;  %v5806_v38 = vpack.c.bf16 %v3335_v30, %v3334_v15  ;;  %v3360_v15 = vld [vmem:[#allocation14 + $0x4e0] sm:$0xff]  ;;  %v3361_v30 = vld [vmem:[#allocation14 + $0x4e8] sm:$0xff] }
 0x4ad   :  { %v5824_v14 = vpack.c.bf16 %v3361_v30, %v3360_v15  ;;  %v3398_v15 = vld [vmem:[#allocation14 + $0x610] sm:$0xff]  ;;  %v3399_v30 = vld [vmem:[#allocation14 + $0x618] sm:$0xff] }
 0x4ae   :  { %5759 = vmatpush3.bf16.msra.mxu0 %v5758_v43  ;;  %v5838_v43 = vpack.c.bf16 %v3367_v9, %v3366_v16  ;;  %v3392_v16 = vld [vmem:[#allocation14 + $0x5e0] sm:$0xff] }
 0x4af   :  { %5791 = vmatpush3.bf16.msra.mxu1 %v5790_v45  ;;  %5761 = vmatprep.subr.bf16.mxu0 %v5760_v22  ;;  %v5808_v45 = vpack.c.bf16 %v3353_v19, %v3352_v18  ;;  %v3336_v22 = vld [vmem:[#allocation14 + $0x420] sm:$0xff]  ;;  %v2019_v18 = vrot.slane %v6524_v7, %v6409_v6 }
 0x4b0   :  { %5793 = vmatprep.subr.bf16.mxu1 %v5792_v23  ;;  %v3369_v23 = vld [vmem:[#allocation14 + $0x528] sm:$0xff]  ;;  %v5810_v40 = vpack.c.bf16 %v3337_v24, %v3336_v22  ;;  %v3376_v22 = vld [vmem:[#allocation14 + $0x560] sm:$0xff] }
 0x4b1   :  { %v3377_v24 = vld [vmem:[#allocation14 + $0x568] sm:$0xff] }
 0x4b2   :  { %5763 = vmatpush3.bf16.msra.mxu0 %v5762_v26  ;;  %v5842_v26 = vpack.c.bf16 %v3369_v23, %v3368_v25  ;;  %v3362_v25 = vld [vmem:[#allocation14 + $0x4f0] sm:$0xff] }
 0x4b3   :  { %5795 = vmatpush3.bf16.msra.mxu1 %v5794_v59  ;;  %5765 = vmatprep.subr.bf16.mxu0 %v5764_v47  ;;  %v3338_v59 = vld [vmem:[#allocation14 + $0x430] sm:$0xff]  ;;  %v3339_v47 = vld [vmem:[#allocation14 + $0x438] sm:$0xff] }
 0x4b4   :  { %5797 = vmatprep.subr.bf16.mxu1 %v5796_v53  ;;  %v3357_v53 = vld [vmem:[#allocation14 + $0x4c8] sm:$0xff]  ;;  %v5814_v56 = vpack.c.bf16 %v3339_v47, %v3338_v59  ;;  %v3346_v59 = vld [vmem:[#allocation14 + $0x470] sm:$0xff]  ;;  %v3347_v47 = vld [vmem:[#allocation14 + $0x478] sm:$0xff] }
 0x4b5   :  { %v5816_v58 = vpack.c.bf16 %v3357_v53, %v3356_v52  ;;  %v5828_v52 = vpack.c.bf16 %v3363_v28, %v3362_v25  ;;  %v3432_v25 = vld [vmem:[#allocation14 + $0x720] sm:$0xff]  ;;  %v3418_v28 = vld [vmem:[#allocation14 + $0x6b0] sm:$0xff] }
 0x4b6   :  { %5767 = vmatpush3.bf16.msra.mxu0 %v5766_v60  ;;  %v3340_v60 = vld [vmem:[#allocation14 + $0x440] sm:$0xff] }
 0x4b7   :  { %5799 = vmatpush3.bf16.msra.mxu1 %v5798_v62  ;;  %5801 = vmatprep.subr.bf16.mxu0 %v5800_v63  ;;  %v3372_v62 = vld [vmem:[#allocation14 + $0x540] sm:$0xff]  ;;  %v5848_v63 = vpack.c.bf16 %v3389_v4, %v3388_v55  ;;  %v5818_v5 = vpack.c.bf16 %v3341_v61, %v3340_v60  ;;  %v3379_v55 = vld [vmem:[#allocation14 + $0x578] sm:$0xff]  ;;  %v5830_v60 = vpack.c.bf16 %v3347_v47, %v3346_v59  ;;  %v3434_v59 = vld [vmem:[#allocation14 + $0x730] sm:$0xff] }
 0x4b8   :  { %5833 = vmatprep.subr.bf16.mxu1 %v5832_v3  ;;  %v3391_v3 = vld [vmem:[#allocation14 + $0x5d8] sm:$0xff]  ;;  %v5850_v10 = vpack.c.bf16 %v3373_v0, %v3372_v62  ;;  %v3412_v4 = vld [vmem:[#allocation14 + $0x680] sm:$0xff]  ;;  %v5862_v62 = vpack.c.bf16 %v3379_v55, %v3378_v48 }
 0x4b9   :  { %3672 = vmatmul.mubr.f32.vlgmr.msra.gmra.mrb[14].mxu0 %v3192_v8  ;;  %v3374_v8 = vld [vmem:[#allocation14 + $0x550] sm:$0xff]  ;;  %v3396_v0 = vld [vmem:[#allocation14 + $0x600] sm:$0xff]  ;;  %v3435_v48 = vld [vmem:[#allocation14 + $0x738] sm:$0xff] }
 0x4ba   :  { %3742 = vmatmul.mubr.f32.vlgmr.msra.gmra.mrb[14].mxu1 %v3194_v17  ;;  %5803 = vmatpush3.bf16.msra.mxu0 %v5802_v13  ;;  %v3343_v13 = vld [vmem:[#allocation14 + $0x458] sm:$0xff]  ;;  %v3393_v17 = vld [vmem:[#allocation14 + $0x5e8] sm:$0xff] }
 0x4bb   :  { %5835 = vmatpush3.bf16.msra.mxu1 %v5834_v31  ;;  %5805 = vmatprep.subr.bf16.mxu0 %v5804_v54  ;;  %v5852_v31 = vpack.c.bf16 %v3391_v3, %v3390_v34  ;;  %v3375_v54 = vld [vmem:[#allocation14 + $0x558] sm:$0xff]  ;;  %v5822_v9 = vpack.c.bf16 %v3343_v13, %v3342_v12  ;;  %v3429_v3 = vld [vmem:[#allocation14 + $0x708] sm:$0xff] }
 0x4bc   :  { %5837 = vmatprep.subr.bf16.mxu1 %v5836_v37  ;;  %v2011_v37 = vrot.slane %v6524_v7, %v6402_v44  ;;  %v5854_v19 = vpack.c.bf16 %v3375_v54, %v3374_v8  ;;  %v3394_v44 = vld [vmem:[#allocation14 + $0x5f0] sm:$0xff]  ;;  %v3447_v12 = vld [vmem:[#allocation14 + $0x798] sm:$0xff] }
 0x4bd   :  { %v5860_v53 = vpack.c.bf16 %v3395_v32, %v3394_v44  ;;  %v3419_v44 = vld [vmem:[#allocation14 + $0x6b8] sm:$0xff]  ;;  %v3450_v32 = vld [vmem:[#allocation14 + $0x7b0] sm:$0xff] }
 0x4be   :  { %5807 = vmatpush3.bf16.msra.mxu0 %v5806_v38  ;;  %v3345_v38 = vld [vmem:[#allocation14 + $0x468] sm:$0xff] }
 0x4bf   :  { %5839 = vmatpush3.bf16.msra.mxu1 %v5838_v43  ;;  %5809 = vmatprep.subr.bf16.mxu0 %v5808_v45  ;;  %v5856_v45 = vpack.c.bf16 %v3393_v17, %v3392_v16  ;;  %v5826_v6 = vpack.c.bf16 %v3345_v38, %v3344_v20  ;;  %v3430_v16 = vld [vmem:[#allocation14 + $0x710] sm:$0xff]  ;;  %v3449_v20 = vld [vmem:[#allocation14 + $0x7a8] sm:$0xff]  ;;  %v5870_v38 = vpack.c.bf16 %v3399_v30, %v3398_v15 }
 0x4c0   :  { %5841 = vmatprep.subr.bf16.mxu1 %v5840_v35 }
 0x4c2   :  { %5811 = vmatpush3.bf16.msra.mxu0 %v5810_v40  ;;  %v2007_v40 = vrot.slane %v6524_v7, %v6397_v42  ;;  %v3445_v42 = vld [vmem:[#allocation14 + $0x788] sm:$0xff] }
 0x4c3   :  { %5843 = vmatpush3.bf16.msra.mxu1 %v5842_v26  ;;  %5813 = vmatprep.subr.bf16.mxu0 %v5812_v46  ;;  %v5858_v46 = vpack.c.bf16 %v3377_v24, %v3376_v22  ;;  %v3400_v22 = vld [vmem:[#allocation14 + $0x620] sm:$0xff]  ;;  %v3401_v24 = vld [vmem:[#allocation14 + $0x628] sm:$0xff] }
 0x4c4   :  { %5845 = vmatprep.subr.bf16.mxu1 %v5844_v49  ;;  %v2015_v49 = vrot.slane %v6524_v7, %v6416_v51  ;;  %v3397_v51 = vld [vmem:[#allocation14 + $0x608] sm:$0xff] }
 0x4c5   :  { %v5866_v13 = vpack.c.bf16 %v3397_v51, %v3396_v0  ;;  %v3454_v0 = vld [vmem:[#allocation14 + $0x7d0] sm:$0xff]  ;;  %v3455_v51 = vld [vmem:[#allocation14 + $0x7d8] sm:$0xff] }
 0x4c6   :  { %5815 = vmatpush3.bf16.msra.mxu0 %v5814_v56  ;;  %v3413_v56 = vld [vmem:[#allocation14 + $0x688] sm:$0xff] }
 0x4c7   :  { %5847 = vmatpush3.bf16.msra.mxu1 %v5846_v57  ;;  %5817 = vmatprep.subr.bf16.mxu0 %v5816_v58  ;;  %v3444_v58 = vld [vmem:[#allocation14 + $0x780] sm:$0xff] }
 0x4c8   :  { %5849 = vmatprep.subr.bf16.mxu1 %v5848_v63  ;;  %v5864_v63 = vpack.c.bf16 %v3413_v56, %v3412_v4  ;;  %v5896_v34 = vpack.c.bf16 %v3445_v42, %v3444_v58  ;;  %v5910_v4 = vpack.c.bf16 %v3435_v48, %v3434_v59  ;;  %v3405_v58 = vld [vmem:[#allocation14 + $0x648] sm:$0xff]  ;;  %v3436_v42 = vld [vmem:[#allocation14 + $0x740] sm:$0xff] }
 0x4ca   :  { %5819 = vmatpush3.bf16.msra.mxu0 %v5818_v5  ;;  %v3414_v5 = vld [vmem:[#allocation14 + $0x690] sm:$0xff] }
 0x4cb   :  { %5851 = vmatpush3.bf16.msra.mxu1 %v5850_v10  ;;  %5821 = vmatprep.subr.bf16.mxu0 %v5820_v11  ;;  %v3415_v10 = vld [vmem:[#allocation14 + $0x698] sm:$0xff]  ;;  %v3446_v11 = vld [vmem:[#allocation14 + $0x790] sm:$0xff] }
 0x4cc   :  { %v2757_v43 = vpop.f32.mrb[8].mxu0  ;;  %5853 = vmatprep.subr.bf16.mxu1 %v5852_v31  ;;  %v5898_v31 = vpack.c.bf16 %v3429_v3, %v3428_v1  ;;  %v5868_v54 = vpack.c.bf16 %v3415_v10, %v3414_v5  ;;  %v3406_v3 = vld [vmem:[#allocation14 + $0x650] sm:$0xff]  ;;  %v3407_v5 = vld [vmem:[#allocation14 + $0x658] sm:$0xff] }
 0x4cd   :  { %v2899_v35 = vpop.f32.mrb[8].mxu1  ;;  %v2759_v23 = vpop.f32.mrb[9].mxu0  ;;  %v5940_v61 = vadd.f32 %v2757_v43, %v2007_v40  ;;  %v5876_v40 = vpack.c.bf16 %v3419_v44, %v3418_v28  ;;  %v3438_v10 = vld [vmem:[#allocation14 + $0x750] sm:$0xff]  ;;  %v5886_v15 = vpack.c.bf16 %v3407_v5, %v3406_v3  ;;  %v3443_v44 = vld [vmem:[#allocation14 + $0x778] sm:$0xff] }
 0x4ce   :  { %v5941_v33 = vadd.f32 %v2759_v23, %v2011_v37  ;;  %v2901_v39 = vpop.f32.mrb[9].mxu1  ;;  %5823 = vmatpush3.bf16.msra.mxu0 %v5822_v9  ;;  %v5942_v2 = vadd.f32 %v2899_v35, %v2015_v49  ;;  %v5900_v37 = vpack.c.bf16 %v3447_v12, %v3446_v11  ;;  %v3431_v9 = vld [vmem:[#allocation14 + $0x718] sm:$0xff]  ;;  %v3433_v23 = vld [vmem:[#allocation14 + $0x728] sm:$0xff]  ;;  %v3420_v49 = vld [vmem:[#allocation14 + $0x6c0] sm:$0xff]  ;;  %v5916_v11 = vpack.c.bf16 %v3455_v51, %v3454_v0 }
 0x4cf   :  { %v5943_v26 = vadd.f32 %v2901_v39, %v2019_v18  ;;  %5855 = vmatpush3.bf16.msra.mxu1 %v5854_v19  ;;  %5825 = vmatprep.subr.bf16.mxu0 %v5824_v14  ;;  %v3196_v8 = vmax.f32 %v5940_v61, 0.0  ;;  %v3416_v18 = vld [vmem:[#allocation14 + $0x6a0] sm:$0xff]  ;;  %v3417_v19 = vld [vmem:[#allocation14 + $0x6a8] sm:$0xff]  ;;  %v5902_v43 = vpack.c.bf16 %v3431_v9, %v3430_v16  ;;  %v5874_v39 = vpack.c.bf16 %v3401_v24, %v3400_v22  ;;  %v3439_v12 = vld [vmem:[#allocation14 + $0x758] sm:$0xff] }
 0x4d0   :  { %v3197_v50 = vmax.f32 %v5941_v33, 0.0  ;;  %5857 = vmatprep.subr.bf16.mxu1 %v5856_v45  ;;  %v3198_v17 = vmax.f32 %v5942_v2, 0.0  ;;  %v3448_v14 = vld [vmem:[#allocation14 + $0x7a0] sm:$0xff]  ;;  %v5872_v45 = vpack.c.bf16 %v3417_v19, %v3416_v18  ;;  %v3451_v33 = vld [vmem:[#allocation14 + $0x7b8] sm:$0xff]  ;;  %v3437_v61 = vld [vmem:[#allocation14 + $0x748] sm:$0xff]  ;;  %v5918_v30 = vpack.c.bf16 %v3439_v12, %v3438_v10 }
 0x4d1   :  { %v3199_v57 = vmax.f32 %v5943_v26, 0.0  ;;  %v5904_v35 = vpack.c.bf16 %v3449_v20, %v3448_v14  ;;  %v3402_v26 = vld [vmem:[#allocation14 + $0x630] sm:$0xff]  ;;  %v5908_v47 = vpack.c.bf16 %v3451_v33, %v3450_v32  ;;  %v5914_v2 = vpack.c.bf16 %v3437_v61, %v3436_v42  ;;  %v3440_v9 = vld [vmem:[#allocation14 + $0x760] sm:$0xff]  ;;  %v3441_v19 = vld [vmem:[#allocation14 + $0x768] sm:$0xff] }
 0x4d2   :  { %5827 = vmatpush3.bf16.msra.mxu0 %v5826_v6  ;;  %3811 = vmatprep.mubr.f32.mxu0 %v3197_v50  ;;  %v5906_v6 = vpack.c.bf16 %v3433_v23, %v3432_v25  ;;  %v3421_v50 = vld [vmem:[#allocation14 + $0x6c8] sm:$0xff]  ;;  %v3426_v14 = vld [vmem:[#allocation14 + $0x6f0] sm:$0xff]  ;;  %v3427_v20 = vld [vmem:[#allocation14 + $0x6f8] sm:$0xff]  ;;  %v5922_v22 = vpack.c.bf16 %v3441_v19, %v3440_v9 }
 0x4d3   :  { %5859 = vmatpush3.bf16.msra.mxu1 %v5858_v46  ;;  %3881 = vmatprep.mubr.f32.mxu1 %v3199_v57  ;;  %v3403_v46 = vld [vmem:[#allocation14 + $0x638] sm:$0xff]  ;;  %v5880_v56 = vpack.c.bf16 %v3421_v50, %v3420_v49  ;;  %v3404_v57 = vld [vmem:[#allocation14 + $0x640] sm:$0xff]  ;;  %v5892_v24 = vpack.c.bf16 %v3427_v20, %v3426_v14  ;;  %v3410_v25 = vld [vmem:[#allocation14 + $0x670] sm:$0xff] }
 0x4d4   :  { %5829 = vmatprep.subr.bf16.mxu0 %v5828_v52  ;;  %5861 = vmatprep.subr.bf16.mxu1 %v5860_v53  ;;  %v3452_v52 = vld [vmem:[#allocation14 + $0x7c0] sm:$0xff]  ;;  %v3453_v53 = vld [vmem:[#allocation14 + $0x7c8] sm:$0xff]  ;;  %v5878_v55 = vpack.c.bf16 %v3403_v46, %v3402_v26  ;;  %v5882_v1 = vpack.c.bf16 %v3405_v58, %v3404_v57  ;;  %v3442_v28 = vld [vmem:[#allocation14 + $0x770] sm:$0xff]  ;;  %v2035_v26 = vrot.slane %v6524_v7, %v2002_v36 }
 0x4d5   :  { %v5926_v33 = vpack.c.bf16 %v3443_v44, %v3442_v28 }
 0x4d6   :  { %5831 = vmatpush3.bf16.msra.mxu0 %v5830_v60  ;;  %v5912_v60 = vpack.c.bf16 %v3453_v53, %v3452_v52 }
 0x4d7   :  { %5863 = vmatpush3.bf16.msra.mxu1 %v5862_v62  ;;  %5865 = vmatprep.subr.bf16.mxu0 %v5864_v63  ;;  %v3422_v62 = vld [vmem:[#allocation14 + $0x6d0] sm:$0xff]  ;;  %v3423_v63 = vld [vmem:[#allocation14 + $0x6d8] sm:$0xff] }
 0x4d8   :  { %5897 = vmatprep.subr.bf16.mxu1 %v5896_v34  ;;  %v5884_v34 = vpack.c.bf16 %v3423_v63, %v3422_v62 }
 0x4d9   :  { %3812 = vmatmul.mubr.f32.vlgmr.msra.gmra.mrb[16].mxu0 %v3196_v8  ;;  %v3425_v8 = vld [vmem:[#allocation14 + $0x6e8] sm:$0xff] }
 0x4da   :  { %3882 = vmatmul.mubr.f32.vlgmr.msra.gmra.mrb[16].mxu1 %v3198_v17  ;;  %5867 = vmatpush3.bf16.msra.mxu0 %v5866_v13  ;;  %v3424_v13 = vld [vmem:[#allocation14 + $0x6e0] sm:$0xff] }
 0x4db   :  { %5899 = vmatpush3.bf16.msra.mxu1 %v5898_v31  ;;  %5869 = vmatprep.subr.bf16.mxu0 %v5868_v54  ;;  %v3456_v31 = vld [vmem:[#allocation14 + $0x7e0] sm:$0xff]  ;;  %v3457_v54 = vld [vmem:[#allocation14 + $0x7e8] sm:$0xff]  ;;  %v5888_v16 = vpack.c.bf16 %v3425_v8, %v3424_v13 }
 0x4dc   :  { %5901 = vmatprep.subr.bf16.mxu1 %v5900_v37  ;;  %v3408_v17 = vld [vmem:[#allocation14 + $0x660] sm:$0xff]  ;;  %v3409_v37 = vld [vmem:[#allocation14 + $0x668] sm:$0xff]  ;;  %v5920_v18 = vpack.c.bf16 %v3457_v54, %v3456_v31 }
 0x4de   :  { %5871 = vmatpush3.bf16.msra.mxu0 %v5870_v38  ;;  %v3458_v38 = vld [vmem:[#allocation14 + $0x7f0] sm:$0xff] }
 0x4df   :  { %5903 = vmatpush3.bf16.msra.mxu1 %v5902_v43  ;;  %5873 = vmatprep.subr.bf16.mxu0 %v5872_v45  ;;  %v3459_v43 = vld [vmem:[#allocation14 + $0x7f8] sm:$0xff]  ;;  %v5890_v45 = vpack.c.bf16 %v3409_v37, %v3408_v17 }
 0x4e0   :  { %5905 = vmatprep.subr.bf16.mxu1 %v5904_v35  ;;  %v3411_v35 = vld [vmem:[#allocation14 + $0x678] sm:$0xff]  ;;  %v5924_v23 = vpack.c.bf16 %v3459_v43, %v3458_v38 }
 0x4e1   :  { %v5894_v32 = vpack.c.bf16 %v3411_v35, %v3410_v25 }
 0x4e2   :  { %5875 = vmatpush3.bf16.msra.mxu0 %v5874_v39  ;;  %v2023_v39 = vrot.slane %v6524_v7, %v1990_v21 }
 0x4e3   :  { %5907 = vmatpush3.bf16.msra.mxu1 %v5906_v6  ;;  %5877 = vmatprep.subr.bf16.mxu0 %v5876_v40  ;;  %v2031_v6 = vrot.slane %v6524_v7, %v1998_v27  ;;  %v2027_v40 = vrot.slane %v6524_v7, %v1994_v29 }
 0x4e4   :  { %5909 = vmatprep.subr.bf16.mxu1 %v5908_v47 }
 0x4e6   :  { %5879 = vmatpush3.bf16.msra.mxu0 %v5878_v55 }
 0x4e7   :  { %5911 = vmatpush3.bf16.msra.mxu1 %v5910_v4  ;;  %5881 = vmatprep.subr.bf16.mxu0 %v5880_v56  ;;  %v4047_v56 = vld [vmem:[#allocation16] ss:$0 sm:$0xff] }
 0x4e8   :  { %5913 = vmatprep.subr.bf16.mxu1 %v5912_v60 }
 0x4ea   :  { %5883 = vmatpush3.bf16.msra.mxu0 %v5882_v1 }
 0x4eb   :  { %5915 = vmatpush3.bf16.msra.mxu1 %v5914_v2  ;;  %5885 = vmatprep.subr.bf16.mxu0 %v5884_v34 }
 0x4ec   :  { %5917 = vmatprep.subr.bf16.mxu1 %v5916_v11 }
 0x4ee   :  { %5887 = vmatpush3.bf16.msra.mxu0 %v5886_v15 }
 0x4ef   :  { %5919 = vmatpush3.bf16.msra.mxu1 %v5918_v30  ;;  %5889 = vmatprep.subr.bf16.mxu0 %v5888_v16 }
 0x4f0   :  { %5921 = vmatprep.subr.bf16.mxu1 %v5920_v18 }
 0x4f2   :  { %5891 = vmatpush3.bf16.msra.mxu0 %v5890_v45 }
 0x4f3   :  { %5923 = vmatpush3.bf16.msra.mxu1 %v5922_v22  ;;  %5893 = vmatprep.subr.bf16.mxu0 %v5892_v24 }
 0x4f4   :  { %5925 = vmatprep.subr.bf16.mxu1 %v5924_v23 }
 0x4f6   :  { %5895 = vmatpush3.bf16.msra.mxu0 %v5894_v32 }
 0x4f7   :  { %5927 = vmatpush3.bf16.msra.mxu1 %v5926_v33 }
 0x54c   :  { %v3041_v46 = vpop.f32.mrb[10].mxu0 }
 0x54d   :  { %v5944_v59 = vadd.f32 %v3041_v46, %v2023_v39  ;;  %v3183_v47 = vpop.f32.mrb[10].mxu1  ;;  %v3043_v48 = vpop.f32.mrb[11].mxu0 }
 0x54e   :  { %v5946_v49 = vadd.f32 %v3183_v47, %v2031_v6  ;;  %v5945_v50 = vadd.f32 %v3043_v48, %v2027_v40  ;;  %v3185_v52 = vpop.f32.mrb[11].mxu1 }
 0x54f   :  { %v5947_v21 = vadd.f32 %v3185_v52, %v2035_v26  ;;  %v3200_v55 = vmax.f32 %v5944_v59, 0.0 }
 0x550   :  { %v3201_v53 = vmax.f32 %v5945_v50, 0.0  ;;  %v3202_v27 = vmax.f32 %v5946_v49, 0.0 }
 0x551   :  { %v3203_v4 = vmax.f32 %v5947_v21, 0.0 }
 0x552   :  { %3951 = vmatprep.mubr.f32.mxu0 %v3201_v53 }
 0x553   :  { %4021 = vmatprep.mubr.f32.mxu1 %v3203_v4  ;;  %3952 = vmatmul.mubr.f32.vlgmr.msra.gmra.mrb[18].mxu0 %v3200_v55 }
 0x554   :  { %4022 = vmatmul.mubr.f32.vlgmr.msra.gmra.mrb[18].mxu1 %v3202_v27 }
 0x56c   :  { %v4080_v29 = vpop.f32.mrb[12].mxu0 }
 0x56d   :  { %v4115_v41 = vpop.f32.mrb[12].mxu1  ;;  %v4081_v36 = vpop.f32.mrb[13].mxu0 }
 0x56e   :  { %v4082_v7 = vadd.f32 %v4081_v36, %v4080_v29  ;;  %v4116_v57 = vpop.f32.mrb[13].mxu1 }
 0x56f   :  { %v4117_v58 = vadd.f32 %v4116_v57, %v4115_v41 }
 0x570   :  { %v3534_v42 = vadd.f32 %v4082_v7, %v4047_v56 }
 0x572   :  { %v3604_v60 = vadd.f32 %v4117_v58, %v3534_v42 }
 0x58c   :  { %v4150_v61 = vpop.f32.mrb[14].mxu0 }
 0x58d   :  { %v4185_v62 = vpop.f32.mrb[14].mxu1  ;;  %v4151_v63 = vpop.f32.mrb[15].mxu0 }
 0x58e   :  { %v4152_v0 = vadd.f32 %v4151_v63, %v4150_v61  ;;  %v4186_v51 = vpop.f32.mrb[15].mxu1 }
 0x58f   :  { %v4187_v1 = vadd.f32 %v4186_v51, %v4185_v62 }
 0x590   :  { %v3674_v2 = vadd.f32 %v4152_v0, %v3604_v60 }
 0x592   :  { %v3744_v34 = vadd.f32 %v4187_v1, %v3674_v2 }
 0x5ac   :  { %v4220_v3 = vpop.f32.mrb[16].mxu0 }
 0x5ad   :  { %v4255_v5 = vpop.f32.mrb[16].mxu1  ;;  %v4221_v10 = vpop.f32.mrb[17].mxu0 }
 0x5ae   :  { %v4222_v11 = vadd.f32 %v4221_v10, %v4220_v3  ;;  %v4256_v12 = vpop.f32.mrb[17].mxu1 }
 0x5af   :  { %v4257_v13 = vadd.f32 %v4256_v12, %v4255_v5 }
 0x5b0   :  { %v3814_v8 = vadd.f32 %v4222_v11, %v3744_v34 }
 0x5b2   :  { %v3884_v31 = vadd.f32 %v4257_v13, %v3814_v8 }
 0x626   :  { %v4290_v54 = vpop.f32.mrb[18].mxu0 }
 0x627   :  { %v4325_v15 = vpop.f32.mrb[18].mxu1  ;;  %v4291_v30 = vpop.f32.mrb[19].mxu0 }
 0x628   :  { %v4292_v16 = vadd.f32 %v4291_v30, %v4290_v54  ;;  %v4326_v17 = vpop.f32.mrb[19].mxu1 }
 0x629   :  { %v4327_v37 = vadd.f32 %v4326_v17, %v4325_v15 }
 0x62a   :  { %v3954_v9 = vadd.f32 %v4292_v16, %v3884_v31 }
 0x62c   :  { %v4024_v18 = vadd.f32 %v4327_v37, %v3954_v9 }
 0x62e   :  { %4027 = vst [vmem:[#allocation17] sm:$0xff] %v4024_v18 }
 0x62f   :  { %6193 = shalt.err (!%p6190_p6)
}
 0x630   :  { %s6194_s21 = scalar_lea.hbm %s6567_s9, 128 }
 0x631   :  { %p6195_p7 = scmp.ne.s32.totalorder %s6567_s9, %s6194_s21  ;;  %p6198_p8 = scmp.lt.u32.totalorder %s6194_s21, %s6567_s9 }
 0x633   :  { %p6200_p9 = pnand %p6198_p8, %p6195_p7 }
 0x635   :  { %6203 = shalt.err (!%p6200_p9)
}
 0x636   :  { %4037 = dma.vmem_to_hbm [thread:$0]  %s4035_s3, 128, %s6567_s9, [#allocation4]  }
 0x637   :  { %6214 = dma.done.wait [#allocation4], 128  }
 0x638   :  { %6215 = vsyncadd [#allocation4], 4294967168 }
 0x639   :  { %4041 = vsyncpa [#allocation3], 1 }
 0x63a   :  { %4042 = vsyncpa [#allocation6], 1 }
 0x63b   :  { %4043 = vsyncpa [#allocation9], 1 }
 0x63c   :  { %4044 = vsyncpa [#allocation12], 1 }
 0x63d   :  { %4045 = vsyncpa [#allocation15], 1 }
 0x63e   :  { %4046 = vsyncpa [#allocation4], 1 }

</bundles_post_ra>
